<compile_context>
chip_gen: v6e
topology: v6e:2x2x1
jax: 0.10.0
libtpu: 0.0.40
codegen_flags: <defaults>
</compile_context>

<pallas_src>
import functools
import jax
import jax.numpy as jnp
from jax.experimental import pallas as pl
from jax.experimental.pallas import tpu as pltpu

# ----------------------------- config (small) -------------------------------
B = 2            # batch
C = 3            # image channels
IMG = 16         # image spatial size
PATCH = 4        # patch size
NP_ = (IMG // PATCH) ** 2               # 16 patches per image
H = 32           # hidden_size
NH = 2           # self-attention heads in ViT blocks
HD = H // NH
DEPTH = 2        # transformer blocks
MLP = 4 * H
NUM_ATTRS = 6
NUM_OBJS = 5
LT_MAX = max(NUM_ATTRS, NUM_OBJS)
TOPK = 2         # config['k']
NETA = 0.5       # config['neta']
PAIRS = [(0, 0), (1, 1), (2, 2), (3, 3), (4, 4), (5, 0), (0, 1), (1, 2)]
NUM_PAIRS = len(PAIRS)
N_OUT = NUM_ATTRS + NUM_OBJS + NUM_PAIRS
N_IMG_TOK = NP_ + 1                     # 17 image tokens (incl. CLS)
L_TOT = N_IMG_TOK + 2 * TOPK            # 21 tokens entering the ViT blocks
BL = B * L_TOT                          # 42 batch-collapsed rows
EPS_VIT = 1e-6                          # timm ViT LayerNorm eps
EPS_LN = 1e-5                           # nn.LayerNorm default (cross blocks)


# --------------------------- in-kernel helpers -------------------------------
def _ln(x, g, b, eps):
    """Per-row layernorm in f32. x: (..., H); g/b broadcastable (1, H)."""
    mu = jnp.mean(x, axis=-1, keepdims=True)
    var = jnp.mean((x - mu) ** 2, axis=-1, keepdims=True)
    return (x - mu) * jax.lax.rsqrt(var + eps) * g + b


def _dot(a_f32, w_bf16):
    """act @ weight with bf16 MXU operands, f32 accumulation (weight already bf16)."""
    return jnp.dot(a_f32.astype(jnp.bfloat16), w_bf16,
                   preferred_element_type=jnp.float32)


def _dot_t(a, b):
    """a @ b.T (contract last dims) with bf16 operands, f32 accumulation."""
    return jax.lax.dot_general(a.astype(jnp.bfloat16), b.astype(jnp.bfloat16),
                               (((1,), (1,)), ((), ())),
                               preferred_element_type=jnp.float32)


def _fixed_spec(shape):
    nz = (0,) * len(shape)
    return pl.BlockSpec(shape, lambda *_: nz)


# ------------------- Kernel A: patch embed + cross scores --------------------
def _embed_cross_kernel(patches_ref, patch_w_ref, patch_b_ref, cls_ref, pos_ref,
                        txt_ref, kmask_ref,
                        lnq_g_ref, lnq_b_ref, lnkv_g_ref, lnkv_b_ref,
                        wq_ref, bq_ref, wk_ref, bk_ref,
                        img_ref, cross_ref, *, scale, eps):
    # Patch embed (bf16 MXU, f32 acc) for all B*NP patches at once.
    pt = _dot(patches_ref[...], patch_w_ref[...]) + patch_b_ref[...]    # (B*NP, H)
    cls = cls_ref[...]                                                   # (1, H)
    pos = pos_ref[...]                                                   # (Li, H)
    rows = []
    for b in range(B):                                                   # static
        tok = jnp.concatenate([cls, pt[b * NP_:(b + 1) * NP_]], axis=0) + pos
        img_ref[b] = tok.astype(img_ref.dtype)
        rows.append(tok)
    img_all = jnp.concatenate(rows, axis=0)                              # (B*Li, H)

    # Cross-attention scores: queries = image tokens, keys = text tables.
    # Only the query-summed softmax consumed by infer() is computed; the a@v /
    # wv / wp work of CrossAttentionBlock is dead on this path and skipped.
    # TODO(synk): exact cross_vit.CrossAttentionBlock internals unavailable;
    # structure approximated (num_heads=1 -> per-head-dim scale == H**-0.5).
    for path in range(2):                                 # {attr, obj}, static
        txt = _ln(txt_ref[path].astype(jnp.float32),
                  lnkv_g_ref[path], lnkv_b_ref[path], eps)
        k = _dot(txt, wk_ref[path]) + bk_ref[path]                       # (Lt, H)
        qin = _ln(img_all, lnq_g_ref[path], lnq_b_ref[path], eps)        # (B*Li, H)
        q = _dot(qin, wq_ref[path]) + bq_ref[path]
        s = _dot_t(q, k) * scale                                         # (B*Li, Lt)
        # NOTE: the row max below includes the padded (zero-row) obj key's
        # score; this only shifts numerator/denominator identically and the
        # kmask multiply removes the padded column afterwards -- harmless.
        s = s - jnp.max(s, axis=-1, keepdims=True)
        e = jnp.exp(s) * kmask_ref[path]                  # mask padded keys
        a = e / jnp.sum(e, axis=-1, keepdims=True)        # exact: feeds top_k
        sums = [jnp.sum(a[b * N_IMG_TOK:(b + 1) * N_IMG_TOK], axis=0,
                        keepdims=True) for b in range(B)]
        cross_ref[path] = jnp.concatenate(sums, axis=0).astype(cross_ref.dtype)


def embed_and_cross(patches, p):
    cp = p["cross"]
    kern = functools.partial(_embed_cross_kernel, scale=H ** -0.5, eps=EPS_LN)
    return pl.pallas_call(
        kern,
        grid=(1,),
        in_specs=[_fixed_spec((B * NP_, C * PATCH * PATCH)),
                  _fixed_spec((C * PATCH * PATCH, H)), _fixed_spec((1, H)),
                  _fixed_spec((1, H)), _fixed_spec((N_IMG_TOK, H)),
                  _fixed_spec((2, LT_MAX, H)), _fixed_spec((2, 1, LT_MAX)),
                  _fixed_spec((2, 1, H)), _fixed_spec((2, 1, H)),
                  _fixed_spec((2, 1, H)), _fixed_spec((2, 1, H)),
                  _fixed_spec((2, H, H)), _fixed_spec((2, 1, H)),
                  _fixed_spec((2, H, H)), _fixed_spec((2, 1, H))],
        out_specs=(_fixed_spec((B, N_IMG_TOK, H)),
                   _fixed_spec((2, B, LT_MAX))),
        out_shape=(jax.ShapeDtypeStruct((B, N_IMG_TOK, H), jnp.float32),
                   jax.ShapeDtypeStruct((2, B, LT_MAX), jnp.float32)),
    )(patches, p["patch_w"], p["patch_b"], p["cls"], p["pos"],
      p["txt_tables"], p["kmask"],
      cp["lnq_g"], cp["lnq_b"], cp["lnkv_g"], cp["lnkv_b"],
      cp["wq"], cp["bq"], cp["wk"], cp["bk"])


# ------------- Kernel B: all ViT blocks + final LN + pooler heads ------------
def _blocks_pooler_kernel(x_ref, mask_ref,
                          ln1_g_ref, ln1_b_ref,
                          wq_ref, bq_ref, wk_ref, bk_ref, wv_ref, bv_ref,
                          wp_ref, pb_ref, ln2_g_ref, ln2_b_ref,
                          fc1_w_ref, fc1_b_ref, fc2_w_ref, fc2_b_ref,
                          norm_g_ref, norm_b_ref, pool_w_ref, pool_b_ref,
                          head_w_ref, head_b_ref,
                          out_ref, x_scr, *, eps, scale):
    d = pl.program_id(0)

    @pl.when(d == 0)
    def _():
        x_scr[...] = x_ref[...].astype(jnp.float32)
        out_ref[...] = jnp.zeros_like(out_ref)            # cheap init insurance

    # ----- one ViT block on batch-collapsed rows (B*L, H) -----
    x = x_scr[...]
    h1 = _ln(x, ln1_g_ref[0], ln1_b_ref[0], eps)
    h1b = h1.astype(jnp.bfloat16)
    mask = mask_ref[...]                                  # block-diag additive mask

    att = jnp.zeros((BL, H), jnp.float32)
    for h in range(NH):   # per-head weights pre-split host-side -> no lane slicing
        q = jnp.dot(h1b, wq_ref[0, h], preferred_element_type=jnp.float32) + bq_ref[0, h]
        k = jnp.dot(h1b, wk_ref[0, h], preferred_element_type=jnp.float32) + bk_ref[0, h]
        v = jnp.dot(h1b, wv_ref[0, h], preferred_element_type=jnp.float32) + bv_ref[0, h]
        s = _dot_t(q, k) * scale + mask                   # (BL, BL); cross-batch masked
        s = s - jnp.max(s, axis=-1, keepdims=True)
        e = jnp.exp(s)
        a = e * pl.reciprocal(jnp.sum(e, axis=-1, keepdims=True), approx=True)
        oh = jnp.dot(a.astype(jnp.bfloat16), v.astype(jnp.bfloat16),
                     preferred_element_type=jnp.float32)  # (BL, HD)
        # head-merge folded into the output projection (per-head slab of W_p)
        att = att + jnp.dot(oh.astype(jnp.bfloat16), wp_ref[0, h],
                            preferred_element_type=jnp.float32)

    x = x + att + pb_ref[0]
    h2 = _ln(x, ln2_g_ref[0], ln2_b_ref[0], eps)
    # TODO(synk): PyTorch nn.GELU() defaults to exact erf; tanh approximation
    # used since erf is not guaranteed to lower in Mosaic.
    m = jax.nn.gelu(_dot(h2, fc1_w_ref[0]) + fc1_b_ref[0], approximate=True)
    x = x + _dot(m, fc2_w_ref[0]) + fc2_b_ref[0]
    x_scr[...] = x

    # ----- final LN + pooler + heads fused into the last depth step -----
    @pl.when(d == DEPTH - 1)
    def _():
        # LN is per-token, so LN-ing only the CLS rows equals LN-ing all rows.
        cls = jnp.concatenate([x[b * L_TOT:b * L_TOT + 1, :] for b in range(B)],
                              axis=0)                     # (B, H)
        cn = _ln(cls, norm_g_ref[...], norm_b_ref[...], eps)
        pooled = jnp.tanh(_dot(cn, pool_w_ref[...]) + pool_b_ref[...])
        out_ref[...] = (_dot(pooled, head_w_ref[...]) + head_b_ref[...]
                        ).astype(out_ref.dtype)


def blocks_and_pool(co_flat, p):
    blk = p["blocks"]
    kern = functools.partial(_blocks_pooler_kernel, eps=EPS_VIT, scale=HD ** -0.5)

    def dspec(shape):     # depth-stacked weight: block = (1, ...rest), idx = (d, 0...)
        rest = (0,) * (len(shape) - 1)
        return pl.BlockSpec((1,) + tuple(shape[1:]),
                            lambda d, rest=rest: (d,) + rest)

    return pl.pallas_call(
        kern,
        grid=(DEPTH,),
        in_specs=[_fixed_spec((BL, H)), _fixed_spec((BL, BL)),
                  dspec((DEPTH, 1, H)), dspec((DEPTH, 1, H)),
                  dspec((DEPTH, NH, H, HD)), dspec((DEPTH, NH, 1, HD)),
                  dspec((DEPTH, NH, H, HD)), dspec((DEPTH, NH, 1, HD)),
                  dspec((DEPTH, NH, H, HD)), dspec((DEPTH, NH, 1, HD)),
                  dspec((DEPTH, NH, HD, H)), dspec((DEPTH, 1, H)),
                  dspec((DEPTH, 1, H)), dspec((DEPTH, 1, H)),
                  dspec((DEPTH, H, MLP)), dspec((DEPTH, 1, MLP)),
                  dspec((DEPTH, MLP, H)), dspec((DEPTH, 1, H)),
                  _fixed_spec((1, H)), _fixed_spec((1, H)),
                  _fixed_spec((H, H)), _fixed_spec((1, H)),
                  _fixed_spec((H, N_OUT)), _fixed_spec((1, N_OUT))],
        out_specs=_fixed_spec((B, N_OUT)),
        out_shape=jax.ShapeDtypeStruct((B, N_OUT), jnp.float32),
        scratch_shapes=[pltpu.VMEM((BL, H), jnp.float32)],
        compiler_params=pltpu.CompilerParams(
            dimension_semantics=("arbitrary",)),
    )(co_flat, p["attn_mask"],
      blk["ln1_g"], blk["ln1_b"],
      blk["wq"], blk["bq"], blk["wk"], blk["bk"], blk["wv"], blk["bv"],
      blk["wproj"], blk["proj_b"], blk["ln2_g"], blk["ln2_b"],
      blk["fc1_w"], blk["fc1_b"], blk["fc2_w"], blk["fc2_b"],
      p["norm_g"], p["norm_b"], p["pool_w"], p["pool_b"],
      p["head_w"], p["head_b"])


# ------------------------------- model glue ----------------------------------
def init_params(key):
    bf = jnp.bfloat16

    def nrm(k, shape, s=0.02):
        return jax.random.normal(k, shape, jnp.float32) * s

    keys = iter(jax.random.split(key, 64))
    p = {}
    # visual embed (patch conv as matmul) + cls + pos
    p["patch_w"] = nrm(next(keys), (C * PATCH * PATCH, H)).astype(bf)
    p["patch_b"] = jnp.zeros((1, H), jnp.float32)
    p["cls"] = nrm(next(keys), (1, H))
    p["pos"] = nrm(next(keys), (N_IMG_TOK, H))
    # frozen BERT text embeddings (synthetic)
    p["text_attr"] = nrm(next(keys), (NUM_ATTRS, H), 0.1)
    p["text_obj"] = nrm(next(keys), (NUM_OBJS, H), 0.1)
    # token type embeddings
    p["tte"] = nrm(next(keys), (2, H))

    # Cross-attention params stacked along a leading {attr, obj} axis.
    # wv / wp of CrossAttentionBlock are dead on the infer path and omitted.
    p["cross"] = {
        "lnq_g": jnp.ones((2, 1, H), jnp.float32),
        "lnq_b": jnp.zeros((2, 1, H), jnp.float32),
        "lnkv_g": jnp.ones((2, 1, H), jnp.float32),
        "lnkv_b": jnp.zeros((2, 1, H), jnp.float32),
        "wq": jnp.stack([nrm(next(keys), (H, H)),
                         nrm(next(keys), (H, H))]).astype(bf),
        "bq": jnp.zeros((2, 1, H), jnp.float32),
        "wk": jnp.stack([nrm(next(keys), (H, H)),
                         nrm(next(keys), (H, H))]).astype(bf),
        "bk": jnp.zeros((2, 1, H), jnp.float32),
    }

    def stk(shape, dtype=jnp.float32):
        return jnp.stack([nrm(next(keys), shape) for _ in range(DEPTH)]).astype(dtype)

    # ViT block weights stacked along depth; QKV / proj pre-split per head so
    # the kernel never does non-lane-aligned head slicing.
    p["blocks"] = {
        "ln1_g": jnp.ones((DEPTH, 1, H), jnp.float32),
        "ln1_b": jnp.zeros((DEPTH, 1, H), jnp.float32),
        "wq": stk((NH, H, HD), bf), "bq": jnp.zeros((DEPTH, NH, 1, HD), jnp.float32),
        "wk": stk((NH, H, HD), bf), "bk": jnp.zeros((DEPTH, NH, 1, HD), jnp.float32),
        "wv": stk((NH, H, HD), bf), "bv": jnp.zeros((DEPTH, NH, 1, HD), jnp.float32),
        "wproj": stk((NH, HD, H), bf),
        "proj_b": jnp.zeros((DEPTH, 1, H), jnp.float32),
        "ln2_g": jnp.ones((DEPTH, 1, H), jnp.float32),
        "ln2_b": jnp.zeros((DEPTH, 1, H), jnp.float32),
        "fc1_w": stk((H, MLP), bf), "fc1_b": jnp.zeros((DEPTH, 1, MLP), jnp.float32),
        "fc2_w": stk((MLP, H), bf), "fc2_b": jnp.zeros((DEPTH, 1, H), jnp.float32),
    }

    p["norm_g"] = jnp.ones((1, H), jnp.float32)
    p["norm_b"] = jnp.zeros((1, H), jnp.float32)
    # TODO(synk): exact heads.DualCombinePooler internals unavailable; CLS
    # pooling + tanh dense + fused attr/obj/pair heads approximate it.
    p["pool_w"] = nrm(next(keys), (H, H)).astype(bf)
    p["pool_b"] = jnp.zeros((1, H), jnp.float32)
    p["head_w"] = jnp.concatenate([nrm(next(keys), (H, NUM_ATTRS)),
                                   nrm(next(keys), (H, NUM_OBJS)),
                                   nrm(next(keys), (H, NUM_PAIRS))],
                                  axis=1).astype(bf)
    p["head_b"] = jnp.zeros((1, N_OUT), jnp.float32)
    p["unseen_scores"] = jnp.zeros((NUM_PAIRS,), jnp.float32)
    p["train_attrs"] = jnp.array([a for a, _ in PAIRS], jnp.int32)
    p["train_objs"] = jnp.array([o for _, o in PAIRS], jnp.int32)

    # Padded/stacked text tables + key-validity mask for the fused cross path.
    txt_obj_pad = jnp.pad(p["text_obj"], ((0, LT_MAX - NUM_OBJS), (0, 0)))
    p["txt_tables"] = jnp.stack([p["text_attr"], txt_obj_pad], axis=0)  # (2,LT_MAX,H)
    kmask = jnp.stack([jnp.ones((LT_MAX,), jnp.float32),
                       (jnp.arange(LT_MAX) < NUM_OBJS).astype(jnp.float32)])
    p["kmask"] = kmask.reshape(2, 1, LT_MAX)

    # Block-diagonal additive attention mask: 0 within a batch element's
    # tokens, -1e30 across batches (co_masks are all-ones on the infer path,
    # so this only isolates batch elements after batch-collapsing rows).
    bid = jnp.repeat(jnp.arange(B), L_TOT)
    p["attn_mask"] = jnp.where(bid[:, None] == bid[None, :], 0.0, -1e30
                               ).astype(jnp.float32)
    return p


def patchify(img):
    """img: (B, C, IMG, IMG) NCHW -> (B*NP, C*PATCH*PATCH); layout only (XLA)."""
    b, c, h, w = img.shape
    hp, wp = h // PATCH, w // PATCH
    x = img.reshape(b, c, hp, PATCH, wp, PATCH)
    # per-patch flatten order matches Conv2d weight layout (C, p, p)
    return x.transpose(0, 2, 4, 1, 3, 5).reshape(b * hp * wp, c * PATCH * PATCH)


def infer(img, p):
    """Mirror of OADIS.infer (mask_text=False, mask_image=False)."""
    patches = patchify(img)
    # Kernel A: patch embed + CLS/pos + both cross-attention score paths.
    # (queries are image_embeds.detach() in the original; no grads at inference)
    image_embeds, cross = embed_and_cross(patches, p)      # (B,17,H), (2,B,Lt)
    attn_attr = cross[0][:, :NUM_ATTRS]
    attn_obj = cross[1][:, :NUM_OBJS]

    _, attr_idx = jax.lax.top_k(attn_attr, TOPK)
    _, obj_idx = jax.lax.top_k(attn_obj, TOPK)
    sel_attr = jnp.take(p["text_attr"], attr_idx, axis=0)  # (B, K, H)
    sel_obj = jnp.take(p["text_obj"], obj_idx, axis=0)     # (B, K, H)
    text_embeds = jnp.concatenate([sel_attr, sel_obj], axis=1) \
        + p["tte"][1][None, None, :]                       # token type 1
    image_embeds = image_embeds + p["tte"][0][None, None, :]   # token type 0

    co = jnp.concatenate([image_embeds, text_embeds], axis=1)  # (B, 21, H)
    co_flat = co.reshape(BL, H)

    # Kernel B: DEPTH ViT blocks + final LN + pooler heads in one call.
    pooled_heads = blocks_and_pool(co_flat, p)              # (B, N_OUT)

    attr_feats = pooled_heads[:, :NUM_ATTRS]
    obj_feats = pooled_heads[:, NUM_ATTRS:NUM_ATTRS + NUM_OBJS]
    main_class_feats = pooled_heads[:, NUM_ATTRS + NUM_OBJS:]
    aux_class_feats = attr_feats[:, p["train_attrs"]] + obj_feats[:, p["train_objs"]]
    class_feats = (NETA * main_class_feats + (1.0 - NETA) * aux_class_feats
                   + p["unseen_scores"][None, :])

    return {
        "cls_feats": class_feats,
        "main_cls_feats": main_class_feats,
        "aux_cls_feats": aux_class_feats,
        "obj_feats": obj_feats,
        "attr_feats": attr_feats,
        "attn_attr": attn_attr,
        "attn_obj": attn_obj,
    }

# TODO(synk): train_forward/val_forward losses (objectives.compute_calss_aux /
# compute_second / compute_topk) are external and not reproducible here; only
# the infer() feature path is implemented.


if __name__ == "__main__":
    key = jax.random.PRNGKey(0)
    k_param, k_img = jax.random.split(key)
    params = init_params(k_param)
    img = jax.random.normal(k_img, (B, C, IMG, IMG), jnp.float32)

    out = jax.jit(infer)(img, params)
    jax.block_until_ready(out)

    assert out["cls_feats"].shape == (B, NUM_PAIRS)
    assert out["main_cls_feats"].shape == (B, NUM_PAIRS)
    assert out["aux_cls_feats"].shape == (B, NUM_PAIRS)
    assert out["attr_feats"].shape == (B, NUM_ATTRS)
    assert out["obj_feats"].shape == (B, NUM_OBJS)
    assert out["attn_attr"].shape == (B, NUM_ATTRS)
    assert out["attn_obj"].shape == (B, NUM_OBJS)
    print("KERNEL_OK")
</pallas_src>

<mosaic_0001>
module attributes {stable_mosaic.version = 11 : i64} {
  func.func @_embed_cross_kernel(%arg0: i32, %arg1: memref<32x48xf32, #tpu.memory_space<vmem>>, %arg2: memref<48x32xbf16, #tpu.memory_space<vmem>>, %arg3: memref<1x32xf32, #tpu.memory_space<vmem>>, %arg4: memref<1x32xf32, #tpu.memory_space<vmem>>, %arg5: memref<17x32xf32, #tpu.memory_space<vmem>>, %arg6: memref<2x6x32xf32, #tpu.memory_space<vmem>>, %arg7: memref<2x1x6xf32, #tpu.memory_space<vmem>>, %arg8: memref<2x1x32xf32, #tpu.memory_space<vmem>>, %arg9: memref<2x1x32xf32, #tpu.memory_space<vmem>>, %arg10: memref<2x1x32xf32, #tpu.memory_space<vmem>>, %arg11: memref<2x1x32xf32, #tpu.memory_space<vmem>>, %arg12: memref<2x32x32xbf16, #tpu.memory_space<vmem>>, %arg13: memref<2x1x32xf32, #tpu.memory_space<vmem>>, %arg14: memref<2x32x32xbf16, #tpu.memory_space<vmem>>, %arg15: memref<2x1x32xf32, #tpu.memory_space<vmem>>, %arg16: memref<2x17x32xf32, #tpu.memory_space<vmem>>, %arg17: memref<2x2x6xf32, #tpu.memory_space<vmem>>) attributes {dimension_semantics = [#tpu.dimension_semantics<arbitrary>], iteration_bounds = array<i64: 1>, scalar_prefetch = 0 : i64, scratch_operands = 0 : i64, tpu.core_type = #tpu.core_type<tc>, window_params = [{pipeline_mode = #tpu.pipeline_mode<synchronous>, transform_indices = @transform_0, window_bounds = array<i64: 32, 48>}, {pipeline_mode = #tpu.pipeline_mode<synchronous>, transform_indices = @transform_1, window_bounds = array<i64: 48, 32>}, {pipeline_mode = #tpu.pipeline_mode<synchronous>, transform_indices = @transform_2, window_bounds = array<i64: 1, 32>}, {pipeline_mode = #tpu.pipeline_mode<synchronous>, transform_indices = @transform_3, window_bounds = array<i64: 1, 32>}, {pipeline_mode = #tpu.pipeline_mode<synchronous>, transform_indices = @transform_4, window_bounds = array<i64: 17, 32>}, {pipeline_mode = #tpu.pipeline_mode<synchronous>, transform_indices = @transform_5, window_bounds = array<i64: 2, 6, 32>}, {pipeline_mode = #tpu.pipeline_mode<synchronous>, transform_indices = @transform_6, window_bounds = array<i64: 2, 1, 6>}, {pipeline_mode = #tpu.pipeline_mode<synchronous>, transform_indices = @transform_7, window_bounds = array<i64: 2, 1, 32>}, {pipeline_mode = #tpu.pipeline_mode<synchronous>, transform_indices = @transform_8, window_bounds = array<i64: 2, 1, 32>}, {pipeline_mode = #tpu.pipeline_mode<synchronous>, transform_indices = @transform_9, window_bounds = array<i64: 2, 1, 32>}, {pipeline_mode = #tpu.pipeline_mode<synchronous>, transform_indices = @transform_10, window_bounds = array<i64: 2, 1, 32>}, {pipeline_mode = #tpu.pipeline_mode<synchronous>, transform_indices = @transform_11, window_bounds = array<i64: 2, 32, 32>}, {pipeline_mode = #tpu.pipeline_mode<synchronous>, transform_indices = @transform_12, window_bounds = array<i64: 2, 1, 32>}, {pipeline_mode = #tpu.pipeline_mode<synchronous>, transform_indices = @transform_13, window_bounds = array<i64: 2, 32, 32>}, {pipeline_mode = #tpu.pipeline_mode<synchronous>, transform_indices = @transform_14, window_bounds = array<i64: 2, 1, 32>}, {pipeline_mode = #tpu.pipeline_mode<synchronous>, transform_indices = @transform_15, window_bounds = array<i64: 2, 17, 32>}, {pipeline_mode = #tpu.pipeline_mode<synchronous>, transform_indices = @transform_16, window_bounds = array<i64: 2, 2, 6>}]} {
    %c0 = arith.constant 0 : index
    %c0_0 = arith.constant 0 : index
    %0 = vector.load %arg1[%c0, %c0_0] : memref<32x48xf32, #tpu.memory_space<vmem>>, vector<32x48xf32>
    %c0_1 = arith.constant 0 : index
    %c0_2 = arith.constant 0 : index
    %1 = vector.load %arg2[%c0_1, %c0_2] : memref<48x32xbf16, #tpu.memory_space<vmem>>, vector<48x32xbf16>
    %2 = arith.truncf %0 : vector<32x48xf32> to vector<32x48xbf16>
    %cst = arith.constant dense<0.000000e+00> : vector<32x32xf32>
    %3 = tpu.matmul %2, %1, %cst {dimension_numbers = #tpu.dot_dimension_numbers<[1], [0], [0], [1], [0, 0, 1, 1], [], []>} : vector<32x48xbf16>, vector<48x32xbf16>, vector<32x32xf32> -> vector<32x32xf32>
    %c0_3 = arith.constant 0 : index
    %c0_4 = arith.constant 0 : index
    %4 = vector.load %arg3[%c0_3, %c0_4] : memref<1x32xf32, #tpu.memory_space<vmem>>, vector<1x32xf32>
    %5 = vector.broadcast %4 : vector<1x32xf32> to vector<32x32xf32>
    %6 = arith.addf %3, %5 : vector<32x32xf32>
    %c0_5 = arith.constant 0 : index
    %c0_6 = arith.constant 0 : index
    %7 = vector.load %arg4[%c0_5, %c0_6] : memref<1x32xf32, #tpu.memory_space<vmem>>, vector<1x32xf32>
    %c0_7 = arith.constant 0 : index
    %c0_8 = arith.constant 0 : index
    %8 = vector.load %arg5[%c0_7, %c0_8] : memref<17x32xf32, #tpu.memory_space<vmem>>, vector<17x32xf32>
    %9 = vector.extract_strided_slice %6 {offsets = [0, 0], sizes = [16, 32], strides = [1, 1]} : vector<32x32xf32> to vector<16x32xf32>
    %10 = tpu.concatenate %7, %9 in 0 : vector<1x32xf32>, vector<16x32xf32> -> vector<17x32xf32>
    %11 = arith.addf %10, %8 : vector<17x32xf32>
    %c0_9 = arith.constant 0 : index
    %c0_10 = arith.constant 0 : index
    %c0_11 = arith.constant 0 : index
    %12 = vector.load %arg16[%c0_9, %c0_10, %c0_11] : memref<2x17x32xf32, #tpu.memory_space<vmem>>, vector<1x17x32xf32>
    %13 = vector.shape_cast %12 : vector<1x17x32xf32> to vector<17x32xf32>
    %14 = vector.shape_cast %11 : vector<17x32xf32> to vector<1x17x32xf32>
    tpu.vector_store %arg16[%c0_9, %c0_10, %c0_11], %14 {strides = array<i32>} : memref<2x17x32xf32, #tpu.memory_space<vmem>>, vector<1x17x32xf32>,
    %15 = vector.extract_strided_slice %6 {offsets = [16, 0], sizes = [16, 32], strides = [1, 1]} : vector<32x32xf32> to vector<16x32xf32>
    %16 = tpu.concatenate %7, %15 in 0 : vector<1x32xf32>, vector<16x32xf32> -> vector<17x32xf32>
    %17 = arith.addf %16, %8 : vector<17x32xf32>
    %c1 = arith.constant 1 : index
    %c0_12 = arith.constant 0 : index
    %c0_13 = arith.constant 0 : index
    %18 = vector.load %arg16[%c1, %c0_12, %c0_13] : memref<2x17x32xf32, #tpu.memory_space<vmem>>, vector<1x17x32xf32>
    %19 = vector.shape_cast %18 : vector<1x17x32xf32> to vector<17x32xf32>
    %20 = vector.shape_cast %17 : vector<17x32xf32> to vector<1x17x32xf32>
    tpu.vector_store %arg16[%c1, %c0_12, %c0_13], %20 {strides = array<i32>} : memref<2x17x32xf32, #tpu.memory_space<vmem>>, vector<1x17x32xf32>,
    %21 = tpu.concatenate %11, %17 in 0 : vector<17x32xf32>, vector<17x32xf32> -> vector<34x32xf32>
    %c0_14 = arith.constant 0 : index
    %c0_15 = arith.constant 0 : index
    %c0_16 = arith.constant 0 : index
    %22 = vector.load %arg6[%c0_14, %c0_15, %c0_16] : memref<2x6x32xf32, #tpu.memory_space<vmem>>, vector<1x6x32xf32>
    %23 = vector.shape_cast %22 : vector<1x6x32xf32> to vector<6x32xf32>
    %c0_17 = arith.constant 0 : index
    %c0_18 = arith.constant 0 : index
    %c0_19 = arith.constant 0 : index
    %24 = vector.load %arg10[%c0_17, %c0_18, %c0_19] : memref<2x1x32xf32, #tpu.memory_space<vmem>>, vector<1x1x32xf32>
    %25 = vector.shape_cast %24 : vector<1x1x32xf32> to vector<1x32xf32>
    %c0_20 = arith.constant 0 : index
    %c0_21 = arith.constant 0 : index
    %c0_22 = arith.constant 0 : index
    %26 = vector.load %arg11[%c0_20, %c0_21, %c0_22] : memref<2x1x32xf32, #tpu.memory_space<vmem>>, vector<1x1x32xf32>
    %27 = vector.shape_cast %26 : vector<1x1x32xf32> to vector<1x32xf32>
    %cst_23 = arith.constant dense<0.000000e+00> : vector<6xf32>
    %28 = vector.multi_reduction <add>, %23, %cst_23 [1] : vector<6x32xf32> to vector<6xf32>
    %29 = vector.shape_cast %28 : vector<6xf32> to vector<6x1xf32>
    %cst_24 = arith.constant 3.200000e+01 : f32
    %30 = vector.broadcast %cst_24 : f32 to vector<6x1xf32>
    %31 = arith.divf %29, %30 : vector<6x1xf32>
    %32 = vector.broadcast %31 : vector<6x1xf32> to vector<6x32xf32>
    %33 = arith.subf %23, %32 : vector<6x32xf32>
    %34 = arith.mulf %33, %33 : vector<6x32xf32>
    %cst_25 = arith.constant dense<0.000000e+00> : vector<6xf32>
    %35 = vector.multi_reduction <add>, %34, %cst_25 [1] : vector<6x32xf32> to vector<6xf32>
    %36 = vector.shape_cast %35 : vector<6xf32> to vector<6x1xf32>
    %cst_26 = arith.constant 3.200000e+01 : f32
    %37 = vector.broadcast %cst_26 : f32 to vector<6x1xf32>
    %38 = arith.divf %36, %37 : vector<6x1xf32>
    %39 = vector.broadcast %31 : vector<6x1xf32> to vector<6x32xf32>
    %40 = arith.subf %23, %39 : vector<6x32xf32>
    %cst_27 = arith.constant 9.99999974E-6 : f32
    %41 = vector.broadcast %cst_27 : f32 to vector<6x1xf32>
    %42 = arith.addf %38, %41 : vector<6x1xf32>
    %43 = math.rsqrt %42 : vector<6x1xf32>
    %44 = vector.broadcast %43 : vector<6x1xf32> to vector<6x32xf32>
    %45 = arith.mulf %40, %44 : vector<6x32xf32>
    %46 = vector.broadcast %25 : vector<1x32xf32> to vector<6x32xf32>
    %47 = arith.mulf %45, %46 : vector<6x32xf32>
    %48 = vector.broadcast %27 : vector<1x32xf32> to vector<6x32xf32>
    %49 = arith.addf %47, %48 : vector<6x32xf32>
    %c0_28 = arith.constant 0 : index
    %c0_29 = arith.constant 0 : index
    %c0_30 = arith.constant 0 : index
    %50 = vector.load %arg14[%c0_28, %c0_29, %c0_30] : memref<2x32x32xbf16, #tpu.memory_space<vmem>>, vector<1x32x32xbf16>
    %51 = vector.shape_cast %50 : vector<1x32x32xbf16> to vector<32x32xbf16>
    %52 = arith.truncf %49 : vector<6x32xf32> to vector<6x32xbf16>
    %cst_31 = arith.constant dense<0.000000e+00> : vector<6x32xf32>
    %53 = tpu.matmul %52, %51, %cst_31 {dimension_numbers = #tpu.dot_dimension_numbers<[1], [0], [0], [1], [0, 0, 1, 1], [], []>} : vector<6x32xbf16>, vector<32x32xbf16>, vector<6x32xf32> -> vector<6x32xf32>
    %c0_32 = arith.constant 0 : index
    %c0_33 = arith.constant 0 : index
    %c0_34 = arith.constant 0 : index
    %54 = vector.load %arg15[%c0_32, %c0_33, %c0_34] : memref<2x1x32xf32, #tpu.memory_space<vmem>>, vector<1x1x32xf32>
    %55 = vector.shape_cast %54 : vector<1x1x32xf32> to vector<1x32xf32>
    %56 = vector.broadcast %55 : vector<1x32xf32> to vector<6x32xf32>
    %57 = arith.addf %53, %56 : vector<6x32xf32>
    %c0_35 = arith.constant 0 : index
    %c0_36 = arith.constant 0 : index
    %c0_37 = arith.constant 0 : index
    %58 = vector.load %arg8[%c0_35, %c0_36, %c0_37] : memref<2x1x32xf32, #tpu.memory_space<vmem>>, vector<1x1x32xf32>
    %59 = vector.shape_cast %58 : vector<1x1x32xf32> to vector<1x32xf32>
    %c0_38 = arith.constant 0 : index
    %c0_39 = arith.constant 0 : index
    %c0_40 = arith.constant 0 : index
    %60 = vector.load %arg9[%c0_38, %c0_39, %c0_40] : memref<2x1x32xf32, #tpu.memory_space<vmem>>, vector<1x1x32xf32>
    %61 = vector.shape_cast %60 : vector<1x1x32xf32> to vector<1x32xf32>
    %cst_41 = arith.constant dense<0.000000e+00> : vector<34xf32>
    %62 = vector.multi_reduction <add>, %21, %cst_41 [1] : vector<34x32xf32> to vector<34xf32>
    %63 = vector.shape_cast %62 : vector<34xf32> to vector<34x1xf32>
    %cst_42 = arith.constant 3.200000e+01 : f32
    %64 = vector.broadcast %cst_42 : f32 to vector<34x1xf32>
    %65 = arith.divf %63, %64 : vector<34x1xf32>
    %66 = vector.broadcast %65 : vector<34x1xf32> to vector<34x32xf32>
    %67 = arith.subf %21, %66 : vector<34x32xf32>
    %68 = arith.mulf %67, %67 : vector<34x32xf32>
    %cst_43 = arith.constant dense<0.000000e+00> : vector<34xf32>
    %69 = vector.multi_reduction <add>, %68, %cst_43 [1] : vector<34x32xf32> to vector<34xf32>
    %70 = vector.shape_cast %69 : vector<34xf32> to vector<34x1xf32>
    %cst_44 = arith.constant 3.200000e+01 : f32
    %71 = vector.broadcast %cst_44 : f32 to vector<34x1xf32>
    %72 = arith.divf %70, %71 : vector<34x1xf32>
    %73 = vector.broadcast %65 : vector<34x1xf32> to vector<34x32xf32>
    %74 = arith.subf %21, %73 : vector<34x32xf32>
    %cst_45 = arith.constant 9.99999974E-6 : f32
    %75 = vector.broadcast %cst_45 : f32 to vector<34x1xf32>
    %76 = arith.addf %72, %75 : vector<34x1xf32>
    %77 = math.rsqrt %76 : vector<34x1xf32>
    %78 = vector.broadcast %77 : vector<34x1xf32> to vector<34x32xf32>
    %79 = arith.mulf %74, %78 : vector<34x32xf32>
    %80 = vector.broadcast %59 : vector<1x32xf32> to vector<34x32xf32>
    %81 = arith.mulf %79, %80 : vector<34x32xf32>
    %82 = vector.broadcast %61 : vector<1x32xf32> to vector<34x32xf32>
    %83 = arith.addf %81, %82 : vector<34x32xf32>
    %c0_46 = arith.constant 0 : index
    %c0_47 = arith.constant 0 : index
    %c0_48 = arith.constant 0 : index
    %84 = vector.load %arg12[%c0_46, %c0_47, %c0_48] : memref<2x32x32xbf16, #tpu.memory_space<vmem>>, vector<1x32x32xbf16>
    %85 = vector.shape_cast %84 : vector<1x32x32xbf16> to vector<32x32xbf16>
    %86 = arith.truncf %83 : vector<34x32xf32> to vector<34x32xbf16>
    %cst_49 = arith.constant dense<0.000000e+00> : vector<34x32xf32>
    %87 = tpu.matmul %86, %85, %cst_49 {dimension_numbers = #tpu.dot_dimension_numbers<[1], [0], [0], [1], [0, 0, 1, 1], [], []>} : vector<34x32xbf16>, vector<32x32xbf16>, vector<34x32xf32> -> vector<34x32xf32>
    %c0_50 = arith.constant 0 : index
    %c0_51 = arith.constant 0 : index
    %c0_52 = arith.constant 0 : index
    %88 = vector.load %arg13[%c0_50, %c0_51, %c0_52] : memref<2x1x32xf32, #tpu.memory_space<vmem>>, vector<1x1x32xf32>
    %89 = vector.shape_cast %88 : vector<1x1x32xf32> to vector<1x32xf32>
    %90 = vector.broadcast %89 : vector<1x32xf32> to vector<34x32xf32>
    %91 = arith.addf %87, %90 : vector<34x32xf32>
    %92 = arith.truncf %91 : vector<34x32xf32> to vector<34x32xbf16>
    %93 = arith.truncf %57 : vector<6x32xf32> to vector<6x32xbf16>
    %cst_53 = arith.constant dense<0.000000e+00> : vector<34x6xf32>
    %94 = tpu.matmul %92, %93, %cst_53 {dimension_numbers = #tpu.dot_dimension_numbers<[1], [1], [0], [0], [0, 0, 1, 0], [], []>} : vector<34x32xbf16>, vector<6x32xbf16>, vector<34x6xf32> -> vector<34x6xf32>
    %cst_54 = arith.constant 0.176776692 : f32
    %95 = vector.broadcast %cst_54 : f32 to vector<34x6xf32>
    %96 = arith.mulf %94, %95 : vector<34x6xf32>
    %cst_55 = arith.constant dense<0xFF800000> : vector<34xf32>
    %97 = vector.multi_reduction <maximumf>, %96, %cst_55 [1] : vector<34x6xf32> to vector<34xf32>
    %98 = vector.shape_cast %97 : vector<34xf32> to vector<34x1xf32>
    %99 = vector.broadcast %98 : vector<34x1xf32> to vector<34x6xf32>
    %100 = arith.subf %96, %99 : vector<34x6xf32>
    %101 = math.exp %100 : vector<34x6xf32>
    %c0_56 = arith.constant 0 : index
    %c0_57 = arith.constant 0 : index
    %c0_58 = arith.constant 0 : index
    %102 = vector.load %arg7[%c0_56, %c0_57, %c0_58] : memref<2x1x6xf32, #tpu.memory_space<vmem>>, vector<1x1x6xf32>
    %103 = vector.shape_cast %102 : vector<1x1x6xf32> to vector<1x6xf32>
    %104 = vector.broadcast %103 : vector<1x6xf32> to vector<34x6xf32>
    %105 = arith.mulf %101, %104 : vector<34x6xf32>
    %cst_59 = arith.constant dense<0.000000e+00> : vector<34xf32>
    %106 = vector.multi_reduction <add>, %105, %cst_59 [1] : vector<34x6xf32> to vector<34xf32>
    %107 = vector.shape_cast %106 : vector<34xf32> to vector<34x1xf32>
    %108 = vector.broadcast %107 : vector<34x1xf32> to vector<34x6xf32>
    %109 = arith.divf %105, %108 : vector<34x6xf32>
    %110 = vector.extract_strided_slice %109 {offsets = [0, 0], sizes = [17, 6], strides = [1, 1]} : vector<34x6xf32> to vector<17x6xf32>
    %cst_60 = arith.constant dense<0.000000e+00> : vector<6xf32>
    %111 = vector.multi_reduction <add>, %110, %cst_60 [0] : vector<17x6xf32> to vector<6xf32>
    %112 = vector.shape_cast %111 : vector<6xf32> to vector<1x6xf32>
    %113 = vector.extract_strided_slice %109 {offsets = [17, 0], sizes = [17, 6], strides = [1, 1]} : vector<34x6xf32> to vector<17x6xf32>
    %cst_61 = arith.constant dense<0.000000e+00> : vector<6xf32>
    %114 = vector.multi_reduction <add>, %113, %cst_61 [0] : vector<17x6xf32> to vector<6xf32>
    %115 = vector.shape_cast %114 : vector<6xf32> to vector<1x6xf32>
    %116 = tpu.concatenate %112, %115 in 0 : vector<1x6xf32>, vector<1x6xf32> -> vector<2x6xf32>
    %c0_62 = arith.constant 0 : index
    %c0_63 = arith.constant 0 : index
    %c0_64 = arith.constant 0 : index
    %117 = vector.load %arg17[%c0_62, %c0_63, %c0_64] : memref<2x2x6xf32, #tpu.memory_space<vmem>>, vector<1x2x6xf32>
    %118 = vector.shape_cast %117 : vector<1x2x6xf32> to vector<2x6xf32>
    %119 = vector.shape_cast %116 : vector<2x6xf32> to vector<1x2x6xf32>
    tpu.vector_store %arg17[%c0_62, %c0_63, %c0_64], %119 {strides = array<i32>} : memref<2x2x6xf32, #tpu.memory_space<vmem>>, vector<1x2x6xf32>,
    %c1_65 = arith.constant 1 : index
    %c0_66 = arith.constant 0 : index
    %c0_67 = arith.constant 0 : index
    %120 = vector.load %arg6[%c1_65, %c0_66, %c0_67] : memref<2x6x32xf32, #tpu.memory_space<vmem>>, vector<1x6x32xf32>
    %121 = vector.shape_cast %120 : vector<1x6x32xf32> to vector<6x32xf32>
    %c1_68 = arith.constant 1 : index
    %c0_69 = arith.constant 0 : index
    %c0_70 = arith.constant 0 : index
    %122 = vector.load %arg10[%c1_68, %c0_69, %c0_70] : memref<2x1x32xf32, #tpu.memory_space<vmem>>, vector<1x1x32xf32>
    %123 = vector.shape_cast %122 : vector<1x1x32xf32> to vector<1x32xf32>
    %c1_71 = arith.constant 1 : index
    %c0_72 = arith.constant 0 : index
    %c0_73 = arith.constant 0 : index
    %124 = vector.load %arg11[%c1_71, %c0_72, %c0_73] : memref<2x1x32xf32, #tpu.memory_space<vmem>>, vector<1x1x32xf32>
    %125 = vector.shape_cast %124 : vector<1x1x32xf32> to vector<1x32xf32>
    %cst_74 = arith.constant dense<0.000000e+00> : vector<6xf32>
    %126 = vector.multi_reduction <add>, %121, %cst_74 [1] : vector<6x32xf32> to vector<6xf32>
    %127 = vector.shape_cast %126 : vector<6xf32> to vector<6x1xf32>
    %cst_75 = arith.constant 3.200000e+01 : f32
    %128 = vector.broadcast %cst_75 : f32 to vector<6x1xf32>
    %129 = arith.divf %127, %128 : vector<6x1xf32>
    %130 = vector.broadcast %129 : vector<6x1xf32> to vector<6x32xf32>
    %131 = arith.subf %121, %130 : vector<6x32xf32>
    %132 = arith.mulf %131, %131 : vector<6x32xf32>
    %cst_76 = arith.constant dense<0.000000e+00> : vector<6xf32>
    %133 = vector.multi_reduction <add>, %132, %cst_76 [1] : vector<6x32xf32> to vector<6xf32>
    %134 = vector.shape_cast %133 : vector<6xf32> to vector<6x1xf32>
    %cst_77 = arith.constant 3.200000e+01 : f32
    %135 = vector.broadcast %cst_77 : f32 to vector<6x1xf32>
    %136 = arith.divf %134, %135 : vector<6x1xf32>
    %137 = vector.broadcast %129 : vector<6x1xf32> to vector<6x32xf32>
    %138 = arith.subf %121, %137 : vector<6x32xf32>
    %cst_78 = arith.constant 9.99999974E-6 : f32
    %139 = vector.broadcast %cst_78 : f32 to vector<6x1xf32>
    %140 = arith.addf %136, %139 : vector<6x1xf32>
    %141 = math.rsqrt %140 : vector<6x1xf32>
    %142 = vector.broadcast %141 : vector<6x1xf32> to vector<6x32xf32>
    %143 = arith.mulf %138, %142 : vector<6x32xf32>
    %144 = vector.broadcast %123 : vector<1x32xf32> to vector<6x32xf32>
    %145 = arith.mulf %143, %144 : vector<6x32xf32>
    %146 = vector.broadcast %125 : vector<1x32xf32> to vector<6x32xf32>
    %147 = arith.addf %145, %146 : vector<6x32xf32>
    %c1_79 = arith.constant 1 : index
    %c0_80 = arith.constant 0 : index
    %c0_81 = arith.constant 0 : index
    %148 = vector.load %arg14[%c1_79, %c0_80, %c0_81] : memref<2x32x32xbf16, #tpu.memory_space<vmem>>, vector<1x32x32xbf16>
    %149 = vector.shape_cast %148 : vector<1x32x32xbf16> to vector<32x32xbf16>
    %150 = arith.truncf %147 : vector<6x32xf32> to vector<6x32xbf16>
    %cst_82 = arith.constant dense<0.000000e+00> : vector<6x32xf32>
    %151 = tpu.matmul %150, %149, %cst_82 {dimension_numbers = #tpu.dot_dimension_numbers<[1], [0], [0], [1], [0, 0, 1, 1], [], []>} : vector<6x32xbf16>, vector<32x32xbf16>, vector<6x32xf32> -> vector<6x32xf32>
    %c1_83 = arith.constant 1 : index
    %c0_84 = arith.constant 0 : index
    %c0_85 = arith.constant 0 : index
    %152 = vector.load %arg15[%c1_83, %c0_84, %c0_85] : memref<2x1x32xf32, #tpu.memory_space<vmem>>, vector<1x1x32xf32>
    %153 = vector.shape_cast %152 : vector<1x1x32xf32> to vector<1x32xf32>
    %154 = vector.broadcast %153 : vector<1x32xf32> to vector<6x32xf32>
    %155 = arith.addf %151, %154 : vector<6x32xf32>
    %c1_86 = arith.constant 1 : index
    %c0_87 = arith.constant 0 : index
    %c0_88 = arith.constant 0 : index
    %156 = vector.load %arg8[%c1_86, %c0_87, %c0_88] : memref<2x1x32xf32, #tpu.memory_space<vmem>>, vector<1x1x32xf32>
    %157 = vector.shape_cast %156 : vector<1x1x32xf32> to vector<1x32xf32>
    %c1_89 = arith.constant 1 : index
    %c0_90 = arith.constant 0 : index
    %c0_91 = arith.constant 0 : index
    %158 = vector.load %arg9[%c1_89, %c0_90, %c0_91] : memref<2x1x32xf32, #tpu.memory_space<vmem>>, vector<1x1x32xf32>
    %159 = vector.shape_cast %158 : vector<1x1x32xf32> to vector<1x32xf32>
    %cst_92 = arith.constant dense<0.000000e+00> : vector<34xf32>
    %160 = vector.multi_reduction <add>, %21, %cst_92 [1] : vector<34x32xf32> to vector<34xf32>
    %161 = vector.shape_cast %160 : vector<34xf32> to vector<34x1xf32>
    %cst_93 = arith.constant 3.200000e+01 : f32
    %162 = vector.broadcast %cst_93 : f32 to vector<34x1xf32>
    %163 = arith.divf %161, %162 : vector<34x1xf32>
    %164 = vector.broadcast %163 : vector<34x1xf32> to vector<34x32xf32>
    %165 = arith.subf %21, %164 : vector<34x32xf32>
    %166 = arith.mulf %165, %165 : vector<34x32xf32>
    %cst_94 = arith.constant dense<0.000000e+00> : vector<34xf32>
    %167 = vector.multi_reduction <add>, %166, %cst_94 [1] : vector<34x32xf32> to vector<34xf32>
    %168 = vector.shape_cast %167 : vector<34xf32> to vector<34x1xf32>
    %cst_95 = arith.constant 3.200000e+01 : f32
    %169 = vector.broadcast %cst_95 : f32 to vector<34x1xf32>
    %170 = arith.divf %168, %169 : vector<34x1xf32>
    %171 = vector.broadcast %163 : vector<34x1xf32> to vector<34x32xf32>
    %172 = arith.subf %21, %171 : vector<34x32xf32>
    %cst_96 = arith.constant 9.99999974E-6 : f32
    %173 = vector.broadcast %cst_96 : f32 to vector<34x1xf32>
    %174 = arith.addf %170, %173 : vector<34x1xf32>
    %175 = math.rsqrt %174 : vector<34x1xf32>
    %176 = vector.broadcast %175 : vector<34x1xf32> to vector<34x32xf32>
    %177 = arith.mulf %172, %176 : vector<34x32xf32>
    %178 = vector.broadcast %157 : vector<1x32xf32> to vector<34x32xf32>
    %179 = arith.mulf %177, %178 : vector<34x32xf32>
    %180 = vector.broadcast %159 : vector<1x32xf32> to vector<34x32xf32>
    %181 = arith.addf %179, %180 : vector<34x32xf32>
    %c1_97 = arith.constant 1 : index
    %c0_98 = arith.constant 0 : index
    %c0_99 = arith.constant 0 : index
    %182 = vector.load %arg12[%c1_97, %c0_98, %c0_99] : memref<2x32x32xbf16, #tpu.memory_space<vmem>>, vector<1x32x32xbf16>
    %183 = vector.shape_cast %182 : vector<1x32x32xbf16> to vector<32x32xbf16>
    %184 = arith.truncf %181 : vector<34x32xf32> to vector<34x32xbf16>
    %cst_100 = arith.constant dense<0.000000e+00> : vector<34x32xf32>
    %185 = tpu.matmul %184, %183, %cst_100 {dimension_numbers = #tpu.dot_dimension_numbers<[1], [0], [0], [1], [0, 0, 1, 1], [], []>} : vector<34x32xbf16>, vector<32x32xbf16>, vector<34x32xf32> -> vector<34x32xf32>
    %c1_101 = arith.constant 1 : index
    %c0_102 = arith.constant 0 : index
    %c0_103 = arith.constant 0 : index
    %186 = vector.load %arg13[%c1_101, %c0_102, %c0_103] : memref<2x1x32xf32, #tpu.memory_space<vmem>>, vector<1x1x32xf32>
    %187 = vector.shape_cast %186 : vector<1x1x32xf32> to vector<1x32xf32>
    %188 = vector.broadcast %187 : vector<1x32xf32> to vector<34x32xf32>
    %189 = arith.addf %185, %188 : vector<34x32xf32>
    %190 = arith.truncf %189 : vector<34x32xf32> to vector<34x32xbf16>
    %191 = arith.truncf %155 : vector<6x32xf32> to vector<6x32xbf16>
    %cst_104 = arith.constant dense<0.000000e+00> : vector<34x6xf32>
    %192 = tpu.matmul %190, %191, %cst_104 {dimension_numbers = #tpu.dot_dimension_numbers<[1], [1], [0], [0], [0, 0, 1, 0], [], []>} : vector<34x32xbf16>, vector<6x32xbf16>, vector<34x6xf32> -> vector<34x6xf32>
    %cst_105 = arith.constant 0.176776692 : f32
    %193 = vector.broadcast %cst_105 : f32 to vector<34x6xf32>
    %194 = arith.mulf %192, %193 : vector<34x6xf32>
    %cst_106 = arith.constant dense<0xFF800000> : vector<34xf32>
    %195 = vector.multi_reduction <maximumf>, %194, %cst_106 [1] : vector<34x6xf32> to vector<34xf32>
    %196 = vector.shape_cast %195 : vector<34xf32> to vector<34x1xf32>
    %197 = vector.broadcast %196 : vector<34x1xf32> to vector<34x6xf32>
    %198 = arith.subf %194, %197 : vector<34x6xf32>
    %199 = math.exp %198 : vector<34x6xf32>
    %c1_107 = arith.constant 1 : index
    %c0_108 = arith.constant 0 : index
    %c0_109 = arith.constant 0 : index
    %200 = vector.load %arg7[%c1_107, %c0_108, %c0_109] : memref<2x1x6xf32, #tpu.memory_space<vmem>>, vector<1x1x6xf32>
    %201 = vector.shape_cast %200 : vector<1x1x6xf32> to vector<1x6xf32>
    %202 = vector.broadcast %201 : vector<1x6xf32> to vector<34x6xf32>
    %203 = arith.mulf %199, %202 : vector<34x6xf32>
    %cst_110 = arith.constant dense<0.000000e+00> : vector<34xf32>
    %204 = vector.multi_reduction <add>, %203, %cst_110 [1] : vector<34x6xf32> to vector<34xf32>
    %205 = vector.shape_cast %204 : vector<34xf32> to vector<34x1xf32>
    %206 = vector.broadcast %205 : vector<34x1xf32> to vector<34x6xf32>
    %207 = arith.divf %203, %206 : vector<34x6xf32>
    %208 = vector.extract_strided_slice %207 {offsets = [0, 0], sizes = [17, 6], strides = [1, 1]} : vector<34x6xf32> to vector<17x6xf32>
    %cst_111 = arith.constant dense<0.000000e+00> : vector<6xf32>
    %209 = vector.multi_reduction <add>, %208, %cst_111 [0] : vector<17x6xf32> to vector<6xf32>
    %210 = vector.shape_cast %209 : vector<6xf32> to vector<1x6xf32>
    %211 = vector.extract_strided_slice %207 {offsets = [17, 0], sizes = [17, 6], strides = [1, 1]} : vector<34x6xf32> to vector<17x6xf32>
    %cst_112 = arith.constant dense<0.000000e+00> : vector<6xf32>
    %212 = vector.multi_reduction <add>, %211, %cst_112 [0] : vector<17x6xf32> to vector<6xf32>
    %213 = vector.shape_cast %212 : vector<6xf32> to vector<1x6xf32>
    %214 = tpu.concatenate %210, %213 in 0 : vector<1x6xf32>, vector<1x6xf32> -> vector<2x6xf32>
    %c1_113 = arith.constant 1 : index
    %c0_114 = arith.constant 0 : index
    %c0_115 = arith.constant 0 : index
    %215 = vector.load %arg17[%c1_113, %c0_114, %c0_115] : memref<2x2x6xf32, #tpu.memory_space<vmem>>, vector<1x2x6xf32>
    %216 = vector.shape_cast %215 : vector<1x2x6xf32> to vector<2x6xf32>
    %217 = vector.shape_cast %214 : vector<2x6xf32> to vector<1x2x6xf32>
    tpu.vector_store %arg17[%c1_113, %c0_114, %c0_115], %217 {strides = array<i32>} : memref<2x2x6xf32, #tpu.memory_space<vmem>>, vector<1x2x6xf32>,
    return
  }
  func.func @transform_0(%arg0: i32) -> (i32, i32) {
    %c0_i32 = arith.constant 0 : i32
    %c0_i32_0 = arith.constant 0 : i32
    %c0_i32_1 = arith.constant 0 : i32
    return %c0_i32, %c0_i32_0 : i32, i32
  }
  func.func @transform_1(%arg0: i32) -> (i32, i32) {
    %c0_i32 = arith.constant 0 : i32
    %c0_i32_0 = arith.constant 0 : i32
    %c0_i32_1 = arith.constant 0 : i32
    return %c0_i32, %c0_i32_0 : i32, i32
  }
  func.func @transform_2(%arg0: i32) -> (i32, i32) {
    %c0_i32 = arith.constant 0 : i32
    %c0_i32_0 = arith.constant 0 : i32
    %c0_i32_1 = arith.constant 0 : i32
    return %c0_i32, %c0_i32_0 : i32, i32
  }
  func.func @transform_3(%arg0: i32) -> (i32, i32) {
    %c0_i32 = arith.constant 0 : i32
    %c0_i32_0 = arith.constant 0 : i32
    %c0_i32_1 = arith.constant 0 : i32
    return %c0_i32, %c0_i32_0 : i32, i32
  }
  func.func @transform_4(%arg0: i32) -> (i32, i32) {
    %c0_i32 = arith.constant 0 : i32
    %c0_i32_0 = arith.constant 0 : i32
    %c0_i32_1 = arith.constant 0 : i32
    return %c0_i32, %c0_i32_0 : i32, i32
  }
  func.func @transform_5(%arg0: i32) -> (i32, i32, i32) {
    %c0_i32 = arith.constant 0 : i32
    %c0_i32_0 = arith.constant 0 : i32
    %c0_i32_1 = arith.constant 0 : i32
    %c0_i32_2 = arith.constant 0 : i32
    return %c0_i32, %c0_i32_0, %c0_i32_1 : i32, i32, i32
  }
  func.func @transform_6(%arg0: i32) -> (i32, i32, i32) {
    %c0_i32 = arith.constant 0 : i32
    %c0_i32_0 = arith.constant 0 : i32
    %c0_i32_1 = arith.constant 0 : i32
    %c0_i32_2 = arith.constant 0 : i32
    return %c0_i32, %c0_i32_0, %c0_i32_1 : i32, i32, i32
  }
  func.func @transform_7(%arg0: i32) -> (i32, i32, i32) {
    %c0_i32 = arith.constant 0 : i32
    %c0_i32_0 = arith.constant 0 : i32
    %c0_i32_1 = arith.constant 0 : i32
    %c0_i32_2 = arith.constant 0 : i32
    return %c0_i32, %c0_i32_0, %c0_i32_1 : i32, i32, i32
  }
  func.func @transform_8(%arg0: i32) -> (i32, i32, i32) {
    %c0_i32 = arith.constant 0 : i32
    %c0_i32_0 = arith.constant 0 : i32
    %c0_i32_1 = arith.constant 0 : i32
    %c0_i32_2 = arith.constant 0 : i32
    return %c0_i32, %c0_i32_0, %c0_i32_1 : i32, i32, i32
  }
  func.func @transform_9(%arg0: i32) -> (i32, i32, i32) {
    %c0_i32 = arith.constant 0 : i32
    %c0_i32_0 = arith.constant 0 : i32
    %c0_i32_1 = arith.constant 0 : i32
    %c0_i32_2 = arith.constant 0 : i32
    return %c0_i32, %c0_i32_0, %c0_i32_1 : i32, i32, i32
  }
  func.func @transform_10(%arg0: i32) -> (i32, i32, i32) {
    %c0_i32 = arith.constant 0 : i32
    %c0_i32_0 = arith.constant 0 : i32
    %c0_i32_1 = arith.constant 0 : i32
    %c0_i32_2 = arith.constant 0 : i32
    return %c0_i32, %c0_i32_0, %c0_i32_1 : i32, i32, i32
  }
  func.func @transform_11(%arg0: i32) -> (i32, i32, i32) {
    %c0_i32 = arith.constant 0 : i32
    %c0_i32_0 = arith.constant 0 : i32
    %c0_i32_1 = arith.constant 0 : i32
    %c0_i32_2 = arith.constant 0 : i32
    return %c0_i32, %c0_i32_0, %c0_i32_1 : i32, i32, i32
  }
  func.func @transform_12(%arg0: i32) -> (i32, i32, i32) {
    %c0_i32 = arith.constant 0 : i32
    %c0_i32_0 = arith.constant 0 : i32
    %c0_i32_1 = arith.constant 0 : i32
    %c0_i32_2 = arith.constant 0 : i32
    return %c0_i32, %c0_i32_0, %c0_i32_1 : i32, i32, i32
  }
  func.func @transform_13(%arg0: i32) -> (i32, i32, i32) {
    %c0_i32 = arith.constant 0 : i32
    %c0_i32_0 = arith.constant 0 : i32
    %c0_i32_1 = arith.constant 0 : i32
    %c0_i32_2 = arith.constant 0 : i32
    return %c0_i32, %c0_i32_0, %c0_i32_1 : i32, i32, i32
  }
  func.func @transform_14(%arg0: i32) -> (i32, i32, i32) {
    %c0_i32 = arith.constant 0 : i32
    %c0_i32_0 = arith.constant 0 : i32
    %c0_i32_1 = arith.constant 0 : i32
    %c0_i32_2 = arith.constant 0 : i32
    return %c0_i32, %c0_i32_0, %c0_i32_1 : i32, i32, i32
  }
  func.func @transform_15(%arg0: i32) -> (i32, i32, i32) {
    %c0_i32 = arith.constant 0 : i32
    %c0_i32_0 = arith.constant 0 : i32
    %c0_i32_1 = arith.constant 0 : i32
    %c0_i32_2 = arith.constant 0 : i32
    return %c0_i32, %c0_i32_0, %c0_i32_1 : i32, i32, i32
  }
  func.func @transform_16(%arg0: i32) -> (i32, i32, i32) {
    %c0_i32 = arith.constant 0 : i32
    %c0_i32_0 = arith.constant 0 : i32
    %c0_i32_1 = arith.constant 0 : i32
    %c0_i32_2 = arith.constant 0 : i32
    return %c0_i32, %c0_i32_0, %c0_i32_1 : i32, i32, i32
  }
}

module attributes {stable_mosaic.version = 11 : i64} {
  func.func @_blocks_pooler_kernel(%arg0: i32, %arg1: memref<42x32xf32, #tpu.memory_space<vmem>>, %arg2: memref<42x42xf32, #tpu.memory_space<vmem>>, %arg3: memref<1x1x32xf32, #tpu.memory_space<vmem>>, %arg4: memref<1x1x32xf32, #tpu.memory_space<vmem>>, %arg5: memref<1x2x32x16xbf16, #tpu.memory_space<vmem>>, %arg6: memref<1x2x1x16xf32, #tpu.memory_space<vmem>>, %arg7: memref<1x2x32x16xbf16, #tpu.memory_space<vmem>>, %arg8: memref<1x2x1x16xf32, #tpu.memory_space<vmem>>, %arg9: memref<1x2x32x16xbf16, #tpu.memory_space<vmem>>, %arg10: memref<1x2x1x16xf32, #tpu.memory_space<vmem>>, %arg11: memref<1x2x16x32xbf16, #tpu.memory_space<vmem>>, %arg12: memref<1x1x32xf32, #tpu.memory_space<vmem>>, %arg13: memref<1x1x32xf32, #tpu.memory_space<vmem>>, %arg14: memref<1x1x32xf32, #tpu.memory_space<vmem>>, %arg15: memref<1x32x128xbf16, #tpu.memory_space<vmem>>, %arg16: memref<1x1x128xf32, #tpu.memory_space<vmem>>, %arg17: memref<1x128x32xbf16, #tpu.memory_space<vmem>>, %arg18: memref<1x1x32xf32, #tpu.memory_space<vmem>>, %arg19: memref<1x32xf32, #tpu.memory_space<vmem>>, %arg20: memref<1x32xf32, #tpu.memory_space<vmem>>, %arg21: memref<32x32xbf16, #tpu.memory_space<vmem>>, %arg22: memref<1x32xf32, #tpu.memory_space<vmem>>, %arg23: memref<32x19xbf16, #tpu.memory_space<vmem>>, %arg24: memref<1x19xf32, #tpu.memory_space<vmem>>, %arg25: memref<2x19xf32, #tpu.memory_space<vmem>>, %arg26: memref<42x32xf32, #tpu.memory_space<vmem>>) attributes {dimension_semantics = [#tpu.dimension_semantics<arbitrary>], iteration_bounds = array<i64: 2>, scalar_prefetch = 0 : i64, scratch_operands = 1 : i64, tpu.core_type = #tpu.core_type<tc>, window_params = [{pipeline_mode = #tpu.pipeline_mode<synchronous>, transform_indices = @transform_0, window_bounds = array<i64: 42, 32>}, {pipeline_mode = #tpu.pipeline_mode<synchronous>, transform_indices = @transform_1, window_bounds = array<i64: 42, 42>}, {transform_indices = @transform_2, window_bounds = array<i64: 1, 1, 32>}, {transform_indices = @transform_3, window_bounds = array<i64: 1, 1, 32>}, {transform_indices = @transform_4, window_bounds = array<i64: 1, 2, 32, 16>}, {transform_indices = @transform_5, window_bounds = array<i64: 1, 2, 1, 16>}, {transform_indices = @transform_6, window_bounds = array<i64: 1, 2, 32, 16>}, {transform_indices = @transform_7, window_bounds = array<i64: 1, 2, 1, 16>}, {transform_indices = @transform_8, window_bounds = array<i64: 1, 2, 32, 16>}, {transform_indices = @transform_9, window_bounds = array<i64: 1, 2, 1, 16>}, {transform_indices = @transform_10, window_bounds = array<i64: 1, 2, 16, 32>}, {transform_indices = @transform_11, window_bounds = array<i64: 1, 1, 32>}, {transform_indices = @transform_12, window_bounds = array<i64: 1, 1, 32>}, {transform_indices = @transform_13, window_bounds = array<i64: 1, 1, 32>}, {transform_indices = @transform_14, window_bounds = array<i64: 1, 32, 128>}, {transform_indices = @transform_15, window_bounds = array<i64: 1, 1, 128>}, {transform_indices = @transform_16, window_bounds = array<i64: 1, 128, 32>}, {transform_indices = @transform_17, window_bounds = array<i64: 1, 1, 32>}, {pipeline_mode = #tpu.pipeline_mode<synchronous>, transform_indices = @transform_18, window_bounds = array<i64: 1, 32>}, {pipeline_mode = #tpu.pipeline_mode<synchronous>, transform_indices = @transform_19, window_bounds = array<i64: 1, 32>}, {pipeline_mode = #tpu.pipeline_mode<synchronous>, transform_indices = @transform_20, window_bounds = array<i64: 32, 32>}, {pipeline_mode = #tpu.pipeline_mode<synchronous>, transform_indices = @transform_21, window_bounds = array<i64: 1, 32>}, {pipeline_mode = #tpu.pipeline_mode<synchronous>, transform_indices = @transform_22, window_bounds = array<i64: 32, 19>}, {pipeline_mode = #tpu.pipeline_mode<synchronous>, transform_indices = @transform_23, window_bounds = array<i64: 1, 19>}, {pipeline_mode = #tpu.pipeline_mode<synchronous>, transform_indices = @transform_24, window_bounds = array<i64: 2, 19>}]} {
    %c0_i32 = arith.constant 0 : i32
    %0 = arith.cmpi eq, %arg0, %c0_i32 : i32
    %1 = arith.extui %0 : i1 to i32
    %c0_i32_0 = arith.constant 0 : i32
    %2 = arith.cmpi ne, %1, %c0_i32_0 : i32
    scf.if %2 {
      %c0_123 = arith.constant 0 : index
      %c0_124 = arith.constant 0 : index
      %188 = vector.load %arg1[%c0_123, %c0_124] : memref<42x32xf32, #tpu.memory_space<vmem>>, vector<42x32xf32>
      %c0_125 = arith.constant 0 : index
      %c0_126 = arith.constant 0 : index
      %189 = vector.load %arg26[%c0_125, %c0_126] : memref<42x32xf32, #tpu.memory_space<vmem>>, vector<42x32xf32>
      tpu.vector_store %arg26[%c0_125, %c0_126], %188 {strides = array<i32>} : memref<42x32xf32, #tpu.memory_space<vmem>>, vector<42x32xf32>,
      %cst_127 = arith.constant 0.000000e+00 : f32
      %190 = vector.broadcast %cst_127 : f32 to vector<2x19xf32>
      %c0_128 = arith.constant 0 : index
      %c0_129 = arith.constant 0 : index
      %191 = vector.load %arg25[%c0_128, %c0_129] : memref<2x19xf32, #tpu.memory_space<vmem>>, vector<2x19xf32>
      tpu.vector_store %arg25[%c0_128, %c0_129], %190 {strides = array<i32>} : memref<2x19xf32, #tpu.memory_space<vmem>>, vector<2x19xf32>,
    } else {
    }
    %c0 = arith.constant 0 : index
    %c0_1 = arith.constant 0 : index
    %3 = vector.load %arg26[%c0, %c0_1] : memref<42x32xf32, #tpu.memory_space<vmem>>, vector<42x32xf32>
    %c0_2 = arith.constant 0 : index
    %c0_3 = arith.constant 0 : index
    %c0_4 = arith.constant 0 : index
    %4 = vector.load %arg3[%c0_2, %c0_3, %c0_4] : memref<1x1x32xf32, #tpu.memory_space<vmem>>, vector<1x1x32xf32>
    %5 = vector.shape_cast %4 : vector<1x1x32xf32> to vector<1x32xf32>
    %c0_5 = arith.constant 0 : index
    %c0_6 = arith.constant 0 : index
    %c0_7 = arith.constant 0 : index
    %6 = vector.load %arg4[%c0_5, %c0_6, %c0_7] : memref<1x1x32xf32, #tpu.memory_space<vmem>>, vector<1x1x32xf32>
    %7 = vector.shape_cast %6 : vector<1x1x32xf32> to vector<1x32xf32>
    %cst = arith.constant dense<0.000000e+00> : vector<42xf32>
    %8 = vector.multi_reduction <add>, %3, %cst [1] : vector<42x32xf32> to vector<42xf32>
    %9 = vector.shape_cast %8 : vector<42xf32> to vector<42x1xf32>
    %cst_8 = arith.constant 3.200000e+01 : f32
    %10 = vector.broadcast %cst_8 : f32 to vector<42x1xf32>
    %11 = arith.divf %9, %10 : vector<42x1xf32>
    %12 = vector.broadcast %11 : vector<42x1xf32> to vector<42x32xf32>
    %13 = arith.subf %3, %12 : vector<42x32xf32>
    %14 = arith.mulf %13, %13 : vector<42x32xf32>
    %cst_9 = arith.constant dense<0.000000e+00> : vector<42xf32>
    %15 = vector.multi_reduction <add>, %14, %cst_9 [1] : vector<42x32xf32> to vector<42xf32>
    %16 = vector.shape_cast %15 : vector<42xf32> to vector<42x1xf32>
    %cst_10 = arith.constant 3.200000e+01 : f32
    %17 = vector.broadcast %cst_10 : f32 to vector<42x1xf32>
    %18 = arith.divf %16, %17 : vector<42x1xf32>
    %19 = vector.broadcast %11 : vector<42x1xf32> to vector<42x32xf32>
    %20 = arith.subf %3, %19 : vector<42x32xf32>
    %cst_11 = arith.constant 9.99999997E-7 : f32
    %21 = vector.broadcast %cst_11 : f32 to vector<42x1xf32>
    %22 = arith.addf %18, %21 : vector<42x1xf32>
    %23 = math.rsqrt %22 : vector<42x1xf32>
    %24 = vector.broadcast %23 : vector<42x1xf32> to vector<42x32xf32>
    %25 = arith.mulf %20, %24 : vector<42x32xf32>
    %26 = vector.broadcast %5 : vector<1x32xf32> to vector<42x32xf32>
    %27 = arith.mulf %25, %26 : vector<42x32xf32>
    %28 = vector.broadcast %7 : vector<1x32xf32> to vector<42x32xf32>
    %29 = arith.addf %27, %28 : vector<42x32xf32>
    %30 = arith.truncf %29 : vector<42x32xf32> to vector<42x32xbf16>
    %c0_12 = arith.constant 0 : index
    %c0_13 = arith.constant 0 : index
    %31 = vector.load %arg2[%c0_12, %c0_13] : memref<42x42xf32, #tpu.memory_space<vmem>>, vector<42x42xf32>
    %cst_14 = arith.constant 0.000000e+00 : f32
    %32 = vector.broadcast %cst_14 : f32 to vector<42x32xf32>
    %c0_15 = arith.constant 0 : index
    %c0_16 = arith.constant 0 : index
    %c0_17 = arith.constant 0 : index
    %c0_18 = arith.constant 0 : index
    %33 = vector.load %arg5[%c0_15, %c0_16, %c0_17, %c0_18] : memref<1x2x32x16xbf16, #tpu.memory_space<vmem>>, vector<1x1x32x16xbf16>
    %34 = vector.shape_cast %33 : vector<1x1x32x16xbf16> to vector<32x16xbf16>
    %cst_19 = arith.constant dense<0.000000e+00> : vector<42x16xf32>
    %35 = tpu.matmul %30, %34, %cst_19 {dimension_numbers = #tpu.dot_dimension_numbers<[1], [0], [0], [1], [0, 0, 1, 1], [], []>} : vector<42x32xbf16>, vector<32x16xbf16>, vector<42x16xf32> -> vector<42x16xf32>
    %c0_20 = arith.constant 0 : index
    %c0_21 = arith.constant 0 : index
    %c0_22 = arith.constant 0 : index
    %c0_23 = arith.constant 0 : index
    %36 = vector.load %arg6[%c0_20, %c0_21, %c0_22, %c0_23] : memref<1x2x1x16xf32, #tpu.memory_space<vmem>>, vector<1x1x1x16xf32>
    %37 = vector.shape_cast %36 : vector<1x1x1x16xf32> to vector<1x16xf32>
    %38 = vector.broadcast %37 : vector<1x16xf32> to vector<42x16xf32>
    %39 = arith.addf %35, %38 : vector<42x16xf32>
    %c0_24 = arith.constant 0 : index
    %c0_25 = arith.constant 0 : index
    %c0_26 = arith.constant 0 : index
    %c0_27 = arith.constant 0 : index
    %40 = vector.load %arg7[%c0_24, %c0_25, %c0_26, %c0_27] : memref<1x2x32x16xbf16, #tpu.memory_space<vmem>>, vector<1x1x32x16xbf16>
    %41 = vector.shape_cast %40 : vector<1x1x32x16xbf16> to vector<32x16xbf16>
    %cst_28 = arith.constant dense<0.000000e+00> : vector<42x16xf32>
    %42 = tpu.matmul %30, %41, %cst_28 {dimension_numbers = #tpu.dot_dimension_numbers<[1], [0], [0], [1], [0, 0, 1, 1], [], []>} : vector<42x32xbf16>, vector<32x16xbf16>, vector<42x16xf32> -> vector<42x16xf32>
    %c0_29 = arith.constant 0 : index
    %c0_30 = arith.constant 0 : index
    %c0_31 = arith.constant 0 : index
    %c0_32 = arith.constant 0 : index
    %43 = vector.load %arg8[%c0_29, %c0_30, %c0_31, %c0_32] : memref<1x2x1x16xf32, #tpu.memory_space<vmem>>, vector<1x1x1x16xf32>
    %44 = vector.shape_cast %43 : vector<1x1x1x16xf32> to vector<1x16xf32>
    %45 = vector.broadcast %44 : vector<1x16xf32> to vector<42x16xf32>
    %46 = arith.addf %42, %45 : vector<42x16xf32>
    %c0_33 = arith.constant 0 : index
    %c0_34 = arith.constant 0 : index
    %c0_35 = arith.constant 0 : index
    %c0_36 = arith.constant 0 : index
    %47 = vector.load %arg9[%c0_33, %c0_34, %c0_35, %c0_36] : memref<1x2x32x16xbf16, #tpu.memory_space<vmem>>, vector<1x1x32x16xbf16>
    %48 = vector.shape_cast %47 : vector<1x1x32x16xbf16> to vector<32x16xbf16>
    %cst_37 = arith.constant dense<0.000000e+00> : vector<42x16xf32>
    %49 = tpu.matmul %30, %48, %cst_37 {dimension_numbers = #tpu.dot_dimension_numbers<[1], [0], [0], [1], [0, 0, 1, 1], [], []>} : vector<42x32xbf16>, vector<32x16xbf16>, vector<42x16xf32> -> vector<42x16xf32>
    %c0_38 = arith.constant 0 : index
    %c0_39 = arith.constant 0 : index
    %c0_40 = arith.constant 0 : index
    %c0_41 = arith.constant 0 : index
    %50 = vector.load %arg10[%c0_38, %c0_39, %c0_40, %c0_41] : memref<1x2x1x16xf32, #tpu.memory_space<vmem>>, vector<1x1x1x16xf32>
    %51 = vector.shape_cast %50 : vector<1x1x1x16xf32> to vector<1x16xf32>
    %52 = vector.broadcast %51 : vector<1x16xf32> to vector<42x16xf32>
    %53 = arith.addf %49, %52 : vector<42x16xf32>
    %54 = arith.truncf %39 : vector<42x16xf32> to vector<42x16xbf16>
    %55 = arith.truncf %46 : vector<42x16xf32> to vector<42x16xbf16>
    %cst_42 = arith.constant dense<0.000000e+00> : vector<42x42xf32>
    %56 = tpu.matmul %54, %55, %cst_42 {dimension_numbers = #tpu.dot_dimension_numbers<[1], [1], [0], [0], [0, 0, 1, 0], [], []>} : vector<42x16xbf16>, vector<42x16xbf16>, vector<42x42xf32> -> vector<42x42xf32>
    %cst_43 = arith.constant 2.500000e-01 : f32
    %57 = vector.broadcast %cst_43 : f32 to vector<42x42xf32>
    %58 = arith.mulf %56, %57 : vector<42x42xf32>
    %59 = arith.addf %58, %31 : vector<42x42xf32>
    %cst_44 = arith.constant dense<0xFF800000> : vector<42xf32>
    %60 = vector.multi_reduction <maximumf>, %59, %cst_44 [1] : vector<42x42xf32> to vector<42xf32>
    %61 = vector.shape_cast %60 : vector<42xf32> to vector<42x1xf32>
    %62 = vector.broadcast %61 : vector<42x1xf32> to vector<42x42xf32>
    %63 = arith.subf %59, %62 : vector<42x42xf32>
    %64 = math.exp %63 : vector<42x42xf32>
    %cst_45 = arith.constant dense<0.000000e+00> : vector<42xf32>
    %65 = vector.multi_reduction <add>, %64, %cst_45 [1] : vector<42x42xf32> to vector<42xf32>
    %66 = vector.shape_cast %65 : vector<42xf32> to vector<42x1xf32>
    %67 = tpu.reciprocal %66 {approx = true} : vector<42x1xf32> -> vector<42x1xf32>
    %68 = vector.broadcast %67 : vector<42x1xf32> to vector<42x42xf32>
    %69 = arith.mulf %64, %68 : vector<42x42xf32>
    %70 = arith.truncf %69 : vector<42x42xf32> to vector<42x42xbf16>
    %71 = arith.truncf %53 : vector<42x16xf32> to vector<42x16xbf16>
    %cst_46 = arith.constant dense<0.000000e+00> : vector<42x16xf32>
    %72 = tpu.matmul %70, %71, %cst_46 {dimension_numbers = #tpu.dot_dimension_numbers<[1], [0], [0], [1], [0, 0, 1, 1], [], []>} : vector<42x42xbf16>, vector<42x16xbf16>, vector<42x16xf32> -> vector<42x16xf32>
    %73 = arith.truncf %72 : vector<42x16xf32> to vector<42x16xbf16>
    %c0_47 = arith.constant 0 : index
    %c0_48 = arith.constant 0 : index
    %c0_49 = arith.constant 0 : index
    %c0_50 = arith.constant 0 : index
    %74 = vector.load %arg11[%c0_47, %c0_48, %c0_49, %c0_50] : memref<1x2x16x32xbf16, #tpu.memory_space<vmem>>, vector<1x1x16x32xbf16>
    %75 = vector.shape_cast %74 : vector<1x1x16x32xbf16> to vector<16x32xbf16>
    %cst_51 = arith.constant dense<0.000000e+00> : vector<42x32xf32>
    %76 = tpu.matmul %73, %75, %cst_51 {dimension_numbers = #tpu.dot_dimension_numbers<[1], [0], [0], [1], [0, 0, 1, 1], [], []>} : vector<42x16xbf16>, vector<16x32xbf16>, vector<42x32xf32> -> vector<42x32xf32>
    %77 = arith.addf %32, %76 : vector<42x32xf32>
    %c0_52 = arith.constant 0 : index
    %c1 = arith.constant 1 : index
    %c0_53 = arith.constant 0 : index
    %c0_54 = arith.constant 0 : index
    %78 = vector.load %arg5[%c0_52, %c1, %c0_53, %c0_54] : memref<1x2x32x16xbf16, #tpu.memory_space<vmem>>, vector<1x1x32x16xbf16>
    %79 = vector.shape_cast %78 : vector<1x1x32x16xbf16> to vector<32x16xbf16>
    %cst_55 = arith.constant dense<0.000000e+00> : vector<42x16xf32>
    %80 = tpu.matmul %30, %79, %cst_55 {dimension_numbers = #tpu.dot_dimension_numbers<[1], [0], [0], [1], [0, 0, 1, 1], [], []>} : vector<42x32xbf16>, vector<32x16xbf16>, vector<42x16xf32> -> vector<42x16xf32>
    %c0_56 = arith.constant 0 : index
    %c1_57 = arith.constant 1 : index
    %c0_58 = arith.constant 0 : index
    %c0_59 = arith.constant 0 : index
    %81 = vector.load %arg6[%c0_56, %c1_57, %c0_58, %c0_59] : memref<1x2x1x16xf32, #tpu.memory_space<vmem>>, vector<1x1x1x16xf32>
    %82 = vector.shape_cast %81 : vector<1x1x1x16xf32> to vector<1x16xf32>
    %83 = vector.broadcast %82 : vector<1x16xf32> to vector<42x16xf32>
    %84 = arith.addf %80, %83 : vector<42x16xf32>
    %c0_60 = arith.constant 0 : index
    %c1_61 = arith.constant 1 : index
    %c0_62 = arith.constant 0 : index
    %c0_63 = arith.constant 0 : index
    %85 = vector.load %arg7[%c0_60, %c1_61, %c0_62, %c0_63] : memref<1x2x32x16xbf16, #tpu.memory_space<vmem>>, vector<1x1x32x16xbf16>
    %86 = vector.shape_cast %85 : vector<1x1x32x16xbf16> to vector<32x16xbf16>
    %cst_64 = arith.constant dense<0.000000e+00> : vector<42x16xf32>
    %87 = tpu.matmul %30, %86, %cst_64 {dimension_numbers = #tpu.dot_dimension_numbers<[1], [0], [0], [1], [0, 0, 1, 1], [], []>} : vector<42x32xbf16>, vector<32x16xbf16>, vector<42x16xf32> -> vector<42x16xf32>
    %c0_65 = arith.constant 0 : index
    %c1_66 = arith.constant 1 : index
    %c0_67 = arith.constant 0 : index
    %c0_68 = arith.constant 0 : index
    %88 = vector.load %arg8[%c0_65, %c1_66, %c0_67, %c0_68] : memref<1x2x1x16xf32, #tpu.memory_space<vmem>>, vector<1x1x1x16xf32>
    %89 = vector.shape_cast %88 : vector<1x1x1x16xf32> to vector<1x16xf32>
    %90 = vector.broadcast %89 : vector<1x16xf32> to vector<42x16xf32>
    %91 = arith.addf %87, %90 : vector<42x16xf32>
    %c0_69 = arith.constant 0 : index
    %c1_70 = arith.constant 1 : index
    %c0_71 = arith.constant 0 : index
    %c0_72 = arith.constant 0 : index
    %92 = vector.load %arg9[%c0_69, %c1_70, %c0_71, %c0_72] : memref<1x2x32x16xbf16, #tpu.memory_space<vmem>>, vector<1x1x32x16xbf16>
    %93 = vector.shape_cast %92 : vector<1x1x32x16xbf16> to vector<32x16xbf16>
    %cst_73 = arith.constant dense<0.000000e+00> : vector<42x16xf32>
    %94 = tpu.matmul %30, %93, %cst_73 {dimension_numbers = #tpu.dot_dimension_numbers<[1], [0], [0], [1], [0, 0, 1, 1], [], []>} : vector<42x32xbf16>, vector<32x16xbf16>, vector<42x16xf32> -> vector<42x16xf32>
    %c0_74 = arith.constant 0 : index
    %c1_75 = arith.constant 1 : index
    %c0_76 = arith.constant 0 : index
    %c0_77 = arith.constant 0 : index
    %95 = vector.load %arg10[%c0_74, %c1_75, %c0_76, %c0_77] : memref<1x2x1x16xf32, #tpu.memory_space<vmem>>, vector<1x1x1x16xf32>
    %96 = vector.shape_cast %95 : vector<1x1x1x16xf32> to vector<1x16xf32>
    %97 = vector.broadcast %96 : vector<1x16xf32> to vector<42x16xf32>
    %98 = arith.addf %94, %97 : vector<42x16xf32>
    %99 = arith.truncf %84 : vector<42x16xf32> to vector<42x16xbf16>
    %100 = arith.truncf %91 : vector<42x16xf32> to vector<42x16xbf16>
    %cst_78 = arith.constant dense<0.000000e+00> : vector<42x42xf32>
    %101 = tpu.matmul %99, %100, %cst_78 {dimension_numbers = #tpu.dot_dimension_numbers<[1], [1], [0], [0], [0, 0, 1, 0], [], []>} : vector<42x16xbf16>, vector<42x16xbf16>, vector<42x42xf32> -> vector<42x42xf32>
    %cst_79 = arith.constant 2.500000e-01 : f32
    %102 = vector.broadcast %cst_79 : f32 to vector<42x42xf32>
    %103 = arith.mulf %101, %102 : vector<42x42xf32>
    %104 = arith.addf %103, %31 : vector<42x42xf32>
    %cst_80 = arith.constant dense<0xFF800000> : vector<42xf32>
    %105 = vector.multi_reduction <maximumf>, %104, %cst_80 [1] : vector<42x42xf32> to vector<42xf32>
    %106 = vector.shape_cast %105 : vector<42xf32> to vector<42x1xf32>
    %107 = vector.broadcast %106 : vector<42x1xf32> to vector<42x42xf32>
    %108 = arith.subf %104, %107 : vector<42x42xf32>
    %109 = math.exp %108 : vector<42x42xf32>
    %cst_81 = arith.constant dense<0.000000e+00> : vector<42xf32>
    %110 = vector.multi_reduction <add>, %109, %cst_81 [1] : vector<42x42xf32> to vector<42xf32>
    %111 = vector.shape_cast %110 : vector<42xf32> to vector<42x1xf32>
    %112 = tpu.reciprocal %111 {approx = true} : vector<42x1xf32> -> vector<42x1xf32>
    %113 = vector.broadcast %112 : vector<42x1xf32> to vector<42x42xf32>
    %114 = arith.mulf %109, %113 : vector<42x42xf32>
    %115 = arith.truncf %114 : vector<42x42xf32> to vector<42x42xbf16>
    %116 = arith.truncf %98 : vector<42x16xf32> to vector<42x16xbf16>
    %cst_82 = arith.constant dense<0.000000e+00> : vector<42x16xf32>
    %117 = tpu.matmul %115, %116, %cst_82 {dimension_numbers = #tpu.dot_dimension_numbers<[1], [0], [0], [1], [0, 0, 1, 1], [], []>} : vector<42x42xbf16>, vector<42x16xbf16>, vector<42x16xf32> -> vector<42x16xf32>
    %118 = arith.truncf %117 : vector<42x16xf32> to vector<42x16xbf16>
    %c0_83 = arith.constant 0 : index
    %c1_84 = arith.constant 1 : index
    %c0_85 = arith.constant 0 : index
    %c0_86 = arith.constant 0 : index
    %119 = vector.load %arg11[%c0_83, %c1_84, %c0_85, %c0_86] : memref<1x2x16x32xbf16, #tpu.memory_space<vmem>>, vector<1x1x16x32xbf16>
    %120 = vector.shape_cast %119 : vector<1x1x16x32xbf16> to vector<16x32xbf16>
    %cst_87 = arith.constant dense<0.000000e+00> : vector<42x32xf32>
    %121 = tpu.matmul %118, %120, %cst_87 {dimension_numbers = #tpu.dot_dimension_numbers<[1], [0], [0], [1], [0, 0, 1, 1], [], []>} : vector<42x16xbf16>, vector<16x32xbf16>, vector<42x32xf32> -> vector<42x32xf32>
    %122 = arith.addf %77, %121 : vector<42x32xf32>
    %123 = arith.addf %3, %122 : vector<42x32xf32>
    %c0_88 = arith.constant 0 : index
    %c0_89 = arith.constant 0 : index
    %c0_90 = arith.constant 0 : index
    %124 = vector.load %arg12[%c0_88, %c0_89, %c0_90] : memref<1x1x32xf32, #tpu.memory_space<vmem>>, vector<1x1x32xf32>
    %125 = vector.shape_cast %124 : vector<1x1x32xf32> to vector<1x32xf32>
    %126 = vector.broadcast %125 : vector<1x32xf32> to vector<42x32xf32>
    %127 = arith.addf %123, %126 : vector<42x32xf32>
    %c0_91 = arith.constant 0 : index
    %c0_92 = arith.constant 0 : index
    %c0_93 = arith.constant 0 : index
    %128 = vector.load %arg13[%c0_91, %c0_92, %c0_93] : memref<1x1x32xf32, #tpu.memory_space<vmem>>, vector<1x1x32xf32>
    %129 = vector.shape_cast %128 : vector<1x1x32xf32> to vector<1x32xf32>
    %c0_94 = arith.constant 0 : index
    %c0_95 = arith.constant 0 : index
    %c0_96 = arith.constant 0 : index
    %130 = vector.load %arg14[%c0_94, %c0_95, %c0_96] : memref<1x1x32xf32, #tpu.memory_space<vmem>>, vector<1x1x32xf32>
    %131 = vector.shape_cast %130 : vector<1x1x32xf32> to vector<1x32xf32>
    %cst_97 = arith.constant dense<0.000000e+00> : vector<42xf32>
    %132 = vector.multi_reduction <add>, %127, %cst_97 [1] : vector<42x32xf32> to vector<42xf32>
    %133 = vector.shape_cast %132 : vector<42xf32> to vector<42x1xf32>
    %cst_98 = arith.constant 3.200000e+01 : f32
    %134 = vector.broadcast %cst_98 : f32 to vector<42x1xf32>
    %135 = arith.divf %133, %134 : vector<42x1xf32>
    %136 = vector.broadcast %135 : vector<42x1xf32> to vector<42x32xf32>
    %137 = arith.subf %127, %136 : vector<42x32xf32>
    %138 = arith.mulf %137, %137 : vector<42x32xf32>
    %cst_99 = arith.constant dense<0.000000e+00> : vector<42xf32>
    %139 = vector.multi_reduction <add>, %138, %cst_99 [1] : vector<42x32xf32> to vector<42xf32>
    %140 = vector.shape_cast %139 : vector<42xf32> to vector<42x1xf32>
    %cst_100 = arith.constant 3.200000e+01 : f32
    %141 = vector.broadcast %cst_100 : f32 to vector<42x1xf32>
    %142 = arith.divf %140, %141 : vector<42x1xf32>
    %143 = vector.broadcast %135 : vector<42x1xf32> to vector<42x32xf32>
    %144 = arith.subf %127, %143 : vector<42x32xf32>
    %cst_101 = arith.constant 9.99999997E-7 : f32
    %145 = vector.broadcast %cst_101 : f32 to vector<42x1xf32>
    %146 = arith.addf %142, %145 : vector<42x1xf32>
    %147 = math.rsqrt %146 : vector<42x1xf32>
    %148 = vector.broadcast %147 : vector<42x1xf32> to vector<42x32xf32>
    %149 = arith.mulf %144, %148 : vector<42x32xf32>
    %150 = vector.broadcast %129 : vector<1x32xf32> to vector<42x32xf32>
    %151 = arith.mulf %149, %150 : vector<42x32xf32>
    %152 = vector.broadcast %131 : vector<1x32xf32> to vector<42x32xf32>
    %153 = arith.addf %151, %152 : vector<42x32xf32>
    %c0_102 = arith.constant 0 : index
    %c0_103 = arith.constant 0 : index
    %c0_104 = arith.constant 0 : index
    %154 = vector.load %arg15[%c0_102, %c0_103, %c0_104] : memref<1x32x128xbf16, #tpu.memory_space<vmem>>, vector<1x32x128xbf16>
    %155 = vector.shape_cast %154 : vector<1x32x128xbf16> to vector<32x128xbf16>
    %156 = arith.truncf %153 : vector<42x32xf32> to vector<42x32xbf16>
    %cst_105 = arith.constant dense<0.000000e+00> : vector<42x128xf32>
    %157 = tpu.matmul %156, %155, %cst_105 {dimension_numbers = #tpu.dot_dimension_numbers<[1], [0], [0], [1], [0, 0, 1, 1], [], []>} : vector<42x32xbf16>, vector<32x128xbf16>, vector<42x128xf32> -> vector<42x128xf32>
    %c0_106 = arith.constant 0 : index
    %c0_107 = arith.constant 0 : index
    %c0_108 = arith.constant 0 : index
    %158 = vector.load %arg16[%c0_106, %c0_107, %c0_108] : memref<1x1x128xf32, #tpu.memory_space<vmem>>, vector<1x1x128xf32>
    %159 = vector.shape_cast %158 : vector<1x1x128xf32> to vector<1x128xf32>
    %160 = vector.broadcast %159 : vector<1x128xf32> to vector<42x128xf32>
    %161 = arith.addf %157, %160 : vector<42x128xf32>
    %162 = arith.mulf %161, %161 : vector<42x128xf32>
    %163 = arith.mulf %161, %162 : vector<42x128xf32>
    %cst_109 = arith.constant 4.471500e-02 : f32
    %164 = vector.broadcast %cst_109 : f32 to vector<42x128xf32>
    %165 = arith.mulf %164, %163 : vector<42x128xf32>
    %166 = arith.addf %161, %165 : vector<42x128xf32>
    %cst_110 = arith.constant 0.797884583 : f32
    %167 = vector.broadcast %cst_110 : f32 to vector<42x128xf32>
    %168 = arith.mulf %167, %166 : vector<42x128xf32>
    %169 = math.tanh %168 : vector<42x128xf32>
    %cst_111 = arith.constant 1.000000e+00 : f32
    %170 = vector.broadcast %cst_111 : f32 to vector<42x128xf32>
    %171 = arith.addf %170, %169 : vector<42x128xf32>
    %cst_112 = arith.constant 5.000000e-01 : f32
    %172 = vector.broadcast %cst_112 : f32 to vector<42x128xf32>
    %173 = arith.mulf %172, %171 : vector<42x128xf32>
    %174 = arith.mulf %161, %173 : vector<42x128xf32>
    %c0_113 = arith.constant 0 : index
    %c0_114 = arith.constant 0 : index
    %c0_115 = arith.constant 0 : index
    %175 = vector.load %arg17[%c0_113, %c0_114, %c0_115] : memref<1x128x32xbf16, #tpu.memory_space<vmem>>, vector<1x128x32xbf16>
    %176 = vector.shape_cast %175 : vector<1x128x32xbf16> to vector<128x32xbf16>
    %177 = arith.truncf %174 : vector<42x128xf32> to vector<42x128xbf16>
    %cst_116 = arith.constant dense<0.000000e+00> : vector<42x32xf32>
    %178 = tpu.matmul %177, %176, %cst_116 {dimension_numbers = #tpu.dot_dimension_numbers<[1], [0], [0], [1], [0, 0, 1, 1], [], []>} : vector<42x128xbf16>, vector<128x32xbf16>, vector<42x32xf32> -> vector<42x32xf32>
    %179 = arith.addf %127, %178 : vector<42x32xf32>
    %c0_117 = arith.constant 0 : index
    %c0_118 = arith.constant 0 : index
    %c0_119 = arith.constant 0 : index
    %180 = vector.load %arg18[%c0_117, %c0_118, %c0_119] : memref<1x1x32xf32, #tpu.memory_space<vmem>>, vector<1x1x32xf32>
    %181 = vector.shape_cast %180 : vector<1x1x32xf32> to vector<1x32xf32>
    %182 = vector.broadcast %181 : vector<1x32xf32> to vector<42x32xf32>
    %183 = arith.addf %179, %182 : vector<42x32xf32>
    %c0_120 = arith.constant 0 : index
    %c0_121 = arith.constant 0 : index
    %184 = vector.load %arg26[%c0_120, %c0_121] : memref<42x32xf32, #tpu.memory_space<vmem>>, vector<42x32xf32>
    tpu.vector_store %arg26[%c0_120, %c0_121], %183 {strides = array<i32>} : memref<42x32xf32, #tpu.memory_space<vmem>>, vector<42x32xf32>,
    %c1_i32 = arith.constant 1 : i32
    %185 = arith.cmpi eq, %arg0, %c1_i32 : i32
    %186 = arith.extui %185 : i1 to i32
    %c0_i32_122 = arith.constant 0 : i32
    %187 = arith.cmpi ne, %186, %c0_i32_122 : i32
    scf.if %187 {
      %188 = vector.extract_strided_slice %183 {offsets = [0, 0], sizes = [1, 32], strides = [1, 1]} : vector<42x32xf32> to vector<1x32xf32>
      %189 = vector.extract_strided_slice %183 {offsets = [21, 0], sizes = [1, 32], strides = [1, 1]} : vector<42x32xf32> to vector<1x32xf32>
      %190 = tpu.concatenate %188, %189 in 0 : vector<1x32xf32>, vector<1x32xf32> -> vector<2x32xf32>
      %c0_123 = arith.constant 0 : index
      %c0_124 = arith.constant 0 : index
      %191 = vector.load %arg19[%c0_123, %c0_124] : memref<1x32xf32, #tpu.memory_space<vmem>>, vector<1x32xf32>
      %c0_125 = arith.constant 0 : index
      %c0_126 = arith.constant 0 : index
      %192 = vector.load %arg20[%c0_125, %c0_126] : memref<1x32xf32, #tpu.memory_space<vmem>>, vector<1x32xf32>
      %cst_127 = arith.constant dense<0.000000e+00> : vector<2xf32>
      %193 = vector.multi_reduction <add>, %190, %cst_127 [1] : vector<2x32xf32> to vector<2xf32>
      %194 = vector.shape_cast %193 : vector<2xf32> to vector<2x1xf32>
      %cst_128 = arith.constant 3.200000e+01 : f32
      %195 = vector.broadcast %cst_128 : f32 to vector<2x1xf32>
      %196 = arith.divf %194, %195 : vector<2x1xf32>
      %197 = vector.broadcast %196 : vector<2x1xf32> to vector<2x32xf32>
      %198 = arith.subf %190, %197 : vector<2x32xf32>
      %199 = arith.mulf %198, %198 : vector<2x32xf32>
      %cst_129 = arith.constant dense<0.000000e+00> : vector<2xf32>
      %200 = vector.multi_reduction <add>, %199, %cst_129 [1] : vector<2x32xf32> to vector<2xf32>
      %201 = vector.shape_cast %200 : vector<2xf32> to vector<2x1xf32>
      %cst_130 = arith.constant 3.200000e+01 : f32
      %202 = vector.broadcast %cst_130 : f32 to vector<2x1xf32>
      %203 = arith.divf %201, %202 : vector<2x1xf32>
      %204 = vector.broadcast %196 : vector<2x1xf32> to vector<2x32xf32>
      %205 = arith.subf %190, %204 : vector<2x32xf32>
      %cst_131 = arith.constant 9.99999997E-7 : f32
      %206 = vector.broadcast %cst_131 : f32 to vector<2x1xf32>
      %207 = arith.addf %203, %206 : vector<2x1xf32>
      %208 = math.rsqrt %207 : vector<2x1xf32>
      %209 = vector.broadcast %208 : vector<2x1xf32> to vector<2x32xf32>
      %210 = arith.mulf %205, %209 : vector<2x32xf32>
      %211 = vector.broadcast %191 : vector<1x32xf32> to vector<2x32xf32>
      %212 = arith.mulf %210, %211 : vector<2x32xf32>
      %213 = vector.broadcast %192 : vector<1x32xf32> to vector<2x32xf32>
      %214 = arith.addf %212, %213 : vector<2x32xf32>
      %c0_132 = arith.constant 0 : index
      %c0_133 = arith.constant 0 : index
      %215 = vector.load %arg21[%c0_132, %c0_133] : memref<32x32xbf16, #tpu.memory_space<vmem>>, vector<32x32xbf16>
      %216 = arith.truncf %214 : vector<2x32xf32> to vector<2x32xbf16>
      %cst_134 = arith.constant dense<0.000000e+00> : vector<2x32xf32>
      %217 = tpu.matmul %216, %215, %cst_134 {dimension_numbers = #tpu.dot_dimension_numbers<[1], [0], [0], [1], [0, 0, 1, 1], [], []>} : vector<2x32xbf16>, vector<32x32xbf16>, vector<2x32xf32> -> vector<2x32xf32>
      %c0_135 = arith.constant 0 : index
      %c0_136 = arith.constant 0 : index
      %218 = vector.load %arg22[%c0_135, %c0_136] : memref<1x32xf32, #tpu.memory_space<vmem>>, vector<1x32xf32>
      %219 = vector.broadcast %218 : vector<1x32xf32> to vector<2x32xf32>
      %220 = arith.addf %217, %219 : vector<2x32xf32>
      %221 = math.tanh %220 : vector<2x32xf32>
      %c0_137 = arith.constant 0 : index
      %c0_138 = arith.constant 0 : index
      %222 = vector.load %arg23[%c0_137, %c0_138] : memref<32x19xbf16, #tpu.memory_space<vmem>>, vector<32x19xbf16>
      %223 = arith.truncf %221 : vector<2x32xf32> to vector<2x32xbf16>
      %cst_139 = arith.constant dense<0.000000e+00> : vector<2x19xf32>
      %224 = tpu.matmul %223, %222, %cst_139 {dimension_numbers = #tpu.dot_dimension_numbers<[1], [0], [0], [1], [0, 0, 1, 1], [], []>} : vector<2x32xbf16>, vector<32x19xbf16>, vector<2x19xf32> -> vector<2x19xf32>
      %c0_140 = arith.constant 0 : index
      %c0_141 = arith.constant 0 : index
      %225 = vector.load %arg24[%c0_140, %c0_141] : memref<1x19xf32, #tpu.memory_space<vmem>>, vector<1x19xf32>
      %226 = vector.broadcast %225 : vector<1x19xf32> to vector<2x19xf32>
      %227 = arith.addf %224, %226 : vector<2x19xf32>
      %c0_142 = arith.constant 0 : index
      %c0_143 = arith.constant 0 : index
      %228 = vector.load %arg25[%c0_142, %c0_143] : memref<2x19xf32, #tpu.memory_space<vmem>>, vector<2x19xf32>
      tpu.vector_store %arg25[%c0_142, %c0_143], %227 {strides = array<i32>} : memref<2x19xf32, #tpu.memory_space<vmem>>, vector<2x19xf32>,
    } else {
    }
    return
  }
  func.func @transform_0(%arg0: i32) -> (i32, i32) {
    %c0_i32 = arith.constant 0 : i32
    %c0_i32_0 = arith.constant 0 : i32
    %c0_i32_1 = arith.constant 0 : i32
    return %c0_i32, %c0_i32_0 : i32, i32
  }
  func.func @transform_1(%arg0: i32) -> (i32, i32) {
    %c0_i32 = arith.constant 0 : i32
    %c0_i32_0 = arith.constant 0 : i32
    %c0_i32_1 = arith.constant 0 : i32
    return %c0_i32, %c0_i32_0 : i32, i32
  }
  func.func @transform_2(%arg0: i32) -> (i32, i32, i32) {
    %c0_i32 = arith.constant 0 : i32
    %c0_i32_0 = arith.constant 0 : i32
    %c0_i32_1 = arith.constant 0 : i32
    return %arg0, %c0_i32, %c0_i32_0 : i32, i32, i32
  }
  func.func @transform_3(%arg0: i32) -> (i32, i32, i32) {
    %c0_i32 = arith.constant 0 : i32
    %c0_i32_0 = arith.constant 0 : i32
    %c0_i32_1 = arith.constant 0 : i32
    return %arg0, %c0_i32, %c0_i32_0 : i32, i32, i32
  }
  func.func @transform_4(%arg0: i32) -> (i32, i32, i32, i32) {
    %c0_i32 = arith.constant 0 : i32
    %c0_i32_0 = arith.constant 0 : i32
    %c0_i32_1 = arith.constant 0 : i32
    %c0_i32_2 = arith.constant 0 : i32
    return %arg0, %c0_i32, %c0_i32_0, %c0_i32_1 : i32, i32, i32, i32
  }
  func.func @transform_5(%arg0: i32) -> (i32, i32, i32, i32) {
    %c0_i32 = arith.constant 0 : i32
    %c0_i32_0 = arith.constant 0 : i32
    %c0_i32_1 = arith.constant 0 : i32
    %c0_i32_2 = arith.constant 0 : i32
    return %arg0, %c0_i32, %c0_i32_0, %c0_i32_1 : i32, i32, i32, i32
  }
  func.func @transform_6(%arg0: i32) -> (i32, i32, i32, i32) {
    %c0_i32 = arith.constant 0 : i32
    %c0_i32_0 = arith.constant 0 : i32
    %c0_i32_1 = arith.constant 0 : i32
    %c0_i32_2 = arith.constant 0 : i32
    return %arg0, %c0_i32, %c0_i32_0, %c0_i32_1 : i32, i32, i32, i32
  }
  func.func @transform_7(%arg0: i32) -> (i32, i32, i32, i32) {
    %c0_i32 = arith.constant 0 : i32
    %c0_i32_0 = arith.constant 0 : i32
    %c0_i32_1 = arith.constant 0 : i32
    %c0_i32_2 = arith.constant 0 : i32
    return %arg0, %c0_i32, %c0_i32_0, %c0_i32_1 : i32, i32, i32, i32
  }
  func.func @transform_8(%arg0: i32) -> (i32, i32, i32, i32) {
    %c0_i32 = arith.constant 0 : i32
    %c0_i32_0 = arith.constant 0 : i32
    %c0_i32_1 = arith.constant 0 : i32
    %c0_i32_2 = arith.constant 0 : i32
    return %arg0, %c0_i32, %c0_i32_0, %c0_i32_1 : i32, i32, i32, i32
  }
  func.func @transform_9(%arg0: i32) -> (i32, i32, i32, i32) {
    %c0_i32 = arith.constant 0 : i32
    %c0_i32_0 = arith.constant 0 : i32
    %c0_i32_1 = arith.constant 0 : i32
    %c0_i32_2 = arith.constant 0 : i32
    return %arg0, %c0_i32, %c0_i32_0, %c0_i32_1 : i32, i32, i32, i32
  }
  func.func @transform_10(%arg0: i32) -> (i32, i32, i32, i32) {
    %c0_i32 = arith.constant 0 : i32
    %c0_i32_0 = arith.constant 0 : i32
    %c0_i32_1 = arith.constant 0 : i32
    %c0_i32_2 = arith.constant 0 : i32
    return %arg0, %c0_i32, %c0_i32_0, %c0_i32_1 : i32, i32, i32, i32
  }
  func.func @transform_11(%arg0: i32) -> (i32, i32, i32) {
    %c0_i32 = arith.constant 0 : i32
    %c0_i32_0 = arith.constant 0 : i32
    %c0_i32_1 = arith.constant 0 : i32
    return %arg0, %c0_i32, %c0_i32_0 : i32, i32, i32
  }
  func.func @transform_12(%arg0: i32) -> (i32, i32, i32) {
    %c0_i32 = arith.constant 0 : i32
    %c0_i32_0 = arith.constant 0 : i32
    %c0_i32_1 = arith.constant 0 : i32
    return %arg0, %c0_i32, %c0_i32_0 : i32, i32, i32
  }
  func.func @transform_13(%arg0: i32) -> (i32, i32, i32) {
    %c0_i32 = arith.constant 0 : i32
    %c0_i32_0 = arith.constant 0 : i32
    %c0_i32_1 = arith.constant 0 : i32
    return %arg0, %c0_i32, %c0_i32_0 : i32, i32, i32
  }
  func.func @transform_14(%arg0: i32) -> (i32, i32, i32) {
    %c0_i32 = arith.constant 0 : i32
    %c0_i32_0 = arith.constant 0 : i32
    %c0_i32_1 = arith.constant 0 : i32
    return %arg0, %c0_i32, %c0_i32_0 : i32, i32, i32
  }
  func.func @transform_15(%arg0: i32) -> (i32, i32, i32) {
    %c0_i32 = arith.constant 0 : i32
    %c0_i32_0 = arith.constant 0 : i32
    %c0_i32_1 = arith.constant 0 : i32
    return %arg0, %c0_i32, %c0_i32_0 : i32, i32, i32
  }
  func.func @transform_16(%arg0: i32) -> (i32, i32, i32) {
    %c0_i32 = arith.constant 0 : i32
    %c0_i32_0 = arith.constant 0 : i32
    %c0_i32_1 = arith.constant 0 : i32
    return %arg0, %c0_i32, %c0_i32_0 : i32, i32, i32
  }
  func.func @transform_17(%arg0: i32) -> (i32, i32, i32) {
    %c0_i32 = arith.constant 0 : i32
    %c0_i32_0 = arith.constant 0 : i32
    %c0_i32_1 = arith.constant 0 : i32
    return %arg0, %c0_i32, %c0_i32_0 : i32, i32, i32
  }
  func.func @transform_18(%arg0: i32) -> (i32, i32) {
    %c0_i32 = arith.constant 0 : i32
    %c0_i32_0 = arith.constant 0 : i32
    %c0_i32_1 = arith.constant 0 : i32
    return %c0_i32, %c0_i32_0 : i32, i32
  }
  func.func @transform_19(%arg0: i32) -> (i32, i32) {
    %c0_i32 = arith.constant 0 : i32
    %c0_i32_0 = arith.constant 0 : i32
    %c0_i32_1 = arith.constant 0 : i32
    return %c0_i32, %c0_i32_0 : i32, i32
  }
  func.func @transform_20(%arg0: i32) -> (i32, i32) {
    %c0_i32 = arith.constant 0 : i32
    %c0_i32_0 = arith.constant 0 : i32
    %c0_i32_1 = arith.constant 0 : i32
    return %c0_i32, %c0_i32_0 : i32, i32
  }
  func.func @transform_21(%arg0: i32) -> (i32, i32) {
    %c0_i32 = arith.constant 0 : i32
    %c0_i32_0 = arith.constant 0 : i32
    %c0_i32_1 = arith.constant 0 : i32
    return %c0_i32, %c0_i32_0 : i32, i32
  }
  func.func @transform_22(%arg0: i32) -> (i32, i32) {
    %c0_i32 = arith.constant 0 : i32
    %c0_i32_0 = arith.constant 0 : i32
    %c0_i32_1 = arith.constant 0 : i32
    return %c0_i32, %c0_i32_0 : i32, i32
  }
  func.func @transform_23(%arg0: i32) -> (i32, i32) {
    %c0_i32 = arith.constant 0 : i32
    %c0_i32_0 = arith.constant 0 : i32
    %c0_i32_1 = arith.constant 0 : i32
    return %c0_i32, %c0_i32_0 : i32, i32
  }
  func.func @transform_24(%arg0: i32) -> (i32, i32) {
    %c0_i32 = arith.constant 0 : i32
    %c0_i32_0 = arith.constant 0 : i32
    %c0_i32_1 = arith.constant 0 : i32
    return %c0_i32, %c0_i32_0 : i32, i32
  }
}

</mosaic_0001>

<bundles_post_ra>
// kernel: infer.2
= control target key start
LH: loop header
LB: loop body
LE: loop exit
PB: predicated region body
PF: predicated region fallthrough
CT: control target
= control target key end

     0   :  { %vm199_vm0 = vcmask 259072   ;;  %vm90_vm1 = vcmask 392192   ;;  %vm152_vm2 = vcmask 1040384   ;;  %vm163_vm3 = vcmask 261120   ;;  %s1758_s1 = inlined_call_operand.vmem [shape: bf16[48,32], index: 1, kind: input, shape index: {}]   ;;  %s1759_s0 = inlined_call_operand.vmem [shape: f32[32,48], index: 0, kind: input, shape index: {}]   ;;  %s1760_s5 = inlined_call_operand.vmem [shape: f32[2,6,32], index: 5, kind: input, shape index: {}]   ;;  %s1761_s2 = inlined_call_operand.vmem [shape: f32[1,32], index: 2, kind: input, shape index: {}]   ;;  %s1762_s3 = inlined_call_operand.vmem [shape: f32[1,32], index: 3, kind: input, shape index: {}]   ;;  %s1763_s4 = inlined_call_operand.vmem [shape: f32[17,32], index: 4, kind: input, shape index: {}]   ;;  %s1764_s15 = inlined_call_operand.vmem [shape: f32[2,17,32], index: 15, kind: output, shape index: {0}]   ;;  %s1765_s13 = inlined_call_operand.vmem [shape: bf16[2,32,32], index: 13, kind: input, shape index: {}]   ;;  %s1766_s9 = inlined_call_operand.vmem [shape: f32[2,1,32], index: 9, kind: input, shape index: {}]   ;;  %s1767_s10 = inlined_call_operand.vmem [shape: f32[2,1,32], index: 10, kind: input, shape index: {}]   ;;  %s1768_s11 = inlined_call_operand.vmem [shape: bf16[2,32,32], index: 11, kind: input, shape index: {}]   ;;  %s1769_s7 = inlined_call_operand.vmem [shape: f32[2,1,32], index: 7, kind: input, shape index: {}]   ;;  %s1770_s8 = inlined_call_operand.vmem [shape: f32[2,1,32], index: 8, kind: input, shape index: {}]   ;;  %s1771_s14 = inlined_call_operand.vmem [shape: f32[2,1,32], index: 14, kind: input, shape index: {}]   ;;  %s1772_s12 = inlined_call_operand.vmem [shape: f32[2,1,32], index: 12, kind: input, shape index: {}]   ;;  %s1773_s6 = inlined_call_operand.vmem [shape: f32[2,1,6], index: 6, kind: input, shape index: {}]   ;;  %s1774_s16 = inlined_call_operand.vmem [shape: f32[2,2,6], index: 16, kind: output, shape index: {1}]  }
   0x1   :  { %1776 = sst [smem:[#allocation2_spill]] %s1758_s1  ;;  %v53_v2 = vld [vmem:[%s1759_s0] sm:$0xff]  ;;  %v54_v3 = vld [vmem:[%s1759_s0 + $0x8] sm:$0xff]  ;;  %v55_v8 = vld [vmem:[%s1759_s0 + $0x10] sm:$0xff]  ;;  %vm166_vm4 = vcmask 253952   ;;  %vm309_vm5 = vcmask 254976  }
   0x2   :  { %s1777_s23 = sld [smem:[#allocation2_spill]]  ;;  %v63_v5 = vpack.c.bf16 %v54_v3, %v53_v2  ;;  %v196_v6 = vld [vmem:[%s1760_s5] sm:$0x3f]  ;;  %v56_v9 = vld [vmem:[%s1759_s0 + $0x18] sm:$0xff]  ;;  %v149_v25 = vld [vmem:[%s1763_s4 + $0x10] sm:$0x1] }
   0x3   :  { %v200_v7 = vsel %vm199_vm0, %v196_v6, 0.0  ;;  %v64_v10 = vpack.c.bf16 %v56_v9, %v55_v8  ;;  %v1069_v11 = vld [vmem:[%s1761_s2] ss:$0 sm:$0xff]  ;;  %v148_v31 = vld [vmem:[%s1763_s4 + $0x8] sm:$0xff]  ;;  %v1313_v54 = vmov 0.0   ;;  %vm1314_vm6 = vmmov 0  }
   0x4   :  { %1166 = vmatprep.mubr.msk.bf16.mxu0 %vm90_vm1, %v63_v5  ;;  %201 = vadd.xlane.f32.xlu0 %v200_v7  ;;  %v146_v14 = vld [vmem:[%s1762_s3] sm:$0x1]  ;;  %v1251_v55 = vld [vmem:[%s1765_s13 + $0x8] sm:$0xff]   ;;  %vm553_vm7 = vcmask 48128   ;;  %vm566_vm8 = vcmask 41984   ;;  %vm637_vm9 = vcmask 1046528  }
   0x5   :  { %v147_v19 = vld [vmem:[%s1763_s4] sm:$0xff]  ;;  %1170 = vmatprep.subr.bf16.mxu1 %v1313_v54  ;;  %1174 = vmatprep.mubr.msk.bf16.mxu1 %vm1314_vm6, %v1313_v54  ;;  %vm625_vm10 = vcmask 40960  }
   0x6   :  { %1171 = vmatpush3.bf16.msra.mxu1 %v1251_v55  ;;  %v1252_v56 = vld [vmem:[%s1765_s13] sm:$0xff]  }
   0x7   :  { %1172 = vmatprep.subr.bf16.mxu1 %v1313_v54 }
   0x8   :  { %v1248_v0 = vld [vmem:[%s1777_s23 + $0x10] sm:$0xff]   ;;  %v1249_v1 = vld [vmem:[%s1777_s23 + $0x8] sm:$0xff]   ;;  %v1250_v4 = vld [vmem:[%s1777_s23] sm:$0xff]  }
   0x9   :  { %1160 = vmatprep.subr.bf16.mxu0 %v1248_v0 }
   0xa   :  { %1161 = vmatpush3.bf16.msra.mxu0 %v1248_v0  ;;  %1173 = vmatpush3.bf16.msra.mxu1 %v1252_v56  ;;  %v1084_v56 = vld [vmem:[%s1769_s7] ss:$0 sm:$0xff] }
   0xb   :  { %1162 = vmatprep.subr.bf16.mxu0 %v1249_v1  ;;  %1178 = vmatprep.subr.bf16.mxu1 %v1313_v54 }
   0xe   :  { %1163 = vmatpush3.bf16.msra.mxu0 %v1249_v1 }
   0xf   :  { %1164 = vmatprep.subr.bf16.mxu0 %v1250_v4 }
  0x12   :  { %1165 = vmatpush3.bf16.msra.mxu0 %v1250_v4 }
  0x13   :  { %1194 = vmatprep.subr.bf16.mxu0 %v1313_v54 }
  0x15   :  { %1167 = vmatmul.mubr.msk.bf16.vlgmr.msra.gmra.mxu0 %vm90_vm1, %v64_v10 }
  0x16   :  { %1196 = vmatprep.mubr.msk.bf16.mxu0 %vm1314_vm6, %v1313_v54 }
  0x8d   :  { %v202_v16 = vpop.xlane.xlu0 %201 }
  0x8e   :  { %v204_v24 = vmul.f32 0.03125, %v202_v16  ;;  %v1096_v16 = vld [vmem:[%s1760_s5 + $0x8] sm:$0x3f] }
  0x90   :  { %v1447_v36 = vsub.f32 %v196_v6, %v204_v24  ;;  %v1078_v24 = vld [vmem:[%s1766_s9] ss:$0 sm:$0xff] }
  0x92   :  { %v206_v44 = vmul.f32 %v1447_v36, %v1447_v36 }
  0x94   :  { %v207_v50 = vsel %vm199_vm0, %v206_v44, 0.0 }
  0xd5   :  { %v1168_v12 = vpop.f32.mrf.mxu0 }
  0xd6   :  { %v140_v13 = vadd.f32 %v1168_v12, %v1069_v11 }
  0xd7   :  { %v131_v15 = vpop.f32.mrf.mxu0 }
  0xd8   :  { %v170_v17 = vrot.slane %v140_v13, 7  ;;  %v132_v18 = vadd.f32 %v1069_v11, %v131_v15 }
  0xd9   :  { %v1169_v20 = vpop.f32.mrf.mxu0 }
  0xda   :  { %v176_v21 = vsel %vm152_vm2, %v146_v14, %v170_v17  ;;  %v153_v22 = vrot.slane %v132_v18, 7  ;;  %v143_v23 = vadd.f32 %v1169_v20, %v1069_v11  ;;  %v665_v20 = vsel %vm199_vm0, %v1096_v16, 0.0 }
  0xdb   :  { %v134_v26 = vpop.f32.mrf.mxu0  ;;  %v177_v27 = vadd.f32 %v176_v21, %v147_v19 }
  0xdc   :  { %v159_v28 = vsel %vm152_vm2, %v146_v14, %v153_v22  ;;  %v171_v29 = vrot.slane %v143_v23, 7  ;;  %v135_v30 = vadd.f32 %v1069_v11, %v134_v26  ;;  %v1079_v26 = vld [vmem:[%s1767_s10] ss:$0 sm:$0xff] }
  0xdd   :  { %v160_v32 = vadd.f32 %v159_v28, %v147_v19  ;;  %1075 = vst.msk [vmem:[%s1764_s15 + $0x18] sm:$0xff] %vm163_vm3, %v177_v27  ;;  %v187_v42 = vrot.slane %v177_v27, 7 }
  0xde   :  { %v172_v33 = vsel %vm152_vm2, %v170_v17, %v171_v29  ;;  %v179_v34 = vadd.f32 %v171_v29, %v149_v25  ;;  %v154_v35 = vrot.slane %v135_v30, 7  ;;  %v1253_v30 = vld [vmem:[%s1768_s11 + $0x8] sm:$0xff]  }
  0xdf   :  { %v297_v37 = vsel %vm163_vm3, %v160_v32, 0.0  ;;  %164 = vst.msk [vmem:[%s1764_s15] sm:$0xff] %vm163_vm3, %v160_v32  ;;  %v178_v38 = vadd.f32 %v172_v33, %v148_v31 }
  0xe0   :  { %1077 = vst.msk [vmem:[%s1764_s15 + $0x28] sm:$0x1] %vm166_vm4, %v179_v34  ;;  %v162_v39 = vadd.f32 %v154_v35, %v149_v25  ;;  %298 = vadd.xlane.f32.xlu0 %v297_v37  ;;  %v155_v40 = vsel %vm152_vm2, %v153_v22, %v154_v35  ;;  %v190_v47 = vrot.slane %v179_v34, 7 }
  0xe1   :  { %v161_v41 = vadd.f32 %v155_v40, %v148_v31  ;;  %1076 = vst.msk [vmem:[%s1764_s15 + $0x20] sm:$0xff] %vm163_vm3, %v178_v38  ;;  %v188_v43 = vrot.slane %v178_v38, 7  ;;  %v1254_v31 = vld [vmem:[%s1768_s11] sm:$0xff]  }
  0xe2   :  { %167 = vst.msk [vmem:[%s1764_s15 + $0x10] sm:$0x1] %vm166_vm4, %v162_v39  ;;  %v195_v49 = vsel %vm152_vm2, %v162_v39, %v187_v42 }
  0xe3   :  { %v300_v45 = vsel %vm163_vm3, %v161_v41, 0.0  ;;  %165 = vst.msk [vmem:[%s1764_s15 + $0x8] sm:$0xff] %vm163_vm3, %v161_v41  ;;  %v189_v46 = vsel %vm152_vm2, %v187_v42, %v188_v43  ;;  %v303_v51 = vsel %vm163_vm3, %v195_v49, 0.0  ;;  %v191_v52 = vsel %vm152_vm2, %v188_v43, %v190_v47 }
  0xe4   :  { %301 = vadd.xlane.f32.xlu1 %v300_v45  ;;  %v306_v48 = vsel %vm163_vm3, %v189_v46, 0.0  ;;  %v310_v53 = vsel %vm309_vm5, %v191_v52, 0.0 }
  0xe5   :  { %307 = vadd.xlane.f32.xlu0 %v306_v48 }
  0xe8   :  { %304 = vadd.xlane.f32.xlu1 %v303_v51 }
  0xe9   :  { %208 = vadd.xlane.f32.xlu0 %v207_v50 }
  0xec   :  { %311 = vadd.xlane.f32.xlu1 %v310_v53 }
 0x169   :  { %v299_v57 = vpop.xlane.xlu0 %298 }
 0x16a   :  { %v313_v58 = vmul.f32 0.03125, %v299_v57  ;;  %v1113_v57 = vld [vmem:[%s1770_s8 + $0x1] ss:$0 sm:$0xff] }
 0x16c   :  { %v1495_v59 = vsub.f32 %v160_v32, %v313_v58 }
 0x16d   :  { %v302_v60 = vpop.xlane.xlu1 %301 }
 0x16e   :  { %v314_v61 = vmul.f32 0.03125, %v302_v60  ;;  %v308_v62 = vpop.xlane.xlu0 %307  ;;  %v323_v63 = vmul.f32 %v1495_v59, %v1495_v59 }
 0x16f   :  { %v316_v0 = vmul.f32 0.03125, %v308_v62 }
 0x170   :  { %v1499_v1 = vsub.f32 %v161_v41, %v314_v61  ;;  %v328_v2 = vsel %vm163_vm3, %v323_v63, 0.0 }
 0x171   :  { %v1502_v3 = vsub.f32 %v189_v46, %v316_v0  ;;  %329 = vadd.xlane.f32.xlu1 %v328_v2  ;;  %v305_v4 = vpop.xlane.xlu1 %304 }
 0x172   :  { %v315_v5 = vmul.f32 0.03125, %v305_v4  ;;  %v209_v6 = vpop.xlane.xlu0 %208  ;;  %v324_v7 = vmul.f32 %v1499_v1, %v1499_v1 }
 0x173   :  { %v210_v8 = vmul.f32 0.03125, %v209_v6  ;;  %v326_v11 = vmul.f32 %v1502_v3, %v1502_v3 }
 0x174   :  { %v1506_v9 = vsub.f32 %v195_v49, %v315_v5  ;;  %v331_v10 = vsel %vm163_vm3, %v324_v7, 0.0 }
 0x175   :  { %v211_v12 = vadd.f32 1e-05, %v210_v8  ;;  %332 = vadd.xlane.f32.xlu0 %v331_v10  ;;  %v312_v13 = vpop.xlane.xlu1 %311  ;;  %v337_v18 = vsel %vm163_vm3, %v326_v11, 0.0 }
 0x176   :  { %v317_v14 = vmul.f32 0.03125, %v312_v13  ;;  %v325_v15 = vmul.f32 %v1506_v9, %v1506_v9 }
 0x177   :  { %1259 = vrsqrt.f32 %v211_v12 }
 0x178   :  { %v1516_v17 = vsub.f32 %v191_v52, %v317_v14  ;;  %v334_v19 = vsel %vm163_vm3, %v325_v15, 0.0  ;;  %v1112_v52 = vld [vmem:[%s1769_s7 + $0x1] ss:$0 sm:$0xff] }
 0x179   :  { %338 = vadd.xlane.f32.xlu0 %v337_v18  ;;  %335 = vadd.xlane.f32.xlu1 %v334_v19 }
 0x17a   :  { %v327_v21 = vmul.f32 %v1516_v17, %v1516_v17 }
 0x17c   :  { %v340_v22 = vsel %vm309_vm5, %v327_v21, 0.0 }
 0x17d   :  { %666 = vadd.xlane.f32.xlu0 %v665_v20  ;;  %341 = vadd.xlane.f32.xlu1 %v340_v22 }
 0x184   :  { %v1260_v23 = vpop.eup %1259 }
 0x185   :  { %v213_v25 = vmul.f32 %v1260_v23, %v1447_v36 }
 0x187   :  { %v220_v27 = vmul.f32 %v1078_v24, %v213_v25 }
 0x189   :  { %v227_v28 = vadd.f32 %v1079_v26, %v220_v27 }
 0x18b   :  { %v232_v29 = vpack.c.bf16 %v227_v28, %v227_v28  ;;  %v1255_v28 = vld [vmem:[%s1765_s13 + $0x18] sm:$0xff]  }
 0x18d   :  { %1175 = vmatmul.mubr.msk.bf16.vlgmr.msra.gmra.mxu1 %vm163_vm3, %v232_v29  ;;  %v1256_v29 = vld [vmem:[%s1765_s13 + $0x10] sm:$0xff]  }
 0x18e   :  { %1182 = vmatprep.mubr.msk.bf16.mxu1 %vm1314_vm6, %v1313_v54  ;;  %1179 = vmatpush3.bf16.msra.mxu1 %v1253_v30  ;;  %v1080_v30 = vld [vmem:[%s1771_s14] ss:$0 sm:$0xff] }
 0x18f   :  { %1180 = vmatprep.subr.bf16.mxu1 %v1313_v54 }
 0x192   :  { %1181 = vmatpush3.bf16.msra.mxu1 %v1254_v31 }
 0x193   :  { %1208 = vmatprep.subr.bf16.mxu1 %v1313_v54 }
 0x1fa   :  { %v330_v32 = vpop.xlane.xlu1 %329 }
 0x1fb   :  { %v343_v33 = vmul.f32 0.03125, %v330_v32 }
 0x1fd   :  { %v348_v34 = vadd.f32 1e-05, %v343_v33 }
 0x1fe   :  { %v333_v35 = vpop.xlane.xlu0 %332 }
 0x1ff   :  { %1261 = vrsqrt.f32 %v348_v34  ;;  %v344_v36 = vmul.f32 0.03125, %v333_v35 }
 0x201   :  { %v349_v37 = vadd.f32 1e-05, %v344_v36 }
 0x202   :  { %v339_v38 = vpop.xlane.xlu0 %338  ;;  %v336_v39 = vpop.xlane.xlu1 %335 }
 0x203   :  { %1263 = vrsqrt.f32 %v349_v37  ;;  %v346_v40 = vmul.f32 0.03125, %v339_v38  ;;  %v345_v41 = vmul.f32 0.03125, %v336_v39 }
 0x205   :  { %v351_v42 = vadd.f32 1e-05, %v346_v40  ;;  %v350_v43 = vadd.f32 1e-05, %v345_v41 }
 0x206   :  { %v667_v44 = vpop.xlane.xlu0 %666  ;;  %v342_v45 = vpop.xlane.xlu1 %341 }
 0x207   :  { %1265 = vrsqrt.f32 %v351_v42  ;;  %v668_v46 = vmul.f32 0.03125, %v667_v44  ;;  %v347_v47 = vmul.f32 0.03125, %v342_v45  ;;  %v1099_v42 = vld [vmem:[%s1766_s9 + $0x1] ss:$0 sm:$0xff] }
 0x208   :  { %1267 = vrsqrt.f32 %v350_v43  ;;  %v1100_v44 = vld [vmem:[%s1767_s10 + $0x1] ss:$0 sm:$0xff] }
 0x209   :  { %v1542_v48 = vsub.f32 %v1096_v16, %v668_v46  ;;  %v352_v49 = vadd.f32 1e-05, %v347_v47 }
 0x20b   :  { %1269 = vrsqrt.f32 %v352_v49  ;;  %v670_v50 = vmul.f32 %v1542_v48, %v1542_v48 }
 0x20c   :  { %v1262_v51 = vpop.eup %1261 }
 0x20d   :  { %v358_v53 = vmul.f32 %v1262_v51, %v1495_v59  ;;  %v671_v55 = vsel %vm199_vm0, %v670_v50, 0.0  ;;  %v1085_v59 = vld [vmem:[%s1770_s8] ss:$0 sm:$0xff] }
 0x20e   :  { %672 = vadd.xlane.f32.xlu1 %v671_v55  ;;  %v1086_v50 = vld [vmem:[%s1772_s12] ss:$0 sm:$0xff] }
 0x20f   :  { %v771_v58 = vmul.f32 %v1112_v52, %v358_v53  ;;  %v369_v62 = vmul.f32 %v1084_v56, %v358_v53 }
 0x210   :  { %v1264_v60 = vpop.eup %1263 }
 0x211   :  { %v359_v61 = vmul.f32 %v1264_v60, %v1499_v1  ;;  %v1558_v63 = vadd.f32 %v1113_v57, %v771_v58  ;;  %v380_v6 = vadd.f32 %v1085_v59, %v369_v62 }
 0x213   :  { %v772_v0 = vmul.f32 %v1112_v52, %v359_v61  ;;  %v370_v2 = vmul.f32 %v1084_v56, %v359_v61  ;;  %v1258_v61 = vld [vmem:[%s1768_s11 + $0x10] sm:$0xff]  }
 0x214   :  { %v1266_v4 = vpop.eup %1265 }
 0x215   :  { %v1268_v5 = vpop.eup %1267  ;;  %v381_v7 = vadd.f32 %v1085_v59, %v370_v2  ;;  %v361_v8 = vmul.f32 %v1266_v4, %v1502_v3  ;;  %v1564_v10 = vadd.f32 %v1113_v57, %v772_v0 }
 0x216   :  { %v360_v11 = vmul.f32 %v1268_v5, %v1506_v9 }
 0x217   :  { %v389_v1 = vpack.c.bf16 %v381_v7, %v380_v6  ;;  %v372_v12 = vmul.f32 %v1084_v56, %v361_v8  ;;  %v792_v13 = vpack.c.bf16 %v1564_v10, %v1558_v63  ;;  %v774_v14 = vmul.f32 %v1112_v52, %v361_v8  ;;  %v1106_v63 = vld [vmem:[%s1771_s14 + $0x1] ss:$0 sm:$0xff] }
 0x218   :  { %v1270_v15 = vpop.eup %1269  ;;  %v371_v16 = vmul.f32 %v1084_v56, %v360_v11  ;;  %v773_v18 = vmul.f32 %v1112_v52, %v360_v11 }
 0x219   :  { %1183 = vmatmul.mubr.msk.bf16.vlgmr.msra.gmra.mxu1 %vm163_vm3, %v389_v1  ;;  %v362_v19 = vmul.f32 %v1270_v15, %v1516_v17  ;;  %v1571_v20 = vadd.f32 %v1113_v57, %v774_v14  ;;  %v383_v21 = vadd.f32 %v1085_v59, %v372_v12 }
 0x21a   :  { %1186 = vmatprep.mubr.msk.bf16.mxu1 %vm1314_vm6, %v1313_v54  ;;  %v1575_v3 = vadd.f32 %v1113_v57, %v773_v18  ;;  %v382_v9 = vadd.f32 %v1085_v59, %v371_v16  ;;  %1209 = vmatpush3.bf16.msra.mxu1 %v1255_v28 }
 0x21b   :  { %v775_v22 = vmul.f32 %v1112_v52, %v362_v19  ;;  %v373_v26 = vmul.f32 %v1084_v56, %v362_v19  ;;  %1210 = vmatprep.subr.bf16.mxu1 %v1313_v54  ;;  %v1257_v56 = vld [vmem:[%s1768_s11 + $0x18] sm:$0xff]  }
 0x21c   :  { %v793_v23 = vpack.c.bf16 %v1571_v20, %v1575_v3  ;;  %v390_v25 = vpack.c.bf16 %v383_v21, %v382_v9 }
 0x21d   :  { %v1579_v24 = vadd.f32 %v1113_v57, %v775_v22  ;;  %v384_v17 = vadd.f32 %v1085_v59, %v373_v26 }
 0x21e   :  { %1211 = vmatpush3.bf16.msra.mxu1 %v1256_v29 }
 0x21f   :  { %v391_v27 = vpack.c.bf16 %v384_v17, %v384_v17  ;;  %1232 = vmatprep.subr.bf16.mxu1 %v1313_v54  ;;  %v794_v12 = vpack.c.bf16 %v1579_v24, %v1579_v24 }
 0x221   :  { %1187 = vmatmul.mubr.msk.bf16.gmra.mxu1 %vm163_vm3, %v390_v25 }
 0x222   :  { %1190 = vmatprep.mubr.msk.bf16.mxu1 %vm1314_vm6, %v1313_v54 }
 0x229   :  { %1191 = vmatmul.mubr.msk.bf16.gmra.mxu1 %vm163_vm3, %v391_v27 }
 0x22a   :  { %1212 = vmatprep.mubr.msk.bf16.mxu1 %vm1314_vm6, %v1313_v54 }
 0x24d   :  { %v289_v31 = vpop.f32.mrf.mxu1 }
 0x24e   :  { %v290_v32 = vadd.f32 %v1080_v30, %v289_v31 }
 0x24f   :  { %v1176_v33 = vpop.f32.mrf.mxu1 }
 0x250   :  { %v479_v34 = vpack.c.bf16 %v290_v32, %v290_v32 }
 0x251   :  { %v292_v35 = vpop.f32.mrf.mxu1 }
 0x252   :  { %v490_v36 = vsel %vm163_vm3, %v479_v34, 0 }
 0x253   :  { %v1177_v37 = vpop.f32.mrf.mxu1  ;;  %1195 = vmatpush3.bf16.xpose.msra.mxu0 %v490_v36 }
 0x254   :  { %1216 = vmatprep.subr.bf16.mxu0 %v1313_v54 }
 0x297   :  { %v673_v38 = vpop.xlane.xlu1 %672 }
 0x298   :  { %v674_v39 = vmul.f32 0.03125, %v673_v38 }
 0x29a   :  { %v675_v40 = vadd.f32 1e-05, %v674_v39 }
 0x29c   :  { %1271 = vrsqrt.f32 %v675_v40  ;;  %v1119_v40 = vld [vmem:[%s1772_s12 + $0x1] ss:$0 sm:$0xff] }
 0x2a9   :  { %v1272_v41 = vpop.eup %1271 }
 0x2aa   :  { %v677_v43 = vmul.f32 %v1272_v41, %v1542_v48 }
 0x2ac   :  { %v684_v45 = vmul.f32 %v1099_v42, %v677_v43 }
 0x2ae   :  { %v691_v46 = vadd.f32 %v1100_v44, %v684_v45 }
 0x2b0   :  { %v697_v47 = vpack.c.bf16 %v691_v46, %v691_v46 }
 0x2b2   :  { %1213 = vmatmul.mubr.msk.bf16.vlgmr.msra.gmra.mxu1 %vm163_vm3, %v697_v47 }
 0x2b3   :  { %1234 = vmatprep.mubr.msk.bf16.mxu1 %vm1314_vm6, %v1313_v54 }
 0x2d9   :  { %v454_v49 = vpop.f32.mrf.mxu1 }
 0x2da   :  { %v455_v48 = vadd.f32 %v1086_v50, %v454_v49 }
 0x2db   :  { %v1184_v51 = vpop.f32.mrf.mxu1 }
 0x2dd   :  { %v457_v52 = vpop.f32.mrf.mxu1 }
 0x2de   :  { %v458_v53 = vadd.f32 %v1086_v50, %v457_v52 }
 0x2df   :  { %v1185_v55 = vpop.f32.mrf.mxu1 }
 0x2e0   :  { %v476_v57 = vpack.c.bf16 %v458_v53, %v455_v48 }
 0x2e1   :  { %v462_v58 = vpop.f32.mrf.mxu1 }
 0x2e2   :  { %1197 = vmatmul.mubr.msk.bf16.vlgmr.msra.gmra.mxu0 %vm163_vm3, %v476_v57  ;;  %v463_v59 = vadd.f32 %v1086_v50, %v462_v58 }
 0x2e3   :  { %1217 = vmatpush3.bf16.msra.mxu0 %v1257_v56  ;;  %v1188_v60 = vpop.f32.mrf.mxu1  ;;  %1200 = vmatprep.mubr.msk.bf16.mxu0 %vm1314_vm6, %v1313_v54 }
 0x2e4   :  { %1218 = vmatprep.subr.bf16.mxu0 %v1313_v54 }
 0x2e5   :  { %v465_v62 = vpop.f32.mrf.mxu1 }
 0x2e6   :  { %v466_v0 = vadd.f32 %v1086_v50, %v465_v62 }
 0x2e7   :  { %v1189_v2 = vpop.f32.mrf.mxu1  ;;  %1219 = vmatpush3.bf16.msra.mxu0 %v1258_v61 }
 0x2e8   :  { %v477_v4 = vpack.c.bf16 %v466_v0, %v463_v59 }
 0x2e9   :  { %v470_v5 = vpop.f32.mrf.mxu1 }
 0x2ea   :  { %1201 = vmatmul.mubr.msk.bf16.gmra.mxu0 %vm163_vm3, %v477_v4  ;;  %v471_v7 = vadd.f32 %v1086_v50, %v470_v5 }
 0x2eb   :  { %v1192_v6 = vpop.f32.mrf.mxu1  ;;  %1204 = vmatprep.mubr.msk.bf16.mxu0 %vm1314_vm6, %v1313_v54 }
 0x2ec   :  { %v478_v1 = vpack.c.bf16 %v471_v7, %v471_v7 }
 0x2ed   :  { %v473_v8 = vpop.f32.mrf.mxu1 }
 0x2ef   :  { %v1193_v11 = vpop.f32.mrf.mxu1 }
 0x2f2   :  { %1205 = vmatmul.mubr.msk.bf16.gmra.mxu0 %vm163_vm3, %v478_v1 }
 0x2f3   :  { %1220 = vmatprep.mubr.msk.bf16.mxu0 %vm1314_vm6, %v1313_v54 }
 0x2fa   :  { %1221 = vmatmul.mubr.msk.bf16.vlgmr.msra.gmra.mxu0 %vm163_vm3, %v792_v13 }
 0x2fb   :  { %1224 = vmatprep.mubr.msk.bf16.mxu0 %vm1314_vm6, %v1313_v54 }
 0x302   :  { %1225 = vmatmul.mubr.msk.bf16.gmra.mxu0 %vm163_vm3, %v793_v23 }
 0x303   :  { %1228 = vmatprep.mubr.msk.bf16.mxu0 %vm1314_vm6, %v1313_v54 }
 0x30a   :  { %1229 = vmatmul.mubr.msk.bf16.gmra.mxu0 %vm163_vm3, %v794_v12 }
 0x372   :  { %v755_v10 = vpop.f32.mrf.mxu1 }
 0x373   :  { %v756_v13 = vadd.f32 %v1106_v63, %v755_v10 }
 0x374   :  { %v1214_v14 = vpop.f32.mrf.mxu1 }
 0x375   :  { %v883_v15 = vpack.c.bf16 %v756_v13, %v756_v13 }
 0x376   :  { %v758_v16 = vpop.f32.mrf.mxu1 }
 0x377   :  { %v894_v18 = vsel %vm163_vm3, %v883_v15, 0 }
 0x378   :  { %v1215_v19 = vpop.f32.mrf.mxu1  ;;  %1233 = vmatpush3.bf16.xpose.msra.mxu1 %v894_v18 }
 0x3a2   :  { %v526_v20 = vpop.f32.mrf.mxu0 }
 0x3a3   :  { %v1648_v3 = vmul.f32 0.17677669, %v526_v20 }
 0x3a4   :  { %v1198_v9 = vpop.f32.mrf.mxu0 }
 0x3a5   :  { %v554_v21 = vsel %vm553_vm7, %v1648_v3, -inf }
 0x3a6   :  { %555 = vmax.xlane.f32.xlu0 %v554_v21  ;;  %v529_v22 = vpop.f32.mrf.mxu0 }
 0x3a7   :  { %v1652_v23 = vmul.f32 0.17677669, %v529_v22 }
 0x3a8   :  { %v1199_v24 = vpop.f32.mrf.mxu0 }
 0x3a9   :  { %v557_v25 = vsel %vm553_vm7, %v1652_v23, -inf }
 0x3aa   :  { %558 = vmax.xlane.f32.xlu1 %v557_v25  ;;  %v534_v26 = vpop.f32.mrf.mxu0 }
 0x3ab   :  { %v550_v17 = vmul.f32 0.17677669, %v534_v26 }
 0x3ac   :  { %v1202_v27 = vpop.f32.mrf.mxu0 }
 0x3ad   :  { %v560_v28 = vsel %vm553_vm7, %v550_v17, -inf }
 0x3ae   :  { %561 = vmax.xlane.f32.xlu0 %v560_v28  ;;  %v537_v29 = vpop.f32.mrf.mxu0  ;;  %v1095_v28 = vld [vmem:[%s1773_s6] ss:$0 sm:$0xff] }
 0x3af   :  { %v551_v30 = vmul.f32 0.17677669, %v537_v29 }
 0x3b0   :  { %v1203_v31 = vpop.f32.mrf.mxu0 }
 0x3b1   :  { %v563_v32 = vsel %vm553_vm7, %v551_v30, -inf }
 0x3b2   :  { %564 = vmax.xlane.f32.xlu1 %v563_v32  ;;  %v542_v33 = vpop.f32.mrf.mxu0 }
 0x3b3   :  { %v552_v34 = vmul.f32 0.17677669, %v542_v33 }
 0x3b4   :  { %v1206_v35 = vpop.f32.mrf.mxu0 }
 0x3b5   :  { %v567_v36 = vsel %vm566_vm8, %v552_v34, -inf }
 0x3b6   :  { %568 = vmax.xlane.f32.xlu0 %v567_v36  ;;  %v545_v37 = vpop.f32.mrf.mxu0 }
 0x3b8   :  { %v1207_v38 = vpop.f32.mrf.mxu0 }
 0x3ba   :  { %v858_v39 = vpop.f32.mrf.mxu0 }
 0x3bb   :  { %v859_v43 = vadd.f32 %v1119_v40, %v858_v39 }
 0x3bc   :  { %v1222_v41 = vpop.f32.mrf.mxu0 }
 0x3be   :  { %v861_v42 = vpop.f32.mrf.mxu0 }
 0x3bf   :  { %v862_v44 = vadd.f32 %v1119_v40, %v861_v42 }
 0x3c0   :  { %v1223_v45 = vpop.f32.mrf.mxu0 }
 0x3c1   :  { %v880_v46 = vpack.c.bf16 %v862_v44, %v859_v43 }
 0x3c2   :  { %v866_v47 = vpop.f32.mrf.mxu0 }
 0x3c3   :  { %1235 = vmatmul.mubr.msk.bf16.vlgmr.msra.gmra.mxu1 %vm163_vm3, %v880_v46  ;;  %v867_v51 = vadd.f32 %v1119_v40, %v866_v47 }
 0x3c4   :  { %v1226_v49 = vpop.f32.mrf.mxu0  ;;  %1238 = vmatprep.mubr.msk.bf16.mxu1 %vm1314_vm6, %v1313_v54 }
 0x3c6   :  { %v869_v50 = vpop.f32.mrf.mxu0 }
 0x3c7   :  { %v870_v52 = vadd.f32 %v1119_v40, %v869_v50 }
 0x3c8   :  { %v1227_v48 = vpop.f32.mrf.mxu0 }
 0x3c9   :  { %v881_v53 = vpack.c.bf16 %v870_v52, %v867_v51 }
 0x3ca   :  { %v874_v55 = vpop.f32.mrf.mxu0 }
 0x3cb   :  { %1239 = vmatmul.mubr.msk.bf16.gmra.mxu1 %vm163_vm3, %v881_v53  ;;  %v875_v57 = vadd.f32 %v1119_v40, %v874_v55 }
 0x3cc   :  { %v1230_v56 = vpop.f32.mrf.mxu0  ;;  %1242 = vmatprep.mubr.msk.bf16.mxu1 %vm1314_vm6, %v1313_v54 }
 0x3cd   :  { %v882_v61 = vpack.c.bf16 %v875_v57, %v875_v57 }
 0x3ce   :  { %v877_v58 = vpop.f32.mrf.mxu0 }
 0x3d0   :  { %v1231_v60 = vpop.f32.mrf.mxu0 }
 0x3d3   :  { %1243 = vmatmul.mubr.msk.bf16.gmra.mxu1 %vm163_vm3, %v882_v61 }
 0x42f   :  { %v556_v62 = vpop.xlane.xlu0 %555 }
 0x430   :  { %v570_v1 = vsub.f32 %v1648_v3, %v556_v62 }
 0x432   :  { %v575_v14 = vmul.f32 1.442695, %v570_v1 }
 0x433   :  { %v559_v59 = vpop.xlane.xlu1 %558 }
 0x434   :  { %v571_v63 = vsub.f32 %v1652_v23, %v559_v59 }
 0x436   :  { %v577_v16 = vmul.f32 1.442695, %v571_v63 }
 0x437   :  { %v562_v0 = vpop.xlane.xlu0 %561 }
 0x438   :  { %v572_v2 = vsub.f32 %v550_v17, %v562_v0 }
 0x43a   :  { %v579_v7 = vmul.f32 1.442695, %v572_v2 }
 0x43b   :  { %v565_v4 = vpop.xlane.xlu1 %564 }
 0x43c   :  { %v573_v6 = vsub.f32 %v551_v30, %v565_v4  ;;  %1273 = vpow2.f32 %v579_v7  ;;  %v1129_v7 = vld [vmem:[%s1773_s6 + $0x1] ss:$0 sm:$0xff] }
 0x43e   :  { %v581_v12 = vmul.f32 1.442695, %v573_v6 }
 0x43f   :  { %v569_v5 = vpop.xlane.xlu0 %568 }
 0x440   :  { %v574_v8 = vsub.f32 %v552_v34, %v569_v5  ;;  %1275 = vpow2.f32 %v581_v12 }
 0x442   :  { %v583_v10 = vmul.f32 1.442695, %v574_v8 }
 0x444   :  { %1277 = vpow2.f32 %v583_v10 }
 0x445   :  { %1279 = vpow2.f32 %v575_v14 }
 0x446   :  { %1281 = vpow2.f32 %v577_v16 }
 0x449   :  { %v1274_v25 = vpop.eup %1273 }
 0x44a   :  { %v1678_v33 = vmul.f32 %v1274_v25, %v1095_v28 }
 0x44c   :  { %v603_v38 = vsel %vm553_vm7, %v1678_v33, 0.0 }
 0x44d   :  { %v1276_v29 = vpop.eup %1275 }
 0x44e   :  { %v1685_v41 = vmul.f32 %v1276_v29, %v1095_v28 }
 0x450   :  { %v606_v44 = vsel %vm553_vm7, %v1685_v41, 0.0 }
 0x451   :  { %v1278_v34 = vpop.eup %1277 }
 0x452   :  { %v1280_v37 = vpop.eup %1279  ;;  %v1683_v40 = vmul.f32 %v1278_v34, %v1095_v28 }
 0x453   :  { %v1282_v42 = vpop.eup %1281  ;;  %v1691_v45 = vmul.f32 %v1280_v37, %v1095_v28 }
 0x454   :  { %v609_v43 = vsel %vm566_vm8, %v1683_v40, 0.0  ;;  %v1693_v46 = vmul.f32 %v1282_v42, %v1095_v28 }
 0x455   :  { %v597_v47 = vsel %vm553_vm7, %v1691_v45, 0.0 }
 0x456   :  { %v600_v49 = vsel %vm553_vm7, %v1693_v46, 0.0 }
 0x483   :  { %v930_v11 = vpop.f32.mrf.mxu1 }
 0x484   :  { %v952_v23 = vmul.f32 0.17677669, %v930_v11 }
 0x485   :  { %v1236_v54 = vpop.f32.mrf.mxu1 }
 0x486   :  { %v957_v31 = vsel %vm553_vm7, %v952_v23, -inf }
 0x487   :  { %v933_v13 = vpop.f32.mrf.mxu1 }
 0x488   :  { %v953_v30 = vmul.f32 0.17677669, %v933_v13 }
 0x489   :  { %v1237_v15 = vpop.f32.mrf.mxu1 }
 0x48a   :  { %v960_v39 = vsel %vm553_vm7, %v953_v30, -inf }
 0x48b   :  { %v938_v18 = vpop.f32.mrf.mxu1 }
 0x48c   :  { %v954_v19 = vmul.f32 0.17677669, %v938_v18 }
 0x48d   :  { %v1240_v20 = vpop.f32.mrf.mxu1 }
 0x48e   :  { %v963_v9 = vsel %vm553_vm7, %v954_v19, -inf }
 0x48f   :  { %964 = vmax.xlane.f32.xlu1 %v963_v9  ;;  %v941_v3 = vpop.f32.mrf.mxu1 }
 0x490   :  { %v955_v21 = vmul.f32 0.17677669, %v941_v3 }
 0x491   :  { %v1241_v22 = vpop.f32.mrf.mxu1 }
 0x492   :  { %v966_v24 = vsel %vm553_vm7, %v955_v21, -inf }
 0x493   :  { %967 = vmax.xlane.f32.xlu0 %v966_v24  ;;  %v946_v26 = vpop.f32.mrf.mxu1 }
 0x494   :  { %v956_v17 = vmul.f32 0.17677669, %v946_v26 }
 0x495   :  { %v1244_v27 = vpop.f32.mrf.mxu1 }
 0x496   :  { %v969_v32 = vsel %vm566_vm8, %v956_v17, -inf }
 0x497   :  { %958 = vmax.xlane.f32.xlu0 %v957_v31  ;;  %970 = vmax.xlane.f32.xlu1 %v969_v32  ;;  %v949_v35 = vpop.f32.mrf.mxu1 }
 0x499   :  { %v1245_v36 = vpop.f32.mrf.mxu1 }
 0x49b   :  { %604 = vadd.xlane.f32.xlu0 %v603_v38  ;;  %961 = vmax.xlane.f32.xlu1 %v960_v39 }
 0x49f   :  { %610 = vadd.xlane.f32.xlu0 %v609_v43  ;;  %607 = vadd.xlane.f32.xlu1 %v606_v44 }
 0x4a3   :  { %598 = vadd.xlane.f32.xlu0 %v597_v47  ;;  %601 = vadd.xlane.f32.xlu1 %v600_v49 }
 0x518   :  { %v965_v50 = vpop.xlane.xlu1 %964 }
 0x519   :  { %v974_v51 = vsub.f32 %v954_v19, %v965_v50 }
 0x51b   :  { %v981_v52 = vmul.f32 1.442695, %v974_v51 }
 0x51c   :  { %v968_v48 = vpop.xlane.xlu0 %967 }
 0x51d   :  { %1283 = vpow2.f32 %v981_v52  ;;  %v975_v53 = vsub.f32 %v955_v21, %v968_v48 }
 0x51f   :  { %v983_v55 = vmul.f32 1.442695, %v975_v53 }
 0x520   :  { %v959_v56 = vpop.xlane.xlu0 %958  ;;  %v971_v57 = vpop.xlane.xlu1 %970 }
 0x521   :  { %1285 = vpow2.f32 %v983_v55  ;;  %v972_v58 = vsub.f32 %v952_v23, %v959_v56  ;;  %v976_v60 = vsub.f32 %v956_v17, %v971_v57 }
 0x523   :  { %v977_v61 = vmul.f32 1.442695, %v972_v58  ;;  %v985_v62 = vmul.f32 1.442695, %v976_v60 }
 0x524   :  { %v605_v59 = vpop.xlane.xlu0 %604  ;;  %v962_v0 = vpop.xlane.xlu1 %961 }
 0x525   :  { %1287 = vpow2.f32 %v977_v61  ;;  %v973_v2 = vsub.f32 %v953_v30, %v962_v0 }
 0x526   :  { %1289 = vpow2.f32 %v985_v62 }
 0x527   :  { %1291 = vrcp.f32 %v605_v59  ;;  %v979_v4 = vmul.f32 1.442695, %v973_v2 }
 0x528   :  { %v611_v5 = vpop.xlane.xlu0 %610  ;;  %v608_v6 = vpop.xlane.xlu1 %607 }
 0x529   :  { %1293 = vpow2.f32 %v979_v4 }
 0x52a   :  { %v1284_v8 = vpop.eup %1283  ;;  %1295 = vrcp.f32 %v611_v5 }
 0x52b   :  { %1297 = vrcp.f32 %v608_v6  ;;  %v1702_v11 = vmul.f32 %v1284_v8, %v1129_v7 }
 0x52c   :  { %v599_v1 = vpop.xlane.xlu0 %598  ;;  %v602_v12 = vpop.xlane.xlu1 %601 }
 0x52d   :  { %1299 = vrcp.f32 %v599_v1  ;;  %v1006_v54 = vsel %vm553_vm7, %v1702_v11, 0.0 }
 0x52e   :  { %v1286_v63 = vpop.eup %1285  ;;  %1301 = vrcp.f32 %v602_v12  ;;  %1007 = vadd.xlane.f32.xlu1 %v1006_v54 }
 0x52f   :  { %v1706_v10 = vmul.f32 %v1286_v63, %v1129_v7 }
 0x531   :  { %v1009_v13 = vsel %vm553_vm7, %v1706_v10, 0.0 }
 0x532   :  { %v1288_v14 = vpop.eup %1287  ;;  %1010 = vadd.xlane.f32.xlu0 %v1009_v13 }
 0x533   :  { %v1290_v15 = vpop.eup %1289  ;;  %v1710_v16 = vmul.f32 %v1288_v14, %v1129_v7 }
 0x534   :  { %v1292_v18 = vpop.eup %1291  ;;  %v1712_v19 = vmul.f32 %v1290_v15, %v1129_v7 }
 0x535   :  { %v1000_v20 = vsel %vm553_vm7, %v1710_v16, 0.0  ;;  %v617_v22 = vmul.f32 %v1292_v18, %v1678_v33 }
 0x536   :  { %v1294_v9 = vpop.eup %1293  ;;  %1001 = vadd.xlane.f32.xlu0 %v1000_v20  ;;  %v1012_v3 = vsel %vm566_vm8, %v1712_v19, 0.0 }
 0x537   :  { %v1296_v21 = vpop.eup %1295  ;;  %1013 = vadd.xlane.f32.xlu1 %v1012_v3  ;;  %v1719_v23 = vmul.f32 %v1294_v9, %v1129_v7  ;;  %v638_v30 = vrot.slane %v617_v22, 1  ;;  %v626_v42 = vsel %vm625_vm10, %v617_v22, 0.0 }
 0x538   :  { %v1298_v24 = vpop.eup %1297  ;;  %v621_v25 = vmul.f32 %v1296_v21, %v1683_v40 }
 0x539   :  { %v619_v26 = vmul.f32 %v1298_v24, %v1685_v41  ;;  %v1003_v17 = vsel %vm553_vm7, %v1719_v23, 0.0 }
 0x53a   :  { %v1300_v27 = vpop.eup %1299  ;;  %v641_v28 = vrot.slane %v621_v25, 1 }
 0x53b   :  { %v1302_v29 = vpop.eup %1301  ;;  %v639_v31 = vrot.slane %v619_v26, 1  ;;  %v613_v32 = vmul.f32 %v1300_v27, %v1691_v45  ;;  %1004 = vadd.xlane.f32.xlu1 %v1003_v17 }
 0x53c   :  { %v615_v33 = vmul.f32 %v1302_v29, %v1693_v46  ;;  %v649_v43 = vsel %vm625_vm10, %v641_v28, 0.0 }
 0x53d   :  { %v640_v34 = vsel %vm637_vm9, %v638_v30, %v639_v31  ;;  %v642_v35 = vsel %vm637_vm9, %v639_v31, %v641_v28  ;;  %v622_v36 = vsel %vm553_vm7, %v613_v32, 0.0 }
 0x53e   :  { %v646_v37 = vsel %vm553_vm7, %v640_v34, 0.0  ;;  %v647_v38 = vsel %vm553_vm7, %v642_v35, 0.0  ;;  %v623_v39 = vsel %vm553_vm7, %v615_v33, 0.0 }
 0x53f   :  { %v648_v40 = vadd.f32 %v647_v38, %v646_v37  ;;  %v624_v41 = vadd.f32 %v623_v39, %v622_v36 }
 0x541   :  { %v650_v44 = vadd.f32 %v649_v43, %v648_v40  ;;  %v627_v45 = vadd.f32 %v626_v42, %v624_v41 }
 0x543   :  { %v651_v46 = vrot.slane %v650_v44, 4  ;;  %v628_v47 = vrot.slane %v627_v45, 4 }
 0x545   :  { %v652_v49 = vadd.f32 %v651_v46, %v650_v44  ;;  %v629_v50 = vadd.f32 %v628_v47, %v627_v45 }
 0x547   :  { %v653_v51 = vrot.slane %v652_v49, 2  ;;  %v630_v52 = vrot.slane %v629_v50, 2 }
 0x549   :  { %v654_v48 = vadd.f32 %v653_v51, %v652_v49  ;;  %v631_v53 = vadd.f32 %v630_v52, %v629_v50 }
 0x54b   :  { %v655_v55 = vrot.slane %v654_v48, 1  ;;  %v632_v56 = vrot.slane %v631_v53, 1 }
 0x54d   :  { %v656_v57 = vadd.f32 %v655_v55, %v654_v48  ;;  %v633_v58 = vadd.f32 %v632_v56, %v631_v53 }
 0x54f   :  { %v657_v60 = vsel %vm152_vm2, %v633_v58, %v656_v57 }
 0x550   :  { %658 = vst.msk [vmem:[%s1774_s16] sm:$0x3] %vm566_vm8, %v657_v60 }
 0x5b7   :  { %v1008_v61 = vpop.xlane.xlu1 %1007 }
 0x5b8   :  { %1303 = vrcp.f32 %v1008_v61 }
 0x5bb   :  { %v1011_v62 = vpop.xlane.xlu0 %1010 }
 0x5bc   :  { %1305 = vrcp.f32 %v1011_v62 }
 0x5bf   :  { %v1002_v59 = vpop.xlane.xlu0 %1001 }
 0x5c0   :  { %1307 = vrcp.f32 %v1002_v59  ;;  %v1014_v0 = vpop.xlane.xlu1 %1013 }
 0x5c1   :  { %1309 = vrcp.f32 %v1014_v0 }
 0x5c4   :  { %v1005_v2 = vpop.xlane.xlu1 %1004 }
 0x5c5   :  { %1311 = vrcp.f32 %v1005_v2  ;;  %v1304_v4 = vpop.eup %1303 }
 0x5c6   :  { %v1020_v7 = vmul.f32 %v1304_v4, %v1702_v11 }
 0x5c8   :  { %v1039_v54 = vrot.slane %v1020_v7, 1 }
 0x5c9   :  { %v1306_v5 = vpop.eup %1305 }
 0x5ca   :  { %v1022_v6 = vmul.f32 %v1306_v5, %v1706_v10 }
 0x5cc   :  { %v1040_v1 = vrot.slane %v1022_v6, 1 }
 0x5cd   :  { %v1308_v8 = vpop.eup %1307 }
 0x5ce   :  { %v1310_v12 = vpop.eup %1309  ;;  %v1041_v13 = vsel %vm637_vm9, %v1039_v54, %v1040_v1  ;;  %v1016_v14 = vmul.f32 %v1308_v8, %v1710_v16  ;;  %v1028_v16 = vsel %vm625_vm10, %v1020_v7, 0.0 }
 0x5cf   :  { %v1024_v63 = vmul.f32 %v1310_v12, %v1712_v19  ;;  %v1047_v10 = vsel %vm553_vm7, %v1041_v13, 0.0 }
 0x5d0   :  { %v1025_v3 = vsel %vm553_vm7, %v1016_v14, 0.0 }
 0x5d1   :  { %v1042_v15 = vrot.slane %v1024_v63, 1 }
 0x5d2   :  { %v1312_v18 = vpop.eup %1311 }
 0x5d3   :  { %v1043_v20 = vsel %vm637_vm9, %v1040_v1, %v1042_v15  ;;  %v1018_v9 = vmul.f32 %v1312_v18, %v1719_v23  ;;  %v1050_v19 = vsel %vm625_vm10, %v1042_v15, 0.0 }
 0x5d4   :  { %v1048_v11 = vsel %vm553_vm7, %v1043_v20, 0.0 }
 0x5d5   :  { %v1049_v21 = vadd.f32 %v1048_v11, %v1047_v10  ;;  %v1026_v22 = vsel %vm553_vm7, %v1018_v9, 0.0 }
 0x5d6   :  { %v1027_v24 = vadd.f32 %v1026_v22, %v1025_v3 }
 0x5d7   :  { %v1051_v25 = vadd.f32 %v1050_v19, %v1049_v21 }
 0x5d8   :  { %v1029_v26 = vadd.f32 %v1028_v16, %v1027_v24 }
 0x5d9   :  { %v1052_v17 = vrot.slane %v1051_v25, 4 }
 0x5da   :  { %v1030_v27 = vrot.slane %v1029_v26, 4 }
 0x5db   :  { %v1053_v28 = vadd.f32 %v1052_v17, %v1051_v25 }
 0x5dc   :  { %v1031_v23 = vadd.f32 %v1030_v27, %v1029_v26 }
 0x5dd   :  { %v1054_v29 = vrot.slane %v1053_v28, 2 }
 0x5de   :  { %v1032_v30 = vrot.slane %v1031_v23, 2 }
 0x5df   :  { %v1055_v31 = vadd.f32 %v1054_v29, %v1053_v28 }
 0x5e0   :  { %v1033_v32 = vadd.f32 %v1032_v30, %v1031_v23 }
 0x5e1   :  { %v1056_v33 = vrot.slane %v1055_v31, 1 }
 0x5e2   :  { %v1034_v34 = vrot.slane %v1033_v32, 1 }
 0x5e3   :  { %v1057_v35 = vadd.f32 %v1056_v33, %v1055_v31 }
 0x5e4   :  { %v1035_v36 = vadd.f32 %v1034_v34, %v1033_v32 }
 0x5e6   :  { %v1058_v37 = vsel %vm152_vm2, %v1035_v36, %v1057_v35 }
 0x5e7   :  { %1130 = vst.msk [vmem:[%s1774_s16 + $0x2] sm:$0x3] %vm566_vm8, %v1058_v37 }

// kernel: infer.3
= control target key start
LH: loop header
LB: loop body
LE: loop exit
PB: predicated region body
PF: predicated region fallthrough
CT: control target
= control target key end

     0   :  { %s4419_s0 = inlined_call_operand.vmem [shape: f32[42,32], index: 0, kind: input, shape index: {}]   ;;  %s4420_s1 = inlined_call_operand.vmem [shape: f32[42,42], index: 1, kind: input, shape index: {}]   ;;  %s4421_s2 = inlined_call_operand.vmem [shape: f32[2,1,32], index: 2, kind: input, shape index: {}]   ;;  %s4422_s3 = inlined_call_operand.vmem [shape: f32[2,1,32], index: 3, kind: input, shape index: {}]   ;;  %s4423_s4 = inlined_call_operand.vmem [shape: bf16[2,2,32,16], index: 4, kind: input, shape index: {}]   ;;  %s4424_s5 = inlined_call_operand.vmem [shape: f32[2,2,1,16], index: 5, kind: input, shape index: {}]   ;;  %s4425_s6 = inlined_call_operand.vmem [shape: bf16[2,2,32,16], index: 6, kind: input, shape index: {}]   ;;  %s4426_s7 = inlined_call_operand.vmem [shape: f32[2,2,1,16], index: 7, kind: input, shape index: {}]   ;;  %s4427_s8 = inlined_call_operand.vmem [shape: bf16[2,2,32,16], index: 8, kind: input, shape index: {}]   ;;  %s4428_s9 = inlined_call_operand.vmem [shape: f32[2,2,1,16], index: 9, kind: input, shape index: {}]   ;;  %s4429_s10 = inlined_call_operand.vmem [shape: bf16[2,2,16,32], index: 10, kind: input, shape index: {}]   ;;  %s4430_s11 = inlined_call_operand.vmem [shape: f32[2,1,32], index: 11, kind: input, shape index: {}]   ;;  %s4431_s12 = inlined_call_operand.vmem [shape: f32[2,1,32], index: 12, kind: input, shape index: {}]   ;;  %s4432_s13 = inlined_call_operand.vmem [shape: f32[2,1,32], index: 13, kind: input, shape index: {}]   ;;  %s4433_s14 = inlined_call_operand.vmem [shape: bf16[2,32,128], index: 14, kind: input, shape index: {}]   ;;  %s4434_s15 = inlined_call_operand.vmem [shape: f32[2,1,128], index: 15, kind: input, shape index: {}]   ;;  %s4435_s16 = inlined_call_operand.vmem [shape: bf16[2,128,32], index: 16, kind: input, shape index: {}]   ;;  %s4436_s17 = inlined_call_operand.vmem [shape: f32[2,1,32], index: 17, kind: input, shape index: {}]   ;;  %s4437_s18 = inlined_call_operand.vmem [shape: f32[1,32], index: 18, kind: input, shape index: {}]   ;;  %s4438_s19 = inlined_call_operand.vmem [shape: f32[1,32], index: 19, kind: input, shape index: {}]   ;;  %s4439_s20 = inlined_call_operand.vmem [shape: bf16[32,32], index: 20, kind: input, shape index: {}]   ;;  %s4440_s21 = inlined_call_operand.vmem [shape: f32[1,32], index: 21, kind: input, shape index: {}]   ;;  %s4441_s22 = inlined_call_operand.vmem [shape: bf16[32,19], index: 22, kind: input, shape index: {}]   ;;  %s4442_s23 = inlined_call_operand.vmem [shape: f32[1,19], index: 23, kind: input, shape index: {}]   ;;  %s4443_s24 = inlined_call_operand.vmem [shape: f32[2,19], index: 24, kind: output, shape index: {}]  }
   0x1   :  { %4451 = sst [smem:[#allocation6_spill]] %s4419_s0 }
   0x2   :  { %4452 = sst [smem:[#allocation7_spill]] %s4420_s1 }
   0x3   :  { %4453 = sst [smem:[#allocation8_spill]] %s4421_s2 }
   0x4   :  { %4454 = sst [smem:[#allocation9_spill]] %s4422_s3 }
   0x5   :  { %4455 = sst [smem:[#allocation10_spill]] %s4423_s4 }
   0x6   :  { %4456 = sst [smem:[#allocation11_spill]] %s4424_s5  ;;  %s3762_s5 = smov 0  }
   0x7   :  { %4457 = sst [smem:[#allocation12_spill]] %s4425_s6 }
   0x8   :  { %4458 = sst [smem:[#allocation13_spill]] %s4426_s7 }
   0x9   :  { %4459 = sst [smem:[#allocation14_spill]] %s4427_s8 }
   0xa   :  { %4460 = sst [smem:[#allocation15_spill]] %s4428_s9 }
   0xb   :  { %4461 = sst [smem:[#allocation16_spill]] %s4429_s10 }
   0xc   :  { %4462 = sst [smem:[#allocation17_spill]] %s4437_s18 }
   0xd   :  { %4463 = sst [smem:[#allocation18_spill]] %s4438_s19 }
   0xe   :  { %4464 = sst [smem:[#allocation19_spill]] %s4439_s20 }
   0xf   :  { %4465 = sst [smem:[#allocation20_spill]] %s4440_s21 }
  0x10   :  { %4466 = sst [smem:[#allocation21_spill]] %s4441_s22 }
  0x11   :  { %4467 = sst [smem:[#allocation22_spill]] %s4442_s23 }
  0x12   :  { %4468 = sst [smem:[#allocation23_spill]] %s4443_s24 }
  0x13 LB: > { %4469 = sst [smem:[#allocation3_spill]] %s3630_s5  ;;  %s3768_s26 = sadd.s32 4294967295, %s3630_s5   ;;  %s3630_s5 = sphi %s3762_s5, %s34_s5  }
  0x14   : > { %p3020_p0 = scmp.ge.s32.totalorder %s3630_s5, 1  ;;  %p790_p1 = scmp.lt.s32.totalorder %s3630_s5, 3 }
  0x16   : > { %p791_p2 = pnand %p3020_p0, %p790_p1 }
  0x18   : > { %794 = sbr.rel (%p791_p2) target bundleno = 3793 (0xed1), region = 116 }
  0x1d   : > { %p909_p3 = scmp.lt.s32.totalorder %s3768_s26, 1  ;;  %s4472_s5 = sld [smem:[#allocation10_spill]] }
  0x1e   : > { %s4474_s21 = sld [smem:[#allocation11_spill]]  ;;  %p3036_p4 = scmp.ne.s32.totalorder %s3768_s26, 0 }
  0x1f   : > { %s3774_s27 = scalar_select %p909_p3, %s3768_s26, 1 }
  0x20   : > { %s4476_s19 = sld [smem:[#allocation12_spill]] }
  0x21   : > { %s3143_s25 = sshll.u32 %s3774_s27, 5  ;;  %s3023_s8 = sshll.u32 %s3774_s27, 1 }
  0x22   : > { %s4477_s3 = sld [smem:[#allocation13_spill]]  ;;  %s3146_s23 = sshll.u32 %s3774_s27, 4 }
  0x23   : > { %s3789_s28 = scalar_lea.vmem %s4472_s5, %s3143_s25  ;;  %s4478_s1 = sld [smem:[#allocation14_spill]] }
  0x24   : > { %4473 = sst [smem:[#allocation4_spill]] %s3789_s28  ;;  %s3794_s22 = scalar_lea.vmem %s4474_s21, %s3023_s8 }
  0x25   : > { %4475 = sst [smem:[#allocation5_spill]] %s3794_s22  ;;  %s952_s20 = scalar_lea.vmem %s4431_s12, %s3774_s27 }
  0x26   : > { %s3799_s0 = scalar_lea.vmem %s4476_s19, %s3143_s25  ;;  %s4479_s9 = sld [smem:[#allocation15_spill]] }
  0x27   : > { %s4480_s10 = sld [smem:[#allocation16_spill]]  ;;  %s955_s24 = scalar_lea.vmem %s4432_s13, %s3774_s27 }
  0x28   : > { %s3804_s18 = scalar_lea.vmem %s4477_s3, %s3023_s8  ;;  %s963_s19 = scalar_lea.vmem %s4434_s15, %s3774_s27 }
  0x29   : > { %s3809_s5 = scalar_lea.vmem %s4478_s1, %s3143_s25  ;;  %s3837_s1 = scalar_lea.vmem %s4433_s14, %s3146_s23 }
  0x2a   : > { %s3148_s22 = sshll.u32 %s3774_s27, 6  ;;  %s971_s25 = scalar_lea.vmem %s4436_s17, %s3774_s27 }
  0x2b   : > { %976 = sbr.rel (%p3036_p4) target bundleno = 55 (0x37), region = 120  ;;  %s4482_s29 = sld [smem:[#allocation23_spill]] (!%p3036_p4) }
  0x2c   : > { %s3814_s21 = scalar_lea.vmem %s4479_s9, %s3023_s8  ;;  %s4481_s8 = sld [smem:[#allocation6_spill]] (!%p3036_p4) }
  0x2d   : > { %s3824_s3 = scalar_lea.vmem %s4480_s10, %s3146_s23  ;;  %s3847_s10 = scalar_lea.vmem %s4435_s16, %s3148_s22 }
  0x30   : > { %vm983_vm0 = vcmask 261120   ;;  %vm989_vm1 = vcmask 254976   ;;  %vm991_vm2 = vcmask 148480   ;;  %v3632_v6 = vmov 0.0  }
  0x31   : > { %992 = vst.msk [vmem:[%s4482_s29] sm:$0x3] %vm991_vm2, %v3632_v6 }
  0x32   : > { %v977_v0 = vld [vmem:[%s4481_s8] sm:$0xff]  ;;  %v978_v1 = vld [vmem:[%s4481_s8 + $0x8] sm:$0xff]  ;;  %v979_v2 = vld [vmem:[%s4481_s8 + $0x10] sm:$0xff] }
  0x33   : > { %984 = vst.msk [vmem:[#allocation2] sm:$0xff] %vm983_vm0, %v977_v0  ;;  %985 = vst.msk [vmem:[#allocation2 + $0x8] sm:$0xff] %vm983_vm0, %v978_v1  ;;  %v980_v3 = vld [vmem:[%s4481_s8 + $0x18] sm:$0xff]  ;;  %v981_v4 = vld [vmem:[%s4481_s8 + $0x20] sm:$0xff] }
  0x34   : > { %986 = vst.msk [vmem:[#allocation2 + $0x10] sm:$0xff] %vm983_vm0, %v979_v2  ;;  %v982_v5 = vld [vmem:[%s4481_s8 + $0x28] sm:$0x3]  ;;  %987 = vst.msk [vmem:[#allocation2 + $0x18] sm:$0xff] %vm983_vm0, %v980_v3 }
  0x35   : > { %988 = vst.msk [vmem:[#allocation2 + $0x20] sm:$0xff] %vm983_vm0, %v981_v4 }
  0x36   : > { %990 = vst.msk [vmem:[#allocation2 + $0x28] sm:$0x3] %vm989_vm1, %v982_v5 }
  0x37 PF: > { %vm1001_vm3 = vcmask 261120   ;;  %vm1017_vm4 = vcmask 254976   ;;  %s4483_s9 = sld [smem:[#allocation4_spill]]  ;;  %v3503_v50 = vld [vmem:[%s3799_s0 + $0x8] sm:$0xff]   ;;  %v3633_v51 = vmov 0.0   ;;  %v3505_v53 = vld [vmem:[%s3799_s0] sm:$0xff]  }
  0x38   : > { %3233 = vmatprep.subr.bf16.mxu0 %v3633_v51  ;;  %3249 = vmatprep.subr.bf16.mxu1 %v3633_v51  ;;  %vm3634_vm5 = vmmov 0   ;;  %s4484_s7 = sld [smem:[#allocation8_spill]]  ;;  %vm1370_vm6 = vcmask 130048   ;;  %vm1541_vm7 = vcmask 1044480   ;;  %vm1458_vm8 = vcmask 343040   ;;  %p3130_p5 = scmp.ne.s32.totalorder %s3768_s26, 1 }
  0x39   : > { %3250 = vmatpush3.bf16.msra.mxu1 %v3503_v50  ;;  %3237 = vmatprep.mubr.msk.bf16.mxu0 %vm3634_vm5, %v3633_v51  ;;  %s4486_s28 = sld [smem:[#allocation9_spill]]  ;;  %vm1474_vm9 = vcmask 336896  }
  0x3a   : > { %v993_v7 = vld [vmem:[#allocation2] sm:$0xff]  ;;  %v994_v9 = vld [vmem:[#allocation2 + $0x8] sm:$0xff]  ;;  %3251 = vmatprep.subr.bf16.mxu1 %v3633_v51  ;;  %3253 = vmatprep.mubr.msk.bf16.mxu1 %vm3634_vm5, %v3633_v51  ;;  %s4488_s29 = sld [smem:[#allocation5_spill]] }
  0x3b   : > { %v995_v8 = vld [vmem:[#allocation2 + $0x10] sm:$0xff]  ;;  %v1002_v10 = vsel %vm1001_vm3, %v993_v7, 0.0  ;;  %v996_v12 = vld [vmem:[#allocation2 + $0x18] sm:$0xff]  ;;  %v1005_v14 = vsel %vm1001_vm3, %v994_v9, 0.0  ;;  %s4489_s22 = sld [smem:[#allocation7_spill]] }
  0x3c   : > { %v1008_v11 = vsel %vm1001_vm3, %v995_v8, 0.0  ;;  %v997_v13 = vld [vmem:[#allocation2 + $0x20] sm:$0xff]  ;;  %1003 = vadd.xlane.f32.xlu0 %v1002_v10  ;;  %v1011_v15 = vsel %vm1001_vm3, %v996_v12, 0.0  ;;  %s4493_s2 = sld [smem:[#allocation18_spill]] (!%p3130_p5) }
  0x3d   : > { %1009 = vadd.xlane.f32.xlu1 %v1008_v11  ;;  %v998_v16 = vld [vmem:[#allocation2 + $0x28] sm:$0x3]  ;;  %v1014_v17 = vsel %vm1001_vm3, %v997_v13, 0.0  ;;  %v3504_v52 = vld [vmem:[%s4483_s9] sm:$0xff]   ;;  %3252 = vmatpush3.bf16.msra.mxu1 %v3505_v53  ;;  %s4497_s26 = sld [smem:[#allocation23_spill]] (!%p3130_p5) }
  0x3e   : > { %v1018_v18 = vsel %vm1017_vm4, %v998_v16, 0.0  ;;  %v3502_v49 = vld [vmem:[%s4483_s9 + $0x8] sm:$0xff]   ;;  %3281 = vmatprep.subr.bf16.mxu1 %v3633_v51  ;;  %s4485_s30 = scalar_lea.vmem %s4484_s7, %s3774_s27 }
  0x3f   : > { %3234 = vmatpush3.bf16.msra.mxu0 %v3502_v49  ;;  %v3037_v10 = vld [vmem:[%s4485_s30] ss:$0 sm:$0xff]  ;;  %s4487_s6 = scalar_lea.vmem %s4486_s28, %s3774_s27  ;;  %s4491_s30 = sld [smem:[#allocation19_spill]] (!%p3130_p5) }
  0x40   : > { %1006 = vadd.xlane.f32.xlu0 %v1005_v14  ;;  %3235 = vmatprep.subr.bf16.mxu0 %v3633_v51 }
  0x41   : > { %1012 = vadd.xlane.f32.xlu1 %v1011_v15  ;;  %v3038_v15 = vld [vmem:[%s4487_s6] ss:$0 sm:$0xff]  ;;  %s4492_s6 = sld [smem:[#allocation17_spill]] (!%p3130_p5) }
  0x43   : > { %3236 = vmatpush3.bf16.msra.mxu0 %v3504_v52 }
  0x44   : > { %1015 = vadd.xlane.f32.xlu0 %v1014_v17  ;;  %3265 = vmatprep.subr.bf16.mxu0 %v3633_v51 }
  0x45   : > { %1019 = vadd.xlane.f32.xlu1 %v1018_v18 }
  0xc5   : > { %v1004_v19 = vpop.xlane.xlu0 %1003 }
  0xc6   : > { %v1010_v20 = vpop.xlane.xlu1 %1009  ;;  %v1022_v21 = vmul.f32 0.03125, %v1004_v19 }
  0xc7   : > { %v1024_v22 = vmul.f32 0.03125, %v1010_v20 }
  0xc8   : > { %v3881_v23 = vsub.f32 %v993_v7, %v1022_v21 }
  0xc9   : > { %v3883_v24 = vsub.f32 %v995_v8, %v1024_v22  ;;  %v1007_v25 = vpop.xlane.xlu0 %1006 }
  0xca   : > { %v1013_v26 = vpop.xlane.xlu1 %1012  ;;  %v1023_v27 = vmul.f32 0.03125, %v1007_v25  ;;  %v1034_v29 = vmul.f32 %v3881_v23, %v3881_v23  ;;  %v3506_v25 = vld [vmem:[%s3809_s5 + $0x8] sm:$0xff]  }
  0xcb   : > { %v1025_v28 = vmul.f32 0.03125, %v1013_v26  ;;  %v1036_v30 = vmul.f32 %v3883_v24, %v3883_v24 }
  0xcc   : > { %v3889_v31 = vsub.f32 %v994_v9, %v1023_v27  ;;  %v1040_v33 = vsel %vm1001_vm3, %v1034_v29, 0.0 }
  0xcd   : > { %v3891_v32 = vsub.f32 %v996_v12, %v1025_v28  ;;  %1041 = vadd.xlane.f32.xlu0 %v1040_v33  ;;  %v1016_v34 = vpop.xlane.xlu0 %1015  ;;  %v1046_v36 = vsel %vm1001_vm3, %v1036_v30, 0.0  ;;  %v3507_v30 = vld [vmem:[%s3809_s5] sm:$0xff]  }
  0xce   : > { %v1020_v35 = vpop.xlane.xlu1 %1019  ;;  %v1026_v37 = vmul.f32 0.03125, %v1016_v34  ;;  %v1035_v39 = vmul.f32 %v3889_v31, %v3889_v31 }
  0xcf   : > { %v1027_v38 = vmul.f32 0.03125, %v1020_v35  ;;  %v1037_v40 = vmul.f32 %v3891_v32, %v3891_v32 }
  0xd0   : > { %v3899_v41 = vsub.f32 %v997_v13, %v1026_v37  ;;  %v1043_v43 = vsel %vm1001_vm3, %v1035_v39, 0.0 }
  0xd1   : > { %v3901_v42 = vsub.f32 %v998_v16, %v1027_v38  ;;  %1047 = vadd.xlane.f32.xlu0 %v1046_v36  ;;  %1044 = vadd.xlane.f32.xlu1 %v1043_v43  ;;  %v1049_v44 = vsel %vm1001_vm3, %v1037_v40, 0.0 }
  0xd2   : > { %v1038_v45 = vmul.f32 %v3899_v41, %v3899_v41 }
  0xd3   : > { %v1039_v46 = vmul.f32 %v3901_v42, %v3901_v42 }
  0xd4   : > { %v1052_v47 = vsel %vm1001_vm3, %v1038_v45, 0.0 }
  0xd5   : > { %1050 = vadd.xlane.f32.xlu1 %v1049_v44  ;;  %1053 = vadd.xlane.f32.xlu0 %v1052_v47  ;;  %v1055_v48 = vsel %vm1017_vm4, %v1039_v46, 0.0 }
  0xd9   : > { %1056 = vadd.xlane.f32.xlu1 %v1055_v48 }
 0x156   : > { %v1042_v54 = vpop.xlane.xlu0 %1041 }
 0x157   : > { %v1058_v55 = vmul.f32 0.03125, %v1042_v54 }
 0x159   : > { %v1064_v56 = vadd.f32 1e-06, %v1058_v55 }
 0x15a   : > { %v1045_v57 = vpop.xlane.xlu1 %1044  ;;  %v1048_v58 = vpop.xlane.xlu0 %1047 }
 0x15b   : > { %3526 = vrsqrt.f32 %v1064_v56  ;;  %v1059_v59 = vmul.f32 0.03125, %v1045_v57  ;;  %v1060_v60 = vmul.f32 0.03125, %v1048_v58 }
 0x15d   : > { %v1065_v61 = vadd.f32 1e-06, %v1059_v59  ;;  %v1066_v62 = vadd.f32 1e-06, %v1060_v60  ;;  %v3045_v60 = vld [vmem:[%s3804_s18] ss:$0 sm:$0xff] }
 0x15e   : > { %v1051_v63 = vpop.xlane.xlu1 %1050  ;;  %v1054_v0 = vpop.xlane.xlu0 %1053 }
 0x15f   : > { %3528 = vrsqrt.f32 %v1065_v61  ;;  %v1061_v1 = vmul.f32 0.03125, %v1051_v63  ;;  %v1062_v3 = vmul.f32 0.03125, %v1054_v0 }
 0x160   : > { %3530 = vrsqrt.f32 %v1066_v62 }
 0x161   : > { %v1067_v2 = vadd.f32 1e-06, %v1061_v1  ;;  %v1068_v6 = vadd.f32 1e-06, %v1062_v3 }
 0x162   : > { %v1057_v4 = vpop.xlane.xlu1 %1056 }
 0x163   : > { %3532 = vrsqrt.f32 %v1067_v2  ;;  %v1063_v5 = vmul.f32 0.03125, %v1057_v4 }
 0x165   : > { %v1069_v7 = vadd.f32 1e-06, %v1063_v5 }
 0x167   : > { %3534 = vrsqrt.f32 %v1069_v7 }
 0x168   : > { %v3527_v8 = vpop.eup %3526  ;;  %3536 = vrsqrt.f32 %v1068_v6 }
 0x169   : > { %v1076_v9 = vmul.f32 %v3527_v8, %v3881_v23 }
 0x16b   : > { %v1088_v12 = vmul.f32 %v3037_v10, %v1076_v9 }
 0x16c   : > { %v3529_v11 = vpop.eup %3528 }
 0x16d   : > { %v1077_v13 = vmul.f32 %v3529_v11, %v3889_v31  ;;  %v3531_v14 = vpop.eup %3530  ;;  %v1100_v20 = vadd.f32 %v3038_v15, %v1088_v12 }
 0x16e   : > { %v1078_v18 = vmul.f32 %v3531_v14, %v3883_v24 }
 0x16f   : > { %v1089_v16 = vmul.f32 %v3037_v10, %v1077_v13 }
 0x170   : > { %v3533_v17 = vpop.eup %3532  ;;  %v1090_v27 = vmul.f32 %v3037_v10, %v1078_v18 }
 0x171   : > { %v1079_v19 = vmul.f32 %v3533_v17, %v3891_v32  ;;  %v1101_v21 = vadd.f32 %v3038_v15, %v1089_v16 }
 0x172   : > { %v1102_v32 = vadd.f32 %v3038_v15, %v1090_v27  ;;  %v3051_v27 = vld [vmem:[%s3814_s21] ss:$0 sm:$0xff] }
 0x173   : > { %v1091_v22 = vmul.f32 %v3037_v10, %v1079_v19  ;;  %v3939_v23 = vpack.c.bf16 %v1101_v21, %v1100_v20 }
 0x174   : > { %v3535_v26 = vpop.eup %3534 }
 0x175   : > { %3238 = vmatmul.mubr.msk.bf16.vlgmr.msra.gmra.mxu0 %vm1001_vm3, %v3939_v23  ;;  %3254 = vmatmul.mubr.msk.bf16.vlgmr.msra.gmra.mxu1 %vm1001_vm3, %v3939_v23  ;;  %v3537_v28 = vpop.eup %3536  ;;  %v1081_v24 = vmul.f32 %v3535_v26, %v3901_v42  ;;  %v1103_v29 = vadd.f32 %v3038_v15, %v1091_v22  ;;  %v3039_v22 = vld [vmem:[%s4488_s29] ss:$0 sm:$0xff] }
 0x176   : > { %3241 = vmatprep.mubr.msk.bf16.mxu0 %vm3634_vm5, %v3633_v51  ;;  %3257 = vmatprep.mubr.msk.bf16.mxu1 %vm3634_vm5, %v3633_v51  ;;  %v1080_v31 = vmul.f32 %v3537_v28, %v3899_v41 }
 0x177   : > { %3266 = vmatpush3.bf16.msra.mxu0 %v3506_v25  ;;  %v1093_v33 = vmul.f32 %v3037_v10, %v1081_v24  ;;  %v3954_v34 = vpack.c.bf16 %v1103_v29, %v1102_v32 }
 0x178   : > { %3267 = vmatprep.subr.bf16.mxu0 %v3633_v51  ;;  %v1092_v35 = vmul.f32 %v3037_v10, %v1080_v31 }
 0x179   : > { %v1105_v36 = vadd.f32 %v3038_v15, %v1093_v33 }
 0x17a   : > { %v1104_v37 = vadd.f32 %v3038_v15, %v1092_v35  ;;  %v3508_v35 = vld [vmem:[%s4483_s9 + $0x18] sm:$0xff]  }
 0x17b   : > { %3268 = vmatpush3.bf16.msra.mxu0 %v3507_v30 }
 0x17c   : > { %3299 = vmatprep.subr.bf16.mxu0 %v3633_v51  ;;  %v3965_v38 = vpack.c.bf16 %v1105_v36, %v1104_v37 }
 0x17d   : > { %3242 = vmatmul.mubr.msk.bf16.gmra.mxu0 %vm1001_vm3, %v3954_v34  ;;  %3258 = vmatmul.mubr.msk.bf16.gmra.mxu1 %vm1001_vm3, %v3954_v34 }
 0x17e   : > { %3245 = vmatprep.mubr.msk.bf16.mxu0 %vm3634_vm5, %v3633_v51  ;;  %3261 = vmatprep.mubr.msk.bf16.mxu1 %vm3634_vm5, %v3633_v51 }
 0x185   : > { %3246 = vmatmul.mubr.msk.bf16.gmra.mxu0 %vm1001_vm3, %v3965_v38  ;;  %3262 = vmatmul.mubr.msk.bf16.gmra.mxu1 %vm1001_vm3, %v3965_v38 }
 0x186   : > { %3269 = vmatprep.mubr.msk.bf16.mxu0 %vm3634_vm5, %v3633_v51  ;;  %3287 = vmatprep.mubr.msk.bf16.mxu1 %vm3634_vm5, %v3633_v51 }
 0x18d   : > { %3270 = vmatmul.mubr.msk.bf16.vlgmr.msra.gmra.mxu0 %vm1001_vm3, %v3939_v23 }
 0x18e   : > { %3273 = vmatprep.mubr.msk.bf16.mxu0 %vm3634_vm5, %v3633_v51 }
 0x195   : > { %3274 = vmatmul.mubr.msk.bf16.gmra.mxu0 %vm1001_vm3, %v3954_v34 }
 0x196   : > { %3277 = vmatprep.mubr.msk.bf16.mxu0 %vm3634_vm5, %v3633_v51 }
 0x19d   : > { %3278 = vmatmul.mubr.msk.bf16.gmra.mxu0 %vm1001_vm3, %v3965_v38 }
 0x19e   : > { %3305 = vmatprep.mubr.msk.bf16.mxu0 %vm3634_vm5, %v3633_v51 }
 0x235   : > { %v1181_v39 = vpop.f32.mrf.mxu0  ;;  %v1261_v40 = vpop.f32.mrf.mxu1 }
 0x236   : > { %v1262_v16 = vadd.f32 %v3045_v60, %v1261_v40  ;;  %v1182_v24 = vadd.f32 %v3039_v22, %v1181_v39  ;;  %v3509_v39 = vld [vmem:[%s4483_s9 + $0x10] sm:$0xff]  }
 0x237   : > { %v3239_v41 = vpop.f32.mrf.mxu0  ;;  %v3255_v42 = vpop.f32.mrf.mxu1 }
 0x239   : > { %v1184_v43 = vpop.f32.mrf.mxu0  ;;  %v1264_v44 = vpop.f32.mrf.mxu1 }
 0x23a   : > { %v1265_v13 = vadd.f32 %v3045_v60, %v1264_v44  ;;  %v1185_v26 = vadd.f32 %v3039_v22, %v1184_v43 }
 0x23b   : > { %v3240_v45 = vpop.f32.mrf.mxu0  ;;  %v3256_v46 = vpop.f32.mrf.mxu1 }
 0x23c   : > { %v1367_v18 = vpack.c.bf16 %v1265_v13, %v1262_v16  ;;  %v1364_v32 = vpack.c.bf16 %v1185_v26, %v1182_v24  ;;  %v3068_v24 = vld [vmem:[%s4488_s29 + $0x1] ss:$0 sm:$0xff] }
 0x23d   : > { %v3987_v47 = vpop.f32.mrf.mxu0  ;;  %v1269_v48 = vpop.f32.mrf.mxu1 }
 0x23e   : > { %v1270_v8 = vadd.f32 %v3045_v60, %v1269_v48  ;;  %v1381_v21 = vsel %vm1370_vm6, %v1367_v18, 0  ;;  %v1190_v44 = vadd.f32 %v3039_v22, %v3987_v47 }
 0x23f   : > { %v3243_v49 = vpop.f32.mrf.mxu0  ;;  %v3259_v50 = vpop.f32.mrf.mxu1 }
 0x241   : > { %v1192_v52 = vpop.f32.mrf.mxu0  ;;  %v1272_v53 = vpop.f32.mrf.mxu1 }
 0x242   : > { %v1273_v5 = vadd.f32 %v3045_v60, %v1272_v53  ;;  %v1193_v41 = vadd.f32 %v3039_v22, %v1192_v52  ;;  %v3510_v52 = vld [vmem:[%s3809_s5 + $0x18] sm:$0xff]   ;;  %v3511_v53 = vld [vmem:[%s3809_s5 + $0x10] sm:$0xff]  }
 0x243   : > { %v3244_v54 = vpop.f32.mrf.mxu0  ;;  %v3260_v55 = vpop.f32.mrf.mxu1 }
 0x244   : > { %v1368_v10 = vpack.c.bf16 %v1273_v5, %v1270_v8  ;;  %v1365_v46 = vpack.c.bf16 %v1193_v41, %v1190_v44  ;;  %v4053_v55 = vld [vmem:[%s4489_s22] sm:$0xff]  ;;  %v4081_v8 = vld [vmem:[%s4489_s22 + $0x18] sm:$0xff] }
 0x245   : > { %v3989_v56 = vpop.f32.mrf.mxu0  ;;  %v1277_v57 = vpop.f32.mrf.mxu1 }
 0x246   : > { %v1278_v63 = vadd.f32 %v3045_v60, %v1277_v57  ;;  %v1384_v14 = vsel %vm1370_vm6, %v1368_v10, 0  ;;  %v1198_v47 = vadd.f32 %v3039_v22, %v3989_v56 }
 0x247   : > { %v3247_v58 = vpop.f32.mrf.mxu0  ;;  %v3263_v59 = vpop.f32.mrf.mxu1 }
 0x249   : > { %v3992_v61 = vpop.f32.mrf.mxu0  ;;  %v1280_v62 = vpop.f32.mrf.mxu1 }
 0x24a   : > { %v1281_v0 = vadd.f32 %v3045_v60, %v1280_v62  ;;  %v1201_v49 = vadd.f32 %v3039_v22, %v3992_v61  ;;  %v4061_v60 = vld [vmem:[%s4489_s22 + $0x8] sm:$0xff] }
 0x24b   : > { %v3248_v1 = vpop.f32.mrf.mxu0  ;;  %v3264_v2 = vpop.f32.mrf.mxu1 }
 0x24c   : > { %v1369_v3 = vpack.c.bf16 %v1281_v0, %v1278_v63  ;;  %v1366_v50 = vpack.c.bf16 %v1201_v49, %v1198_v47  ;;  %v4071_v2 = vld [vmem:[%s4489_s22 + $0x10] sm:$0xff] }
 0x24d   : > { %v1341_v4 = vpop.f32.mrf.mxu0 }
 0x24e   : > { %v1387_v6 = vsel %vm1370_vm6, %v1369_v3, 0  ;;  %v1342_v45 = vadd.f32 %v3051_v27, %v1341_v4 }
 0x24f   : > { %v3271_v7 = vpop.f32.mrf.mxu0  ;;  %3282 = vmatpush3.bf16.xpose.msra.mxu1 %v1387_v6 }
 0x250   : > { %3283 = vmatprep.subr.bf16.mxu1 %v3633_v51 }
 0x251   : > { %v1344_v9 = vpop.f32.mrf.mxu0 }
 0x252   : > { %v1345_v42 = vadd.f32 %v3051_v27, %v1344_v9 }
 0x253   : > { %v3272_v11 = vpop.f32.mrf.mxu0 }
 0x254   : > { %v1529_v48 = vpack.c.bf16 %v1345_v42, %v1342_v45 }
 0x255   : > { %v1349_v12 = vpop.f32.mrf.mxu0 }
 0x256   : > { %v1350_v40 = vadd.f32 %v3051_v27, %v1349_v12 }
 0x257   : > { %v3275_v15 = vpop.f32.mrf.mxu0  ;;  %3284 = vmatpush3.bf16.xpose.msra.mxu1 %v1384_v14  ;;  %v4091_v14 = vld [vmem:[%s4489_s22 + $0x20] sm:$0xff] }
 0x258   : > { %3285 = vmatprep.subr.bf16.mxu1 %v3633_v51 }
 0x259   : > { %v1352_v17 = vpop.f32.mrf.mxu0 }
 0x25a   : > { %v1353_v36 = vadd.f32 %v3051_v27, %v1352_v17 }
 0x25b   : > { %v3276_v19 = vpop.f32.mrf.mxu0 }
 0x25c   : > { %v1530_v43 = vpack.c.bf16 %v1353_v36, %v1350_v40 }
 0x25d   : > { %v1357_v20 = vpop.f32.mrf.mxu0 }
 0x25e   : > { %v1358_v29 = vadd.f32 %v3051_v27, %v1357_v20  ;;  %v4101_v20 = vld [vmem:[%s4489_s22 + $0x28] sm:$0x3] }
 0x25f   : > { %v3279_v25 = vpop.f32.mrf.mxu0  ;;  %3286 = vmatpush3.bf16.xpose.msra.mxu1 %v1381_v21 }
 0x260   : > { %3317 = vmatprep.subr.bf16.mxu1 %v3633_v51 }
 0x261   : > { %v1360_v28 = vpop.f32.mrf.mxu0 }
 0x262   : > { %v1361_v30 = vadd.f32 %v3051_v27, %v1360_v28 }
 0x263   : > { %v3280_v31 = vpop.f32.mrf.mxu0 }
 0x264   : > { %v1531_v33 = vpack.c.bf16 %v1361_v30, %v1358_v29 }
 0x266   : > { %3288 = vmatmul.mubr.msk.bf16.vlgmr.msra.gmra.mxu1 %vm1370_vm6, %v1364_v32  ;;  %v1543_v37 = vsel %vm1541_vm7, %v1531_v33, 0 }
 0x267   : > { %3300 = vmatpush3.bf16.msra.mxu0 %v1543_v37  ;;  %3291 = vmatprep.mubr.msk.bf16.mxu1 %vm3634_vm5, %v3633_v51 }
 0x268   : > { %3301 = vmatprep.subr.bf16.mxu0 %v3633_v51  ;;  %3318 = vmatpush3.bf16.msra.mxu1 %v3508_v35 }
 0x269   : > { %3319 = vmatprep.subr.bf16.mxu1 %v3633_v51 }
 0x26b   : > { %3302 = vmatpush3.bf16.msra.mxu0 %v1530_v43 }
 0x26c   : > { %3303 = vmatprep.subr.bf16.mxu0 %v3633_v51  ;;  %3320 = vmatpush3.bf16.msra.mxu1 %v3509_v39 }
 0x26d   : > { %3349 = vmatprep.subr.bf16.mxu1 %v3633_v51 }
 0x26e   : > { %3292 = vmatmul.mubr.msk.bf16.gmra.mxu1 %vm1370_vm6, %v1365_v46 }
 0x26f   : > { %3304 = vmatpush3.bf16.msra.mxu0 %v1529_v48  ;;  %3295 = vmatprep.mubr.msk.bf16.mxu1 %vm3634_vm5, %v3633_v51 }
 0x270   : > { %3333 = vmatprep.subr.bf16.mxu0 %v3633_v51 }
 0x276   : > { %3296 = vmatmul.mubr.msk.bf16.gmra.mxu1 %vm1370_vm6, %v1366_v50 }
 0x277   : > { %3321 = vmatprep.mubr.msk.bf16.mxu1 %vm3634_vm5, %v3633_v51 }
 0x27e   : > { %3322 = vmatmul.mubr.msk.bf16.vlgmr.msra.gmra.mxu1 %vm1001_vm3, %v3939_v23 }
 0x27f   : > { %3325 = vmatprep.mubr.msk.bf16.mxu1 %vm3634_vm5, %v3633_v51  ;;  %3350 = vmatpush3.bf16.msra.mxu1 %v3510_v52 }
 0x280   : > { %3351 = vmatprep.subr.bf16.mxu1 %v3633_v51 }
 0x283   : > { %3352 = vmatpush3.bf16.msra.mxu1 %v3511_v53 }
 0x284   : > { %3383 = vmatprep.subr.bf16.mxu1 %v3633_v51 }
 0x286   : > { %3326 = vmatmul.mubr.msk.bf16.gmra.mxu1 %vm1001_vm3, %v3954_v34 }
 0x287   : > { %3329 = vmatprep.mubr.msk.bf16.mxu1 %vm3634_vm5, %v3633_v51 }
 0x28e   : > { %3330 = vmatmul.mubr.msk.bf16.gmra.mxu1 %vm1001_vm3, %v3965_v38 }
 0x28f   : > { %3353 = vmatprep.mubr.msk.bf16.mxu1 %vm3634_vm5, %v3633_v51 }
 0x296   : > { %3354 = vmatmul.mubr.msk.bf16.vlgmr.msra.gmra.mxu1 %vm1001_vm3, %v3939_v23 }
 0x297   : > { %3357 = vmatprep.mubr.msk.bf16.mxu1 %vm3634_vm5, %v3633_v51 }
 0x29e   : > { %3358 = vmatmul.mubr.msk.bf16.gmra.mxu1 %vm1001_vm3, %v3954_v34 }
 0x29f   : > { %3361 = vmatprep.mubr.msk.bf16.mxu1 %vm3634_vm5, %v3633_v51 }
 0x2a6   : > { %3362 = vmatmul.mubr.msk.bf16.gmra.mxu1 %vm1001_vm3, %v3965_v38 }
 0x2a7   : > { %3389 = vmatprep.mubr.msk.bf16.mxu1 %vm3634_vm5, %v3633_v51 }
 0x326   : > { %v1423_v54 = vpop.f32.mrf.mxu1 }
 0x327   : > { %v1446_v56 = vmul.f32 0.25, %v1423_v54 }
 0x328   : > { %v3289_v57 = vpop.f32.mrf.mxu1 }
 0x329   : > { %v4056_v58 = vadd.f32 %v1446_v56, %v4053_v55 }
 0x32a   : > { %v1426_v59 = vpop.f32.mrf.mxu1 }
 0x32b   : > { %v1447_v61 = vmul.f32 0.25, %v1426_v59  ;;  %v1459_v62 = vsel %vm1458_vm8, %v4056_v58, -inf }
 0x32c   : > { %1460 = vmax.xlane.f32.xlu0 %v1459_v62  ;;  %v3290_v63 = vpop.f32.mrf.mxu1 }
 0x32d   : > { %v4066_v0 = vadd.f32 %v1447_v61, %v4061_v60 }
 0x32e   : > { %v1431_v1 = vpop.f32.mrf.mxu1 }
 0x32f   : > { %v1448_v3 = vmul.f32 0.25, %v1431_v1  ;;  %v1462_v4 = vsel %vm1458_vm8, %v4066_v0, -inf }
 0x330   : > { %1463 = vmax.xlane.f32.xlu1 %v1462_v4  ;;  %v3293_v5 = vpop.f32.mrf.mxu1 }
 0x331   : > { %v4076_v6 = vadd.f32 %v1448_v3, %v4071_v2  ;;  %v3090_v3 = vld [vmem:[%s3814_s21 + $0x1] ss:$0 sm:$0xff]  ;;  %s4490_s21 = scalar_lea.vmem %s4430_s11, %s3774_s27 }
 0x332   : > { %v1434_v7 = vpop.f32.mrf.mxu1 }
 0x333   : > { %v1449_v9 = vmul.f32 0.25, %v1434_v7  ;;  %v1465_v10 = vsel %vm1458_vm8, %v4076_v6, -inf }
 0x334   : > { %1466 = vmax.xlane.f32.xlu0 %v1465_v10  ;;  %v3294_v11 = vpop.f32.mrf.mxu1 }
 0x335   : > { %v4086_v12 = vadd.f32 %v1449_v9, %v4081_v8 }
 0x336   : > { %v1439_v13 = vpop.f32.mrf.mxu1 }
 0x337   : > { %v1450_v15 = vmul.f32 0.25, %v1439_v13  ;;  %v1468_v16 = vsel %vm1458_vm8, %v4086_v12, -inf }
 0x338   : > { %1469 = vmax.xlane.f32.xlu1 %v1468_v16  ;;  %v3297_v17 = vpop.f32.mrf.mxu1 }
 0x339   : > { %v4096_v18 = vadd.f32 %v1450_v15, %v4091_v14 }
 0x33a   : > { %v1442_v19 = vpop.f32.mrf.mxu1 }
 0x33b   : > { %v1451_v21 = vmul.f32 0.25, %v1442_v19  ;;  %v1471_v22 = vsel %vm1458_vm8, %v4096_v18, -inf }
 0x33c   : > { %1472 = vmax.xlane.f32.xlu0 %v1471_v22  ;;  %v3298_v25 = vpop.f32.mrf.mxu1 }
 0x33d   : > { %v4106_v26 = vadd.f32 %v1451_v21, %v4101_v20 }
 0x33e   : > { %v1666_v27 = vpop.f32.mrf.mxu1 }
 0x33f   : > { %v1475_v28 = vsel %vm1474_vm9, %v4106_v26, -inf  ;;  %v4111_v31 = vadd.f32 %v3068_v24, %v1666_v27 }
 0x340   : > { %1476 = vmax.xlane.f32.xlu1 %v1475_v28  ;;  %v3323_v29 = vpop.f32.mrf.mxu1 }
 0x342   : > { %v1669_v30 = vpop.f32.mrf.mxu1 }
 0x343   : > { %v4113_v32 = vadd.f32 %v3068_v24, %v1669_v30 }
 0x344   : > { %v3324_v33 = vpop.f32.mrf.mxu1 }
 0x345   : > { %v1853_v35 = vpack.c.bf16 %v4113_v32, %v4111_v31 }
 0x346   : > { %v1674_v36 = vpop.f32.mrf.mxu1 }
 0x347   : > { %v4117_v41 = vadd.f32 %v3068_v24, %v1674_v36 }
 0x348   : > { %v3327_v37 = vpop.f32.mrf.mxu1 }
 0x34a   : > { %v1677_v40 = vpop.f32.mrf.mxu1 }
 0x34b   : > { %v4119_v39 = vadd.f32 %v3068_v24, %v1677_v40 }
 0x34c   : > { %v3328_v42 = vpop.f32.mrf.mxu1 }
 0x34d   : > { %v1854_v43 = vpack.c.bf16 %v4119_v39, %v4117_v41 }
 0x34e   : > { %v1682_v44 = vpop.f32.mrf.mxu1 }
 0x34f   : > { %v4123_v48 = vadd.f32 %v3068_v24, %v1682_v44 }
 0x350   : > { %v3331_v45 = vpop.f32.mrf.mxu1 }
 0x352   : > { %v1685_v46 = vpop.f32.mrf.mxu1 }
 0x353   : > { %v4125_v49 = vadd.f32 %v3068_v24, %v1685_v46 }
 0x354   : > { %v3332_v47 = vpop.f32.mrf.mxu1 }
 0x355   : > { %v1855_v50 = vpack.c.bf16 %v4125_v49, %v4123_v48 }
 0x356   : > { %v1830_v52 = vpop.f32.mrf.mxu1 }
 0x357   : > { %v1831_v19 = vadd.f32 %v3090_v3, %v1830_v52 }
 0x358   : > { %v3355_v53 = vpop.f32.mrf.mxu1 }
 0x35a   : > { %v1833_v54 = vpop.f32.mrf.mxu1 }
 0x35b   : > { %v1834_v16 = vadd.f32 %v3090_v3, %v1833_v54 }
 0x35c   : > { %v3356_v56 = vpop.f32.mrf.mxu1 }
 0x35d   : > { %v2015_v21 = vpack.c.bf16 %v1834_v16, %v1831_v19  ;;  %v3513_v19 = vld [vmem:[%s3799_s0 + $0x10] sm:$0xff]  }
 0x35e   : > { %v1838_v57 = vpop.f32.mrf.mxu1 }
 0x35f   : > { %v1839_v15 = vadd.f32 %v3090_v3, %v1838_v57 }
 0x360   : > { %v3359_v59 = vpop.f32.mrf.mxu1 }
 0x362   : > { %v1841_v61 = vpop.f32.mrf.mxu1 }
 0x363   : > { %v1842_v11 = vadd.f32 %v3090_v3, %v1841_v61 }
 0x364   : > { %v3360_v62 = vpop.f32.mrf.mxu1 }
 0x365   : > { %v2016_v17 = vpack.c.bf16 %v1842_v11, %v1839_v15  ;;  %v3512_v15 = vld [vmem:[%s3799_s0 + $0x18] sm:$0xff]  }
 0x366   : > { %v1846_v63 = vpop.f32.mrf.mxu1 }
 0x367   : > { %v1847_v5 = vadd.f32 %v3090_v3, %v1846_v63 }
 0x368   : > { %v3363_v1 = vpop.f32.mrf.mxu1 }
 0x36a   : > { %v1849_v4 = vpop.f32.mrf.mxu1 }
 0x36b   : > { %v1850_v7 = vadd.f32 %v3090_v3, %v1849_v4 }
 0x36c   : > { %v3364_v9 = vpop.f32.mrf.mxu1 }
 0x36d   : > { %v2017_v10 = vpack.c.bf16 %v1850_v7, %v1847_v5 }
 0x36f   : > { %v2028_v13 = vsel %vm1541_vm7, %v2017_v10, 0 }
 0x370   : > { %3384 = vmatpush3.bf16.msra.mxu1 %v2028_v13 }
 0x371   : > { %3385 = vmatprep.subr.bf16.mxu1 %v3633_v51 }
 0x374   : > { %3386 = vmatpush3.bf16.msra.mxu1 %v2016_v17 }
 0x375   : > { %3387 = vmatprep.subr.bf16.mxu1 %v3633_v51 }
 0x378   : > { %3388 = vmatpush3.bf16.msra.mxu1 %v2015_v21 }
 0x379   : > { %3415 = vmatprep.subr.bf16.mxu1 %v3633_v51 }
 0x3b5   : > { %v1461_v22 = vpop.xlane.xlu0 %1460 }
 0x3b6   : > { %v1478_v25 = vsub.f32 %v4056_v58, %v1461_v22 }
 0x3b8   : > { %v1484_v27 = vmul.f32 1.442695, %v1478_v25 }
 0x3b9   : > { %v1464_v28 = vpop.xlane.xlu1 %1463 }
 0x3ba   : > { %3538 = vpow2.f32 %v1484_v27  ;;  %v1479_v24 = vsub.f32 %v4066_v0, %v1464_v28 }
 0x3bc   : > { %v1486_v29 = vmul.f32 1.442695, %v1479_v24 }
 0x3bd   : > { %v1467_v30 = vpop.xlane.xlu0 %1466 }
 0x3be   : > { %3540 = vpow2.f32 %v1486_v29  ;;  %v1480_v33 = vsub.f32 %v4076_v6, %v1467_v30 }
 0x3c0   : > { %v1488_v36 = vmul.f32 1.442695, %v1480_v33 }
 0x3c1   : > { %v1470_v37 = vpop.xlane.xlu1 %1469 }
 0x3c2   : > { %3542 = vpow2.f32 %v1488_v36  ;;  %v1481_v40 = vsub.f32 %v4086_v12, %v1470_v37 }
 0x3c4   : > { %v1490_v42 = vmul.f32 1.442695, %v1481_v40 }
 0x3c5   : > { %v1473_v44 = vpop.xlane.xlu0 %1472 }
 0x3c6   : > { %3544 = vpow2.f32 %v1490_v42  ;;  %v1482_v58 = vsub.f32 %v4096_v18, %v1473_v44 }
 0x3c7   : > { %v3539_v45 = vpop.eup %3538 }
 0x3c8   : > { %v1492_v46 = vmul.f32 1.442695, %v1482_v58  ;;  %v1496_v47 = vsel %vm1458_vm8, %v3539_v45, 0.0 }
 0x3c9   : > { %1497 = vadd.xlane.f32.xlu0 %v1496_v47  ;;  %v1477_v0 = vpop.xlane.xlu1 %1476 }
 0x3ca   : > { %3546 = vpow2.f32 %v1492_v46  ;;  %v1483_v52 = vsub.f32 %v4106_v26, %v1477_v0 }
 0x3cb   : > { %v3541_v6 = vpop.eup %3540 }
 0x3cc   : > { %v1494_v53 = vmul.f32 1.442695, %v1483_v52  ;;  %v1499_v54 = vsel %vm1458_vm8, %v3541_v6, 0.0 }
 0x3cd   : > { %1500 = vadd.xlane.f32.xlu1 %v1499_v54 }
 0x3ce   : > { %3548 = vpow2.f32 %v1494_v53 }
 0x3cf   : > { %v3543_v12 = vpop.eup %3542 }
 0x3d0   : > { %v1502_v56 = vsel %vm1458_vm8, %v3543_v12, 0.0 }
 0x3d1   : > { %1503 = vadd.xlane.f32.xlu0 %v1502_v56 }
 0x3d3   : > { %v3545_v18 = vpop.eup %3544 }
 0x3d4   : > { %v1505_v57 = vsel %vm1458_vm8, %v3545_v18, 0.0 }
 0x3d5   : > { %1506 = vadd.xlane.f32.xlu1 %v1505_v57 }
 0x3d7   : > { %v3547_v59 = vpop.eup %3546 }
 0x3d8   : > { %v1508_v61 = vsel %vm1458_vm8, %v3547_v59, 0.0 }
 0x3d9   : > { %1509 = vadd.xlane.f32.xlu0 %v1508_v61 }
 0x3db   : > { %v3549_v62 = vpop.eup %3548 }
 0x3dc   : > { %v1511_v26 = vsel %vm1474_vm9, %v3549_v62, 0.0 }
 0x3dd   : > { %1512 = vadd.xlane.f32.xlu1 %v1511_v26 }
 0x452   : > { %v1498_v63 = vpop.xlane.xlu0 %1497 }
 0x453   : > { %3550 = vrcp.f32 %v1498_v63  ;;  %v3079_v63 = vld [vmem:[%s3804_s18 + $0x1] ss:$0 sm:$0xff] }
 0x456   : > { %v1501_v1 = vpop.xlane.xlu1 %1500 }
 0x457   : > { %3552 = vrcp.f32 %v1501_v1 }
 0x45a   : > { %v1504_v3 = vpop.xlane.xlu0 %1503 }
 0x45b   : > { %3554 = vrcp.f32 %v1504_v3 }
 0x45e   : > { %v1507_v4 = vpop.xlane.xlu1 %1506 }
 0x45f   : > { %3556 = vrcp.f32 %v1507_v4 }
 0x460   : > { %v3551_v5 = vpop.eup %3550 }
 0x461   : > { %v1520_v10 = vmul.f32 %v3551_v5, %v3539_v45 }
 0x462   : > { %v1510_v7 = vpop.xlane.xlu0 %1509 }
 0x463   : > { %3558 = vrcp.f32 %v1510_v7 }
 0x464   : > { %v3553_v9 = vpop.eup %3552 }
 0x465   : > { %v1521_v11 = vmul.f32 %v3553_v9, %v3541_v6 }
 0x466   : > { %v1513_v13 = vpop.xlane.xlu1 %1512 }
 0x467   : > { %v1526_v16 = vpack.c.bf16 %v1521_v11, %v1520_v10  ;;  %3560 = vrcp.f32 %v1513_v13 }
 0x468   : > { %v3555_v17 = vpop.eup %3554 }
 0x469   : > { %3306 = vmatmul.mubr.msk.bf16.vlgmr.msra.gmra.mxu0 %vm1458_vm8, %v1526_v16  ;;  %v1522_v22 = vmul.f32 %v3555_v17, %v3543_v12 }
 0x46a   : > { %3334 = vmatpush3.bf16.msra.mxu0 %v3512_v15  ;;  %3309 = vmatprep.mubr.msk.bf16.mxu0 %vm3634_vm5, %v3633_v51 }
 0x46b   : > { %3335 = vmatprep.subr.bf16.mxu0 %v3633_v51 }
 0x46c   : > { %v3557_v21 = vpop.eup %3556 }
 0x46d   : > { %v1523_v25 = vmul.f32 %v3557_v21, %v3545_v18 }
 0x46e   : > { %3336 = vmatpush3.bf16.msra.mxu0 %v3513_v19 }
 0x46f   : > { %v1527_v27 = vpack.c.bf16 %v1523_v25, %v1522_v22  ;;  %3365 = vmatprep.subr.bf16.mxu0 %v3633_v51 }
 0x470   : > { %v3559_v28 = vpop.eup %3558 }
 0x471   : > { %3310 = vmatmul.mubr.msk.bf16.gmra.mxu0 %vm1458_vm8, %v1527_v27  ;;  %v1524_v29 = vmul.f32 %v3559_v28, %v3547_v59 }
 0x472   : > { %3313 = vmatprep.mubr.msk.bf16.mxu0 %vm3634_vm5, %v3633_v51 }
 0x474   : > { %v3561_v24 = vpop.eup %3560 }
 0x475   : > { %v1525_v30 = vmul.f32 %v3561_v24, %v3549_v62 }
 0x477   : > { %v1528_v33 = vpack.c.bf16 %v1525_v30, %v1524_v29 }
 0x479   : > { %3314 = vmatmul.mubr.msk.bf16.gmra.mxu0 %vm1458_vm8, %v1528_v33 }
 0x47a   : > { %3337 = vmatprep.mubr.msk.bf16.mxu0 %vm3634_vm5, %v3633_v51 }
 0x481   : > { %3338 = vmatmul.mubr.msk.bf16.vlgmr.msra.gmra.mxu0 %vm1001_vm3, %v3939_v23 }
 0x482   : > { %3341 = vmatprep.mubr.msk.bf16.mxu0 %vm3634_vm5, %v3633_v51 }
 0x489   : > { %3342 = vmatmul.mubr.msk.bf16.gmra.mxu0 %vm1001_vm3, %v3954_v34 }
 0x48a   : > { %3345 = vmatprep.mubr.msk.bf16.mxu0 %vm3634_vm5, %v3633_v51 }
 0x491   : > { %3346 = vmatmul.mubr.msk.bf16.gmra.mxu0 %vm1001_vm3, %v3965_v38 }
 0x492   : > { %3371 = vmatprep.mubr.msk.bf16.mxu0 %vm3634_vm5, %v3633_v51 }
 0x529   : > { %v4171_v36 = vpop.f32.mrf.mxu0 }
 0x52b   : > { %v3307_v37 = vpop.f32.mrf.mxu0 }
 0x52d   : > { %v4173_v40 = vpop.f32.mrf.mxu0 }
 0x52e   : > { %v1602_v23 = vpack.c.bf16 %v4173_v40, %v4171_v36 }
 0x52f   : > { %v3308_v42 = vpop.f32.mrf.mxu0 }
 0x531   : > { %v4177_v44 = vpop.f32.mrf.mxu0 }
 0x533   : > { %v3311_v34 = vpop.f32.mrf.mxu0 }
 0x535   : > { %v4179_v58 = vpop.f32.mrf.mxu0 }
 0x536   : > { %v1603_v38 = vpack.c.bf16 %v4179_v58, %v4177_v44 }
 0x537   : > { %v3312_v45 = vpop.f32.mrf.mxu0 }
 0x539   : > { %v4183_v46 = vpop.f32.mrf.mxu0 }
 0x53b   : > { %v3315_v47 = vpop.f32.mrf.mxu0 }
 0x53d   : > { %v4185_v0 = vpop.f32.mrf.mxu0 }
 0x53e   : > { %v1604_v52 = vpack.c.bf16 %v4185_v0, %v4183_v46 }
 0x53f   : > { %v3316_v6 = vpop.f32.mrf.mxu0 }
 0x541   : > { %v1748_v53 = vpop.f32.mrf.mxu0 }
 0x542   : > { %v1749_v17 = vadd.f32 %v3079_v63, %v1748_v53 }
 0x543   : > { %v3339_v54 = vpop.f32.mrf.mxu0 }
 0x545   : > { %v1751_v12 = vpop.f32.mrf.mxu0 }
 0x546   : > { %v1752_v15 = vadd.f32 %v3079_v63, %v1751_v12 }
 0x547   : > { %v3340_v56 = vpop.f32.mrf.mxu0 }
 0x548   : > { %v1856_v19 = vpack.c.bf16 %v1752_v15, %v1749_v17 }
 0x549   : > { %v1756_v18 = vpop.f32.mrf.mxu0 }
 0x54a   : > { %v1757_v11 = vadd.f32 %v3079_v63, %v1756_v18  ;;  %v1869_v21 = vsel %vm1370_vm6, %v1856_v19, 0 }
 0x54b   : > { %v3343_v57 = vpop.f32.mrf.mxu0 }
 0x54d   : > { %v1759_v59 = vpop.f32.mrf.mxu0 }
 0x54e   : > { %v1760_v9 = vadd.f32 %v3079_v63, %v1759_v59 }
 0x54f   : > { %v3344_v61 = vpop.f32.mrf.mxu0 }
 0x550   : > { %v1857_v13 = vpack.c.bf16 %v1760_v9, %v1757_v11 }
 0x551   : > { %v1764_v62 = vpop.f32.mrf.mxu0 }
 0x552   : > { %v1765_v3 = vadd.f32 %v3079_v63, %v1764_v62  ;;  %v1872_v16 = vsel %vm1370_vm6, %v1857_v13, 0 }
 0x553   : > { %v3347_v26 = vpop.f32.mrf.mxu0 }
 0x555   : > { %v1767_v1 = vpop.f32.mrf.mxu0 }
 0x556   : > { %v1768_v4 = vadd.f32 %v3079_v63, %v1767_v1 }
 0x557   : > { %v3348_v5 = vpop.f32.mrf.mxu0 }
 0x558   : > { %v1858_v7 = vpack.c.bf16 %v1768_v4, %v1765_v3 }
 0x55a   : > { %v1875_v10 = vsel %vm1370_vm6, %v1858_v7, 0 }
 0x55b   : > { %3366 = vmatpush3.bf16.xpose.msra.mxu0 %v1875_v10 }
 0x55c   : > { %3367 = vmatprep.subr.bf16.mxu0 %v3633_v51 }
 0x563   : > { %3368 = vmatpush3.bf16.xpose.msra.mxu0 %v1872_v16 }
 0x564   : > { %3369 = vmatprep.subr.bf16.mxu0 %v3633_v51 }
 0x56b   : > { %3370 = vmatpush3.bf16.xpose.msra.mxu0 %v1869_v21 }
 0x56c   : > { %3401 = vmatprep.subr.bf16.mxu0 %v3633_v51 }
 0x572   : > { %3372 = vmatmul.mubr.msk.bf16.vlgmr.msra.gmra.mxu0 %vm1370_vm6, %v1853_v35 }
 0x573   : > { %3375 = vmatprep.mubr.msk.bf16.mxu0 %vm3634_vm5, %v3633_v51 }
 0x57a   : > { %3376 = vmatmul.mubr.msk.bf16.gmra.mxu0 %vm1370_vm6, %v1854_v43 }
 0x57b   : > { %3379 = vmatprep.mubr.msk.bf16.mxu0 %vm3634_vm5, %v3633_v51 }
 0x582   : > { %3380 = vmatmul.mubr.msk.bf16.gmra.mxu0 %vm1370_vm6, %v1855_v50 }
 0x583   : > { %3403 = vmatprep.mubr.msk.bf16.mxu0 %vm3634_vm5, %v3633_v51 }
 0x632   : > { %v1911_v31 = vpop.f32.mrf.mxu0 }
 0x633   : > { %v1934_v32 = vmul.f32 0.25, %v1911_v31 }
 0x634   : > { %v3373_v35 = vpop.f32.mrf.mxu0 }
 0x635   : > { %v1940_v22 = vadd.f32 %v1934_v32, %v4053_v55 }
 0x636   : > { %v1914_v25 = vpop.f32.mrf.mxu0 }
 0x637   : > { %v1935_v41 = vmul.f32 0.25, %v1914_v25  ;;  %v1946_v39 = vsel %vm1458_vm8, %v1940_v22, -inf }
 0x638   : > { %1947 = vmax.xlane.f32.xlu0 %v1946_v39  ;;  %v3374_v43 = vpop.f32.mrf.mxu0  ;;  %v3515_v39 = vld [vmem:[%s3824_s3 + $0x8] sm:$0xff]  }
 0x639   : > { %v1941_v27 = vadd.f32 %v1935_v41, %v4061_v60  ;;  %3402 = vmatpush3.bf16.msra.mxu0 %v3515_v39 }
 0x63a   : > { %v1919_v28 = vpop.f32.mrf.mxu0  ;;  %3429 = vmatprep.subr.bf16.mxu0 %v3633_v51 }
 0x63b   : > { %v1936_v48 = vmul.f32 0.25, %v1919_v28  ;;  %v1949_v49 = vsel %vm1458_vm8, %v1941_v27, -inf }
 0x63c   : > { %1950 = vmax.xlane.f32.xlu1 %v1949_v49  ;;  %v3377_v50 = vpop.f32.mrf.mxu0 }
 0x63d   : > { %v1942_v24 = vadd.f32 %v1936_v48, %v4071_v2 }
 0x63e   : > { %v1922_v29 = vpop.f32.mrf.mxu0 }
 0x63f   : > { %v1937_v30 = vmul.f32 0.25, %v1922_v29  ;;  %v1952_v55 = vsel %vm1458_vm8, %v1942_v24, -inf }
 0x640   : > { %1953 = vmax.xlane.f32.xlu0 %v1952_v55  ;;  %v3378_v33 = vpop.f32.mrf.mxu0 }
 0x641   : > { %v1943_v37 = vadd.f32 %v1937_v30, %v4081_v8  ;;  %v3514_v33 = vld [vmem:[%s3824_s3] sm:$0xff]  }
 0x642   : > { %v1927_v42 = vpop.f32.mrf.mxu0 }
 0x643   : > { %v1938_v34 = vmul.f32 0.25, %v1927_v42  ;;  %v1955_v60 = vsel %vm1458_vm8, %v1943_v37, -inf }
 0x644   : > { %1956 = vmax.xlane.f32.xlu1 %v1955_v60  ;;  %v3381_v45 = vpop.f32.mrf.mxu0 }
 0x645   : > { %v1944_v47 = vadd.f32 %v1938_v34, %v4091_v14 }
 0x646   : > { %v1930_v6 = vpop.f32.mrf.mxu0 }
 0x647   : > { %v1939_v53 = vmul.f32 0.25, %v1930_v6  ;;  %v1958_v2 = vsel %vm1458_vm8, %v1944_v47, -inf }
 0x648   : > { %1959 = vmax.xlane.f32.xlu0 %v1958_v2  ;;  %v3382_v54 = vpop.f32.mrf.mxu0 }
 0x649   : > { %v1945_v12 = vadd.f32 %v1939_v53, %v4101_v20 }
 0x64b   : > { %v1961_v56 = vsel %vm1474_vm9, %v1945_v12, -inf }
 0x64c   : > { %1962 = vmax.xlane.f32.xlu1 %v1961_v56 }
 0x6c1   : > { %v1948_v8 = vpop.xlane.xlu0 %1947 }
 0x6c2   : > { %v1964_v18 = vsub.f32 %v1940_v22, %v1948_v8 }
 0x6c4   : > { %v1970_v57 = vmul.f32 1.442695, %v1964_v18 }
 0x6c5   : > { %v1951_v59 = vpop.xlane.xlu1 %1950 }
 0x6c6   : > { %3562 = vpow2.f32 %v1970_v57  ;;  %v1965_v61 = vsub.f32 %v1941_v27, %v1951_v59 }
 0x6c8   : > { %v1972_v62 = vmul.f32 1.442695, %v1965_v61 }
 0x6c9   : > { %v1954_v26 = vpop.xlane.xlu0 %1953 }
 0x6ca   : > { %3564 = vpow2.f32 %v1972_v62  ;;  %v1966_v14 = vsub.f32 %v1942_v24, %v1954_v26 }
 0x6cc   : > { %v1974_v63 = vmul.f32 1.442695, %v1966_v14 }
 0x6cd   : > { %v1957_v1 = vpop.xlane.xlu1 %1956 }
 0x6ce   : > { %3566 = vpow2.f32 %v1974_v63  ;;  %v1967_v3 = vsub.f32 %v1943_v37, %v1957_v1 }
 0x6d0   : > { %v1976_v4 = vmul.f32 1.442695, %v1967_v3 }
 0x6d1   : > { %v1960_v5 = vpop.xlane.xlu0 %1959 }
 0x6d2   : > { %3568 = vpow2.f32 %v1976_v4  ;;  %v1968_v20 = vsub.f32 %v1944_v47, %v1960_v5 }
 0x6d3   : > { %v3563_v7 = vpop.eup %3562 }
 0x6d4   : > { %v1978_v9 = vmul.f32 1.442695, %v1968_v20  ;;  %v1982_v10 = vsel %vm1458_vm8, %v3563_v7, 0.0 }
 0x6d5   : > { %1983 = vadd.xlane.f32.xlu0 %v1982_v10  ;;  %v1963_v11 = vpop.xlane.xlu1 %1962 }
 0x6d6   : > { %3570 = vpow2.f32 %v1978_v9  ;;  %v1969_v13 = vsub.f32 %v1945_v12, %v1963_v11 }
 0x6d7   : > { %v3565_v15 = vpop.eup %3564 }
 0x6d8   : > { %v1980_v16 = vmul.f32 1.442695, %v1969_v13  ;;  %v1985_v17 = vsel %vm1458_vm8, %v3565_v15, 0.0 }
 0x6d9   : > { %1986 = vadd.xlane.f32.xlu1 %v1985_v17  ;;  %v3610_v17 = vld [vmem:[#allocation2] sm:$0xff] }
 0x6da   : > { %3572 = vpow2.f32 %v1980_v16 }
 0x6db   : > { %v3567_v19 = vpop.eup %3566 }
 0x6dc   : > { %v1988_v21 = vsel %vm1458_vm8, %v3567_v19, 0.0 }
 0x6dd   : > { %1989 = vadd.xlane.f32.xlu0 %v1988_v21 }
 0x6df   : > { %v3569_v31 = vpop.eup %3568 }
 0x6e0   : > { %v1991_v32 = vsel %vm1458_vm8, %v3569_v31, 0.0 }
 0x6e1   : > { %1992 = vadd.xlane.f32.xlu1 %v1991_v32 }
 0x6e3   : > { %v3571_v35 = vpop.eup %3570 }
 0x6e4   : > { %v1994_v22 = vsel %vm1458_vm8, %v3571_v35, 0.0 }
 0x6e5   : > { %1995 = vadd.xlane.f32.xlu0 %v1994_v22  ;;  %v3611_v22 = vld [vmem:[#allocation2 + $0x8] sm:$0xff] }
 0x6e7   : > { %v3573_v25 = vpop.eup %3572 }
 0x6e8   : > { %v1997_v41 = vsel %vm1474_vm9, %v3573_v25, 0.0 }
 0x6e9   : > { %1998 = vadd.xlane.f32.xlu1 %v1997_v41 }
 0x75e   : > { %v1984_v43 = vpop.xlane.xlu0 %1983 }
 0x75f   : > { %3574 = vrcp.f32 %v1984_v43 }
 0x762   : > { %v1987_v27 = vpop.xlane.xlu1 %1986 }
 0x763   : > { %3576 = vrcp.f32 %v1987_v27 }
 0x766   : > { %v1990_v28 = vpop.xlane.xlu0 %1989 }
 0x767   : > { %3578 = vrcp.f32 %v1990_v28 }
 0x76a   : > { %v1993_v48 = vpop.xlane.xlu1 %1992 }
 0x76b   : > { %3580 = vrcp.f32 %v1993_v48  ;;  %v3612_v48 = vld [vmem:[#allocation2 + $0x10] sm:$0xff] }
 0x76c   : > { %v3575_v49 = vpop.eup %3574 }
 0x76d   : > { %v2006_v29 = vmul.f32 %v3575_v49, %v3563_v7 }
 0x76e   : > { %v1996_v50 = vpop.xlane.xlu0 %1995 }
 0x76f   : > { %3582 = vrcp.f32 %v1996_v50 }
 0x770   : > { %v3577_v24 = vpop.eup %3576 }
 0x771   : > { %v2007_v30 = vmul.f32 %v3577_v24, %v3565_v15  ;;  %v3112_v15 = vld [vmem:[%s4490_s21] ss:$0 sm:$0xff]  ;;  %s4494_s21 = sld [smem:[#allocation21_spill]] (!%p3130_p5) }
 0x772   : > { %v1999_v55 = vpop.xlane.xlu1 %1998 }
 0x773   : > { %v2012_v37 = vpack.c.bf16 %v2007_v30, %v2006_v29  ;;  %3584 = vrcp.f32 %v1999_v55 }
 0x774   : > { %v3579_v42 = vpop.eup %3578 }
 0x775   : > { %3390 = vmatmul.mubr.msk.bf16.vlgmr.msra.gmra.mxu1 %vm1458_vm8, %v2012_v37  ;;  %v2008_v60 = vmul.f32 %v3579_v42, %v3567_v19 }
 0x776   : > { %3393 = vmatprep.mubr.msk.bf16.mxu1 %vm3634_vm5, %v3633_v51  ;;  %3416 = vmatpush3.bf16.msra.mxu1 %v3514_v33  ;;  %v3613_v33 = vld [vmem:[#allocation2 + $0x18] sm:$0xff] }
 0x777   : > { %3445 = vmatprep.subr.bf16.mxu1 %v3633_v51 }
 0x778   : > { %v3581_v34 = vpop.eup %3580 }
 0x779   : > { %v2009_v45 = vmul.f32 %v3581_v34, %v3569_v31 }
 0x77b   : > { %v2013_v47 = vpack.c.bf16 %v2009_v45, %v2008_v60 }
 0x77c   : > { %v3583_v6 = vpop.eup %3582 }
 0x77d   : > { %3394 = vmatmul.mubr.msk.bf16.gmra.mxu1 %vm1458_vm8, %v2013_v47  ;;  %v2010_v2 = vmul.f32 %v3583_v6, %v3571_v35  ;;  %v3614_v6 = vld [vmem:[#allocation2 + $0x20] sm:$0xff] }
 0x77e   : > { %3397 = vmatprep.mubr.msk.bf16.mxu1 %vm3634_vm5, %v3633_v51 }
 0x780   : > { %v3585_v53 = vpop.eup %3584 }
 0x781   : > { %v2011_v54 = vmul.f32 %v3585_v53, %v3573_v25 }
 0x783   : > { %v2014_v12 = vpack.c.bf16 %v2011_v54, %v2010_v2 }
 0x785   : > { %3398 = vmatmul.mubr.msk.bf16.gmra.mxu1 %vm1458_vm8, %v2014_v12 }
 0x786   : > { %3417 = vmatprep.mubr.msk.bf16.mxu1 %vm3634_vm5, %v3633_v51 }
 0x78d   : > { %3418 = vmatmul.mubr.msk.bf16.vlgmr.msra.gmra.mxu1 %vm1370_vm6, %v1602_v23 }
 0x78e   : > { %3421 = vmatprep.mubr.msk.bf16.mxu1 %vm3634_vm5, %v3633_v51 }
 0x795   : > { %3422 = vmatmul.mubr.msk.bf16.gmra.mxu1 %vm1370_vm6, %v1603_v38 }
 0x796   : > { %3425 = vmatprep.mubr.msk.bf16.mxu1 %vm3634_vm5, %v3633_v51 }
 0x79d   : > { %3426 = vmatmul.mubr.msk.bf16.gmra.mxu1 %vm1370_vm6, %v1604_v52 }
 0x79e   : > { %3461 = vmatprep.mubr.msk.bf16.mxu1 %vm3634_vm5, %v3633_v51 }
 0x835   : > { %v2064_v36 = vpop.f32.mrf.mxu1 }
 0x837   : > { %v3391_v40 = vpop.f32.mrf.mxu1 }
 0x839   : > { %v2067_v23 = vpop.f32.mrf.mxu1 }
 0x83a   : > { %v2087_v56 = vpack.c.bf16 %v2067_v23, %v2064_v36  ;;  %v3615_v23 = vld [vmem:[#allocation2 + $0x28] sm:$0x3] }
 0x83b   : > { %v3392_v8 = vpop.f32.mrf.mxu1 }
 0x83c   : > { %3404 = vmatmul.mubr.msk.bf16.vlgmr.msra.gmra.mxu0 %vm1370_vm6, %v2087_v56 }
 0x83d   : > { %v2072_v44 = vpop.f32.mrf.mxu1  ;;  %3407 = vmatprep.mubr.msk.bf16.mxu0 %vm3634_vm5, %v3633_v51 }
 0x83f   : > { %v3395_v58 = vpop.f32.mrf.mxu1 }
 0x841   : > { %v2075_v38 = vpop.f32.mrf.mxu1 }
 0x842   : > { %v2088_v18 = vpack.c.bf16 %v2075_v38, %v2072_v44 }
 0x843   : > { %v3396_v46 = vpop.f32.mrf.mxu1 }
 0x844   : > { %3408 = vmatmul.mubr.msk.bf16.gmra.mxu0 %vm1370_vm6, %v2088_v18 }
 0x845   : > { %v2080_v0 = vpop.f32.mrf.mxu1  ;;  %3411 = vmatprep.mubr.msk.bf16.mxu0 %vm3634_vm5, %v3633_v51 }
 0x847   : > { %v3399_v52 = vpop.f32.mrf.mxu1 }
 0x849   : > { %v2083_v57 = vpop.f32.mrf.mxu1 }
 0x84a   : > { %v2089_v59 = vpack.c.bf16 %v2083_v57, %v2080_v0 }
 0x84b   : > { %v3400_v61 = vpop.f32.mrf.mxu1 }
 0x84c   : > { %3412 = vmatmul.mubr.msk.bf16.gmra.mxu0 %vm1370_vm6, %v2089_v59 }
 0x84d   : > { %v2214_v62 = vpop.f32.mrf.mxu1  ;;  %3433 = vmatprep.mubr.msk.bf16.mxu0 %vm3634_vm5, %v3633_v51 }
 0x84f   : > { %v3419_v26 = vpop.f32.mrf.mxu1 }
 0x851   : > { %v2217_v14 = vpop.f32.mrf.mxu1 }
 0x853   : > { %v3420_v63 = vpop.f32.mrf.mxu1 }
 0x855   : > { %v2222_v1 = vpop.f32.mrf.mxu1 }
 0x857   : > { %v3423_v3 = vpop.f32.mrf.mxu1 }
 0x859   : > { %v2225_v4 = vpop.f32.mrf.mxu1 }
 0x85b   : > { %v3424_v5 = vpop.f32.mrf.mxu1 }
 0x85d   : > { %v2230_v20 = vpop.f32.mrf.mxu1 }
 0x85f   : > { %v3427_v7 = vpop.f32.mrf.mxu1 }
 0x861   : > { %v2233_v9 = vpop.f32.mrf.mxu1 }
 0x863   : > { %v3428_v10 = vpop.f32.mrf.mxu1 }
 0x8fc   : > { %v2142_v11 = vpop.f32.mrf.mxu0 }
 0x8fd   : > { %v2215_v13 = vadd.f32 %v2214_v62, %v2142_v11 }
 0x8fe   : > { %v3405_v16 = vpop.f32.mrf.mxu0 }
 0x8ff   : > { %v2237_v19 = vadd.f32 %v3610_v17, %v2215_v13 }
 0x900   : > { %v2145_v21 = vpop.f32.mrf.mxu0 }
 0x901   : > { %v4277_v31 = vadd.f32 %v3112_v15, %v2237_v19  ;;  %v2218_v32 = vadd.f32 %v2217_v14, %v2145_v21 }
 0x902   : > { %v3406_v35 = vpop.f32.mrf.mxu0 }
 0x903   : > { %v2238_v25 = vadd.f32 %v3611_v22, %v2218_v32  ;;  %v2258_v41 = vsel %vm1001_vm3, %v4277_v31, 0.0 }
 0x904   : > { %2259 = vadd.xlane.f32.xlu0 %v2258_v41  ;;  %v2150_v39 = vpop.f32.mrf.mxu0  ;;  %v3517_v41 = vld [vmem:[%s3837_s1] sm:$0xff]  }
 0x905   : > { %v4281_v43 = vadd.f32 %v3112_v15, %v2238_v25  ;;  %v2223_v27 = vadd.f32 %v2222_v1, %v2150_v39  ;;  %v3516_v25 = vld [vmem:[%s3837_s1 + $0x8] sm:$0xff]  }
 0x906   : > { %v3409_v28 = vpop.f32.mrf.mxu0  ;;  %3430 = vmatpush3.bf16.msra.mxu0 %v3516_v25  ;;  %v3115_v25 = vld [vmem:[%s963_s19] ss:$0 sm:$0xff]  ;;  %s4496_s19 = sld [smem:[#allocation22_spill]] (!%p3130_p5) }
 0x907   : > { %v2239_v49 = vadd.f32 %v3612_v48, %v2223_v27  ;;  %v2261_v50 = vsel %vm1001_vm3, %v4281_v43, 0.0  ;;  %3431 = vmatprep.subr.bf16.mxu0 %v3633_v51 }
 0x908   : > { %2262 = vadd.xlane.f32.xlu1 %v2261_v50  ;;  %v2153_v24 = vpop.f32.mrf.mxu0 }
 0x909   : > { %v4285_v29 = vadd.f32 %v3112_v15, %v2239_v49  ;;  %v2226_v30 = vadd.f32 %v2225_v4, %v2153_v24 }
 0x90a   : > { %v3410_v55 = vpop.f32.mrf.mxu0  ;;  %3432 = vmatpush3.bf16.msra.mxu0 %v3517_v41 }
 0x90b   : > { %v2240_v37 = vadd.f32 %v3613_v33, %v2226_v30  ;;  %v2264_v42 = vsel %vm1001_vm3, %v4285_v29, 0.0 }
 0x90c   : > { %2265 = vadd.xlane.f32.xlu0 %v2264_v42  ;;  %v2158_v34 = vpop.f32.mrf.mxu0 }
 0x90d   : > { %v4289_v60 = vadd.f32 %v3112_v15, %v2240_v37  ;;  %v2231_v45 = vadd.f32 %v2230_v20, %v2158_v34 }
 0x90e   : > { %v3413_v47 = vpop.f32.mrf.mxu0 }
 0x90f   : > { %v2241_v53 = vadd.f32 %v3614_v6, %v2231_v45  ;;  %v2267_v2 = vsel %vm1001_vm3, %v4289_v60, 0.0 }
 0x910   : > { %2268 = vadd.xlane.f32.xlu1 %v2267_v2  ;;  %v2161_v54 = vpop.f32.mrf.mxu0  ;;  %v3113_v2 = vld [vmem:[%s952_s20] ss:$0 sm:$0xff]  ;;  %s4495_s20 = sld [smem:[#allocation20_spill]] (!%p3130_p5) }
 0x911   : > { %v4293_v12 = vadd.f32 %v3112_v15, %v2241_v53  ;;  %v2234_v36 = vadd.f32 %v2233_v9, %v2161_v54 }
 0x912   : > { %v3414_v40 = vpop.f32.mrf.mxu0 }
 0x913   : > { %v2242_v56 = vadd.f32 %v3615_v23, %v2234_v36  ;;  %v2270_v8 = vsel %vm1001_vm3, %v4293_v12, 0.0 }
 0x914   : > { %2271 = vadd.xlane.f32.xlu0 %v2270_v8 }
 0x915   : > { %v4297_v44 = vadd.f32 %v3112_v15, %v2242_v56 }
 0x917   : > { %v2273_v58 = vsel %vm1017_vm4, %v4297_v44, 0.0 }
 0x918   : > { %2274 = vadd.xlane.f32.xlu1 %v2273_v58  ;;  %v3114_v58 = vld [vmem:[%s955_s24] ss:$0 sm:$0xff] }
 0x98d   : > { %v2260_v38 = vpop.xlane.xlu0 %2259 }
 0x98e   : > { %v2276_v18 = vmul.f32 0.03125, %v2260_v38 }
 0x990   : > { %v2282_v46 = vsub.f32 %v4277_v31, %v2276_v18 }
 0x991   : > { %v2263_v0 = vpop.xlane.xlu1 %2262 }
 0x992   : > { %v2277_v52 = vmul.f32 0.03125, %v2263_v0  ;;  %v2288_v57 = vmul.f32 %v2282_v46, %v2282_v46 }
 0x994   : > { %v2283_v59 = vsub.f32 %v4281_v43, %v2277_v52  ;;  %v2294_v61 = vsel %vm1001_vm3, %v2288_v57, 0.0 }
 0x995   : > { %v2266_v62 = vpop.xlane.xlu0 %2265  ;;  %2295 = vadd.xlane.f32.xlu0 %v2294_v61 }
 0x996   : > { %v2278_v26 = vmul.f32 0.03125, %v2266_v62  ;;  %v2289_v14 = vmul.f32 %v2283_v59, %v2283_v59 }
 0x998   : > { %v4305_v63 = vsub.f32 %v4285_v29, %v2278_v26  ;;  %v2297_v1 = vsel %vm1001_vm3, %v2289_v14, 0.0 }
 0x999   : > { %v2269_v3 = vpop.xlane.xlu1 %2268  ;;  %2298 = vadd.xlane.f32.xlu1 %v2297_v1 }
 0x99a   : > { %v2279_v4 = vmul.f32 0.03125, %v2269_v3  ;;  %v2290_v5 = vmul.f32 %v4305_v63, %v4305_v63 }
 0x99c   : > { %v2285_v20 = vsub.f32 %v4289_v60, %v2279_v4  ;;  %v2300_v7 = vsel %vm1001_vm3, %v2290_v5, 0.0 }
 0x99d   : > { %2301 = vadd.xlane.f32.xlu0 %v2300_v7  ;;  %v2272_v9 = vpop.xlane.xlu0 %2271 }
 0x99e   : > { %v2280_v10 = vmul.f32 0.03125, %v2272_v9  ;;  %v2291_v11 = vmul.f32 %v2285_v20, %v2285_v20 }
 0x9a0   : > { %v4313_v13 = vsub.f32 %v4293_v12, %v2280_v10  ;;  %v2303_v15 = vsel %vm1001_vm3, %v2291_v11, 0.0 }
 0x9a1   : > { %2304 = vadd.xlane.f32.xlu1 %v2303_v15  ;;  %v2275_v16 = vpop.xlane.xlu1 %2274 }
 0x9a2   : > { %v2281_v17 = vmul.f32 0.03125, %v2275_v16  ;;  %v2292_v19 = vmul.f32 %v4313_v13, %v4313_v13  ;;  %v3519_v16 = vld [vmem:[%s3847_s10 + $0x30] sm:$0xff]  }
 0x9a4   : > { %v2287_v21 = vsub.f32 %v4297_v44, %v2281_v17  ;;  %v2306_v32 = vsel %vm1001_vm3, %v2292_v19, 0.0  ;;  %v3520_v17 = vld [vmem:[%s3847_s10 + $0x28] sm:$0xff]   ;;  %v3521_v19 = vld [vmem:[%s3847_s10 + $0x20] sm:$0xff]  }
 0x9a5   : > { %2307 = vadd.xlane.f32.xlu0 %v2306_v32  ;;  %v3523_v32 = vld [vmem:[%s3847_s10 + $0x10] sm:$0xff]  }
 0x9a6   : > { %v2293_v35 = vmul.f32 %v2287_v21, %v2287_v21 }
 0x9a8   : > { %v2309_v22 = vsel %vm1017_vm4, %v2293_v35, 0.0  ;;  %v3524_v35 = vld [vmem:[%s3847_s10 + $0x8] sm:$0xff]  }
 0x9a9   : > { %2310 = vadd.xlane.f32.xlu1 %v2309_v22  ;;  %v3525_v22 = vld [vmem:[%s3847_s10] sm:$0xff]  }
 0xa1e   : > { %v2296_v39 = vpop.xlane.xlu0 %2295 }
 0xa1f   : > { %v2312_v27 = vmul.f32 0.03125, %v2296_v39 }
 0xa21   : > { %v2318_v28 = vadd.f32 1e-06, %v2312_v27 }
 0xa22   : > { %v2299_v48 = vpop.xlane.xlu1 %2298 }
 0xa23   : > { %3586 = vrsqrt.f32 %v2318_v28  ;;  %v2313_v49 = vmul.f32 0.03125, %v2299_v48 }
 0xa25   : > { %v2319_v50 = vadd.f32 1e-06, %v2313_v49 }
 0xa26   : > { %v2302_v24 = vpop.xlane.xlu0 %2301 }
 0xa27   : > { %3588 = vrsqrt.f32 %v2319_v50  ;;  %v2314_v30 = vmul.f32 0.03125, %v2302_v24 }
 0xa29   : > { %v2320_v55 = vadd.f32 1e-06, %v2314_v30 }
 0xa2a   : > { %v2305_v33 = vpop.xlane.xlu1 %2304 }
 0xa2b   : > { %3590 = vrsqrt.f32 %v2320_v55  ;;  %v2315_v37 = vmul.f32 0.03125, %v2305_v33 }
 0xa2d   : > { %v2321_v42 = vadd.f32 1e-06, %v2315_v37 }
 0xa2e   : > { %v2308_v34 = vpop.xlane.xlu0 %2307 }
 0xa2f   : > { %3592 = vrsqrt.f32 %v2321_v42  ;;  %v2316_v45 = vmul.f32 0.03125, %v2308_v34 }
 0xa30   : > { %v3587_v47 = vpop.eup %3586 }
 0xa31   : > { %v2330_v6 = vmul.f32 %v3587_v47, %v2282_v46  ;;  %v2322_v53 = vadd.f32 1e-06, %v2316_v45 }
 0xa32   : > { %v2311_v54 = vpop.xlane.xlu1 %2310 }
 0xa33   : > { %3594 = vrsqrt.f32 %v2322_v53  ;;  %v2317_v36 = vmul.f32 0.03125, %v2311_v54  ;;  %v2342_v23 = vmul.f32 %v3113_v2, %v2330_v6 }
 0xa34   : > { %v3589_v40 = vpop.eup %3588 }
 0xa35   : > { %v2331_v56 = vmul.f32 %v3589_v40, %v2283_v59  ;;  %v2323_v8 = vadd.f32 1e-06, %v2317_v36  ;;  %v2354_v46 = vadd.f32 %v3114_v58, %v2342_v23 }
 0xa37   : > { %v2343_v38 = vmul.f32 %v3113_v2, %v2331_v56  ;;  %3596 = vrsqrt.f32 %v2323_v8 }
 0xa38   : > { %v3591_v18 = vpop.eup %3590 }
 0xa39   : > { %v2355_v0 = vadd.f32 %v3114_v58, %v2343_v38  ;;  %v2332_v52 = vmul.f32 %v3591_v18, %v4305_v63 }
 0xa3b   : > { %v2364_v57 = vpack.c.bf16 %v2355_v0, %v2354_v46  ;;  %v2344_v26 = vmul.f32 %v3113_v2, %v2332_v52 }
 0xa3c   : > { %v3593_v61 = vpop.eup %3592 }
 0xa3d   : > { %3434 = vmatmul.mubr.msk.bf16.vlgmr.msra.gmra.mxu0 %vm1001_vm3, %v2364_v57  ;;  %v2333_v62 = vmul.f32 %v3593_v61, %v2285_v20  ;;  %v2356_v1 = vadd.f32 %v3114_v58, %v2344_v26 }
 0xa3e   : > { %3437 = vmatprep.mubr.msk.bf16.mxu0 %vm3634_vm5, %v3633_v51 }
 0xa3f   : > { %v2345_v59 = vmul.f32 %v3113_v2, %v2333_v62 }
 0xa40   : > { %v3595_v14 = vpop.eup %3594 }
 0xa41   : > { %v2357_v3 = vadd.f32 %v3114_v58, %v2345_v59  ;;  %v2334_v4 = vmul.f32 %v3595_v14, %v4313_v13  ;;  %v3518_v13 = vld [vmem:[%s3847_s10 + $0x38] sm:$0xff]  }
 0xa42   : > { %3446 = vmatpush3.bf16.msra.mxu1 %v3518_v13 }
 0xa43   : > { %v2365_v5 = vpack.c.bf16 %v2357_v3, %v2356_v1  ;;  %v2346_v9 = vmul.f32 %v3113_v2, %v2334_v4  ;;  %3447 = vmatprep.subr.bf16.mxu1 %v3633_v51 }
 0xa44   : > { %v3597_v7 = vpop.eup %3596 }
 0xa45   : > { %3438 = vmatmul.mubr.msk.bf16.gmra.mxu0 %vm1001_vm3, %v2365_v5  ;;  %v2335_v63 = vmul.f32 %v3597_v7, %v2287_v21  ;;  %v2358_v10 = vadd.f32 %v3114_v58, %v2346_v9  ;;  %v3522_v21 = vld [vmem:[%s3847_s10 + $0x18] sm:$0xff]  }
 0xa46   : > { %3441 = vmatprep.mubr.msk.bf16.mxu0 %vm3634_vm5, %v3633_v51  ;;  %3448 = vmatpush3.bf16.msra.mxu1 %v3519_v16 }
 0xa47   : > { %v2347_v20 = vmul.f32 %v3113_v2, %v2335_v63  ;;  %3449 = vmatprep.subr.bf16.mxu1 %v3633_v51 }
 0xa49   : > { %v2359_v11 = vadd.f32 %v3114_v58, %v2347_v20 }
 0xa4a   : > { %3450 = vmatpush3.bf16.msra.mxu1 %v3520_v17 }
 0xa4b   : > { %v2366_v15 = vpack.c.bf16 %v2359_v11, %v2358_v10  ;;  %3451 = vmatprep.subr.bf16.mxu1 %v3633_v51 }
 0xa4d   : > { %3442 = vmatmul.mubr.msk.bf16.gmra.mxu0 %vm1001_vm3, %v2366_v15 }
 0xa4e   : > { %3452 = vmatpush3.bf16.msra.mxu1 %v3521_v19 }
 0xa4f   : > { %3453 = vmatprep.subr.bf16.mxu1 %v3633_v51 }
 0xa52   : > { %3454 = vmatpush3.bf16.msra.mxu1 %v3522_v21 }
 0xa53   : > { %3455 = vmatprep.subr.bf16.mxu1 %v3633_v51 }
 0xa56   : > { %3456 = vmatpush3.bf16.msra.mxu1 %v3523_v32 }
 0xa57   : > { %3457 = vmatprep.subr.bf16.mxu1 %v3633_v51 }
 0xa5a   : > { %3458 = vmatpush3.bf16.msra.mxu1 %v3524_v35 }
 0xa5b   : > { %3459 = vmatprep.subr.bf16.mxu1 %v3633_v51 }
 0xa5e   : > { %3460 = vmatpush3.bf16.msra.mxu1 %v3525_v22 }
 0xafd   : > { %v2429_v41 = vpop.f32.mrf.mxu0 }
 0xafe   : > { %v2430_v39 = vadd.f32 %v3115_v25, %v2429_v41 }
 0xaff   : > { %v3435_v27 = vpop.f32.mrf.mxu0 }
 0xb00   : > { %v2452_v28 = vmul.f32 %v2430_v39, %v2430_v39 }
 0xb01   : > { %v2432_v48 = vpop.f32.mrf.mxu0 }
 0xb02   : > { %v2458_v49 = vmul.f32 %v2452_v28, %v2430_v39  ;;  %v2433_v50 = vadd.f32 %v3115_v25, %v2432_v48 }
 0xb03   : > { %v3436_v24 = vpop.f32.mrf.mxu0 }
 0xb04   : > { %v2464_v30 = vmul.f32 0.044715, %v2458_v49  ;;  %v2453_v55 = vmul.f32 %v2433_v50, %v2433_v50 }
 0xb05   : > { %v2437_v33 = vpop.f32.mrf.mxu0 }
 0xb06   : > { %v2470_v37 = vadd.f32 %v2464_v30, %v2430_v39  ;;  %v2459_v42 = vmul.f32 %v2453_v55, %v2433_v50  ;;  %v2438_v34 = vadd.f32 %v3115_v25, %v2437_v33 }
 0xb07   : > { %v3439_v45 = vpop.f32.mrf.mxu0 }
 0xb08   : > { %v2476_v47 = vmul.f32 0.7978846, %v2470_v37  ;;  %v2465_v6 = vmul.f32 0.044715, %v2459_v42  ;;  %v2454_v53 = vmul.f32 %v2438_v34, %v2438_v34 }
 0xb09   : > { %v2440_v2 = vpop.f32.mrf.mxu0 }
 0xb0a   : > { %3598 = vtanh.f32 %v2476_v47  ;;  %v2471_v54 = vadd.f32 %v2465_v6, %v2433_v50  ;;  %v2460_v36 = vmul.f32 %v2454_v53, %v2438_v34  ;;  %v2441_v40 = vadd.f32 %v3115_v25, %v2440_v2 }
 0xb0b   : > { %v3440_v23 = vpop.f32.mrf.mxu0 }
 0xb0c   : > { %v2477_v56 = vmul.f32 0.7978846, %v2471_v54  ;;  %v2466_v8 = vmul.f32 0.044715, %v2460_v36  ;;  %v2455_v58 = vmul.f32 %v2441_v40, %v2441_v40 }
 0xb0d   : > { %v2445_v38 = vpop.f32.mrf.mxu0 }
 0xb0e   : > { %3600 = vtanh.f32 %v2477_v56  ;;  %v2472_v18 = vadd.f32 %v2466_v8, %v2438_v34  ;;  %v2461_v46 = vmul.f32 %v2455_v58, %v2441_v40  ;;  %v2446_v0 = vadd.f32 %v3115_v25, %v2445_v38 }
 0xb0f   : > { %v3443_v52 = vpop.f32.mrf.mxu0 }
 0xb10   : > { %v2478_v57 = vmul.f32 0.7978846, %v2472_v18  ;;  %v2467_v61 = vmul.f32 0.044715, %v2461_v46  ;;  %v2456_v62 = vmul.f32 %v2446_v0, %v2446_v0 }
 0xb11   : > { %v2448_v26 = vpop.f32.mrf.mxu0 }
 0xb12   : > { %3602 = vtanh.f32 %v2478_v57  ;;  %v2473_v59 = vadd.f32 %v2467_v61, %v2441_v40  ;;  %v2462_v14 = vmul.f32 %v2456_v62, %v2446_v0  ;;  %v2449_v1 = vadd.f32 %v3115_v25, %v2448_v26 }
 0xb13   : > { %v3444_v3 = vpop.f32.mrf.mxu0 }
 0xb14   : > { %v2479_v4 = vmul.f32 0.7978846, %v2473_v59  ;;  %v2468_v5 = vmul.f32 0.044715, %v2462_v14  ;;  %v2457_v7 = vmul.f32 %v2449_v1, %v2449_v1 }
 0xb16   : > { %3604 = vtanh.f32 %v2479_v4  ;;  %v2474_v63 = vadd.f32 %v2468_v5, %v2446_v0  ;;  %v2463_v9 = vmul.f32 %v2457_v7, %v2449_v1 }
 0xb17   : > { %v3599_v20 = vpop.eup %3598 }
 0xb18   : > { %v2488_v10 = vadd.f32 1.0, %v3599_v20  ;;  %v2480_v11 = vmul.f32 0.7978846, %v2474_v63  ;;  %v2469_v15 = vmul.f32 0.044715, %v2463_v9 }
 0xb1a   : > { %3606 = vtanh.f32 %v2480_v11  ;;  %v2475_v13 = vadd.f32 %v2469_v15, %v2449_v1  ;;  %v2494_v17 = vmul.f32 0.5, %v2488_v10 }
 0xb1b   : > { %v3601_v16 = vpop.eup %3600 }
 0xb1c   : > { %v2489_v19 = vadd.f32 1.0, %v3601_v16  ;;  %v2481_v21 = vmul.f32 0.7978846, %v2475_v13  ;;  %v2500_v22 = vmul.f32 %v2494_v17, %v2430_v39 }
 0xb1e   : > { %v2495_v32 = vmul.f32 0.5, %v2489_v19  ;;  %3608 = vtanh.f32 %v2481_v21 }
 0xb1f   : > { %v3603_v35 = vpop.eup %3602 }
 0xb20   : > { %v2501_v25 = vmul.f32 %v2495_v32, %v2433_v50  ;;  %v2490_v41 = vadd.f32 1.0, %v3603_v35 }
 0xb22   : > { %v2522_v27 = vpack.c.bf16 %v2501_v25, %v2500_v22  ;;  %v2496_v49 = vmul.f32 0.5, %v2490_v41 }
 0xb23   : > { %v3605_v28 = vpop.eup %3604 }
 0xb24   : > { %3462 = vmatmul.mubr.bf16.vlgmr.msra.gmra.mxu1 %v2522_v27  ;;  %v2491_v48 = vadd.f32 1.0, %v3605_v28  ;;  %v2502_v55 = vmul.f32 %v2496_v49, %v2438_v34  ;;  %v3129_v34 = vld [vmem:[%s971_s25] ss:$0 sm:$0xff] }
 0xb25   : > { %3465 = vmatprep.mubr.msk.bf16.mxu1 %vm3634_vm5, %v3633_v51 }
 0xb26   : > { %v2497_v24 = vmul.f32 0.5, %v2491_v48 }
 0xb27   : > { %v3607_v30 = vpop.eup %3606 }
 0xb28   : > { %v2503_v33 = vmul.f32 %v2497_v24, %v2441_v40  ;;  %v2492_v37 = vadd.f32 1.0, %v3607_v30 }
 0xb2a   : > { %v2523_v42 = vpack.c.bf16 %v2503_v33, %v2502_v55  ;;  %v2498_v50 = vmul.f32 0.5, %v2492_v37 }
 0xb2b   : > { %v3609_v45 = vpop.eup %3608 }
 0xb2c   : > { %3466 = vmatmul.mubr.bf16.gmra.mxu1 %v2523_v42  ;;  %v2493_v39 = vadd.f32 1.0, %v3609_v45  ;;  %v2504_v6 = vmul.f32 %v2498_v50, %v2446_v0 }
 0xb2d   : > { %3469 = vmatprep.mubr.msk.bf16.mxu1 %vm3634_vm5, %v3633_v51 }
 0xb2e   : > { %v2499_v47 = vmul.f32 0.5, %v2493_v39 }
 0xb30   : > { %v2505_v53 = vmul.f32 %v2499_v47, %v2449_v1 }
 0xb32   : > { %v2524_v2 = vpack.c.bf16 %v2505_v53, %v2504_v6 }
 0xb34   : > { %3470 = vmatmul.mubr.bf16.gmra.mxu1 %v2524_v2 }
 0xbe4   : > { %v2607_v54 = vpop.f32.mrf.mxu1 }
 0xbe5   : > { %v2630_v36 = vadd.f32 %v2607_v54, %v4277_v31 }
 0xbe6   : > { %v3463_v40 = vpop.f32.mrf.mxu1 }
 0xbe7   : > { %v2643_v23 = vadd.f32 %v3129_v34, %v2630_v36 }
 0xbe8   : > { %v2610_v56 = vpop.f32.mrf.mxu1 }
 0xbe9   : > { %2649 = vst.msk [vmem:[#allocation2] sm:$0xff] %vm1001_vm3, %v2643_v23  ;;  %v2631_v51 = vadd.f32 %v2610_v56, %v4281_v43 }
 0xbea   : > { %v3464_v8 = vpop.f32.mrf.mxu1 }
 0xbeb   : > { %v2644_v58 = vadd.f32 %v3129_v34, %v2631_v51 }
 0xbec   : > { %v2615_v38 = vpop.f32.mrf.mxu1 }
 0xbed   : > { %2650 = vst.msk [vmem:[#allocation2 + $0x8] sm:$0xff] %vm1001_vm3, %v2644_v58  ;;  %v2632_v18 = vadd.f32 %v2615_v38, %v4285_v29 }
 0xbee   : > { %v3467_v46 = vpop.f32.mrf.mxu1 }
 0xbef   : > { %v2645_v0 = vadd.f32 %v3129_v34, %v2632_v18 }
 0xbf0   : > { %v2618_v52 = vpop.f32.mrf.mxu1 }
 0xbf1   : > { %2651 = vst.msk [vmem:[#allocation2 + $0x10] sm:$0xff] %vm1001_vm3, %v2645_v0  ;;  %v2633_v31 = vadd.f32 %v2618_v52, %v4289_v60 }
 0xbf2   : > { %v3468_v57 = vpop.f32.mrf.mxu1 }
 0xbf3   : > { %v2646_v61 = vadd.f32 %v3129_v34, %v2633_v31 }
 0xbf4   : > { %v2623_v62 = vpop.f32.mrf.mxu1 }
 0xbf5   : > { %2652 = vst.msk [vmem:[#allocation2 + $0x18] sm:$0xff] %vm1001_vm3, %v2646_v61  ;;  %v2634_v43 = vadd.f32 %v2623_v62, %v4293_v12 }
 0xbf6   : > { %v3471_v26 = vpop.f32.mrf.mxu1 }
 0xbf7   : > { %v2647_v59 = vadd.f32 %v3129_v34, %v2634_v43 }
 0xbf8   : > { %v2626_v14 = vpop.f32.mrf.mxu1 }
 0xbf9   : > { %2653 = vst.msk [vmem:[#allocation2 + $0x20] sm:$0xff] %vm1001_vm3, %v2647_v59  ;;  %v2635_v29 = vadd.f32 %v2626_v14, %v4297_v44  ;;  %2658 = sbr.rel (%p3130_p5) target bundleno = 3793 (0xed1), region = 124 }
 0xbfa   : > { %v3472_v1 = vpop.f32.mrf.mxu1 }
 0xbfb   : > { %v2648_v3 = vadd.f32 %v3129_v34, %v2635_v29 }
 0xbfd   : > { %2654 = vst.msk [vmem:[#allocation2 + $0x28] sm:$0x3] %vm1017_vm4, %v2648_v3 }
 0xbfe   : > { %v2660_v60 = vrot.slane %v2645_v0, 4  ;;  %vm2662_vm10 = vcmask 1040384   ;;  %v3616_v44 = vld [vmem:[%s4491_s30 + $0x8] sm:$0xff]   ;;  %v3635_v10 = vmov 0.0   ;;  %vm3636_vm11 = vmmov 0   ;;  %v3617_v11 = vld [vmem:[%s4491_s30] sm:$0xff]  }
 0xbff   : > { %3473 = vmatprep.subr.bf16.mxu0 %v3635_v10  ;;  %3477 = vmatprep.mubr.msk.bf16.mxu0 %vm3636_vm11, %v3635_v10  ;;  %v3131_v19 = vld [vmem:[%s4492_s6] ss:$0 sm:$0xff]  ;;  %v3618_v41 = vld [vmem:[%s4494_s21 + $0x8] sm:$0xff]   ;;  %vm2828_vm12 = vcmask 148480  }
 0xc00   : > { %v2663_v4 = vsel %vm2662_vm10, %v2643_v23, %v2660_v60  ;;  %3474 = vmatpush3.bf16.msra.mxu0 %v3616_v44  ;;  %3481 = vmatprep.subr.bf16.mxu1 %v3635_v10  ;;  %v3132_v32 = vld [vmem:[%s4493_s2] ss:$0 sm:$0xff] }
 0xc01   : > { %v2666_v5 = vsel %vm1017_vm4, %v2663_v4, 0.0  ;;  %3475 = vmatprep.subr.bf16.mxu0 %v3635_v10  ;;  %3485 = vmatprep.mubr.msk.bf16.mxu1 %vm3636_vm11, %v3635_v10  ;;  %v3619_v27 = vld [vmem:[%s4494_s21] sm:$0xff]  }
 0xc02   : > { %2667 = vadd.xlane.f32.xlu0 %v2666_v5  ;;  %3482 = vmatpush3.bf16.msra.mxu1 %v3618_v41  ;;  %v3133_v28 = vld [vmem:[%s4495_s20] ss:$0 sm:$0xff] }
 0xc03   : > { %3483 = vmatprep.subr.bf16.mxu1 %v3635_v10  ;;  %v3137_v42 = vld [vmem:[%s4496_s19] ss:$0 sm:$0xff] }
 0xc04   : > { %3476 = vmatpush3.bf16.msra.mxu0 %v3617_v11 }
 0xc06   : > { %3484 = vmatpush3.bf16.msra.mxu1 %v3619_v27 }
 0xc8b   : > { %v2668_v12 = vpop.xlane.xlu0 %2667 }
 0xc8c   : > { %v2669_v7 = vmul.f32 0.03125, %v2668_v12 }
 0xc8e   : > { %v2670_v63 = vsub.f32 %v2663_v4, %v2669_v7 }
 0xc90   : > { %v2671_v9 = vmul.f32 %v2670_v63, %v2670_v63 }
 0xc92   : > { %v2672_v20 = vsel %vm1017_vm4, %v2671_v9, 0.0 }
 0xc93   : > { %2673 = vadd.xlane.f32.xlu0 %v2672_v20 }
 0xd1c   : > { %v2674_v15 = vpop.xlane.xlu0 %2673 }
 0xd1d   : > { %v2675_v13 = vmul.f32 0.03125, %v2674_v15 }
 0xd1f   : > { %v2676_v16 = vadd.f32 1e-06, %v2675_v13 }
 0xd21   : > { %3620 = vrsqrt.f32 %v2676_v16 }
 0xd2e   : > { %v3621_v17 = vpop.eup %3620 }
 0xd2f   : > { %v2678_v21 = vmul.f32 %v3621_v17, %v2670_v63 }
 0xd31   : > { %v2685_v35 = vmul.f32 %v3131_v19, %v2678_v21 }
 0xd33   : > { %v2692_v22 = vadd.f32 %v3132_v32, %v2685_v35 }
 0xd35   : > { %v2697_v25 = vpack.c.bf16 %v2692_v22, %v2692_v22 }
 0xd37   : > { %3478 = vmatmul.mubr.msk.bf16.vlgmr.msra.gmra.mxu0 %vm1001_vm3, %v2697_v25 }
 0xdf7   : > { %v2754_v48 = vpop.f32.mrf.mxu0 }
 0xdf8   : > { %v2755_v49 = vadd.f32 %v3133_v28, %v2754_v48 }
 0xdf9   : > { %v3479_v24 = vpop.f32.mrf.mxu0 }
 0xdfa   : > { %3622 = vtanh.f32 %v2755_v49 }
 0xdfb   : > { %v2757_v30 = vpop.f32.mrf.mxu0 }
 0xdfd   : > { %v3480_v55 = vpop.f32.mrf.mxu0 }
 0xe07   : > { %v3623_v33 = vpop.eup %3622 }
 0xe08   : > { %v2765_v37 = vpack.c.bf16 %v3623_v33, %v3623_v33 }
 0xe0a   : > { %3486 = vmatmul.mubr.msk.bf16.vlgmr.msra.gmra.mxu1 %vm1001_vm3, %v2765_v37 }
 0xeca   : > { %v2822_v45 = vpop.f32.mrf.mxu1 }
 0xecb   : > { %v2823_v39 = vadd.f32 %v3137_v42, %v2822_v45 }
 0xecc   : > { %v3487_v50 = vpop.f32.mrf.mxu1 }
 0xecd   : > { %2829 = vst.msk [vmem:[%s4497_s26] sm:$0x3] %vm2828_vm12, %v2823_v39 }
 0xece   : > { %v2825_v47 = vpop.f32.mrf.mxu1 }
 0xed0   : > { %v3488_v6 = vpop.f32.mrf.mxu1 }
 0xed1 PF: > { %s4498_s4 = sld [smem:[#allocation3_spill]] }
 0xed7   : > { %s34_s5 = sadd.s32 1, %s4498_s4  }
 0xed8   : > { %p31_p6 = scmp.ge.s32.totalorder %s34_s5, 4  }
 0xeda   :  { %33 = sbr.rel (!%p31_p6) target bundleno = 19 (0x13), region = 202 }

</bundles_post_ra>
